<compile_context>
chip_gen: v7x
topology: tpu7x:2x2x1
jax: 0.10.0
libtpu: 0.0.40
codegen_flags: <defaults>
</compile_context>

<pallas_src>
import math
import functools

import numpy as np
import jax
import jax.numpy as jnp
from jax.experimental import pallas as pl
from jax.experimental.pallas import tpu as pltpu

F32 = jnp.float32


# ---------------------------------------------------------------------------
# Shared in-kernel helper: centered 2-D DFT of one complex (H, W) plane
# ---------------------------------------------------------------------------

def _dft2_plane(xr, xi, ar, ai, btr, bti):
    """Y = A @ X @ B^T with complex A, X, B.  Plain 2-D MXU matmuls only;
    Gauss 3-mult trick per stage (6 real matmuls per 2-D transform)."""
    def mm(p, q):
        return jnp.dot(p, q, preferred_element_type=jnp.float32)

    # stage 1: column transform  T = X @ B^T   (B^T pre-transposed on host)
    t1 = mm(xr, btr)
    t2 = mm(xi, bti)
    t3 = mm(xr + xi, btr + bti)
    tr = t1 - t2
    ti = t3 - t1 - t2
    # stage 2: row transform     Y = A @ T
    u1 = mm(ar, tr)
    u2 = mm(ai, ti)
    u3 = mm(ar + ai, tr + ti)
    return u1 - u2, u3 - u1 - u2


# ---------------------------------------------------------------------------
# Pallas kernels
# ---------------------------------------------------------------------------

def _dft2_slice_kernel(ar_ref, ai_ref, btr_ref, bti_ref, xr_ref, xi_ref,
                       yr_ref, yi_ref):
    yr, yi = _dft2_plane(xr_ref[0], xi_ref[0],
                         ar_ref[...], ai_ref[...], btr_ref[...], bti_ref[...])
    yr_ref[0] = yr
    yi_ref[0] = yi


def dft2_slices(xr, xi, ar, ai, btr, bti):
    """Centered 2-D (i)DFT of n independent (H, W) slices, one grid step each."""
    n, h, w = xr.shape
    spec_ah = pl.BlockSpec((h, h), lambda i: (0, 0))
    spec_bw = pl.BlockSpec((w, w), lambda i: (0, 0))
    spec = pl.BlockSpec((1, h, w), lambda i: (i, 0, 0))
    return pl.pallas_call(
        _dft2_slice_kernel,
        grid=(n,),
        in_specs=[spec_ah, spec_ah, spec_bw, spec_bw, spec, spec],
        out_specs=(spec, spec),
        out_shape=(jax.ShapeDtypeStruct((n, h, w), F32),) * 2,
        compiler_params=pltpu.CompilerParams(dimension_semantics=("parallel",)),
    )(ar, ai, btr, bti, xr, xi)


def _sens_reduce_kernel(ar_ref, ai_ref, btr_ref, bti_ref, kr_ref, ki_ref,
                        scr_ref, sci_ref, or_ref, oi_ref):
    """One (batch, coil) step: ifft2c of this coil + complex_mul(sens_conj),
    accumulated over the coil ('arbitrary') axis in the resident output block."""
    j = pl.program_id(1)
    yr, yi = _dft2_plane(kr_ref[0, 0], ki_ref[0, 0],
                         ar_ref[...], ai_ref[...], btr_ref[...], bti_ref[...])
    cr, ci = scr_ref[0, 0], sci_ref[0, 0]
    rr = yr * cr - yi * ci
    ri = yr * ci + yi * cr

    @pl.when(j == 0)
    def _():
        or_ref[0, 0] = rr
        oi_ref[0, 0] = ri

    @pl.when(j > 0)
    def _():
        or_ref[0, 0] += rr
        oi_ref[0, 0] += ri


def sens_reduce_fused(kr, ki, scr, sci, ar, ai, btr, bti):
    b, c, h, w = kr.shape
    spec_ah = pl.BlockSpec((h, h), lambda i, j: (0, 0))
    spec_bw = pl.BlockSpec((w, w), lambda i, j: (0, 0))
    spec_in = pl.BlockSpec((1, 1, h, w), lambda i, j: (i, j, 0, 0))
    spec_out = pl.BlockSpec((1, 1, h, w), lambda i, j: (i, 0, 0, 0))
    return pl.pallas_call(
        _sens_reduce_kernel,
        grid=(b, c),
        in_specs=[spec_ah, spec_ah, spec_bw, spec_bw,
                  spec_in, spec_in, spec_in, spec_in],
        out_specs=(spec_out, spec_out),
        out_shape=(jax.ShapeDtypeStruct((b, 1, h, w), F32),) * 2,
        compiler_params=pltpu.CompilerParams(
            dimension_semantics=("parallel", "arbitrary")),
    )(ar, ai, btr, bti, kr, ki, scr, sci)


def _expand_dc_kernel(ar_ref, ai_ref, btr_ref, bti_ref, mr_ref, mi_ref,
                      sr_ref, si_ref, rr_ref, ri_ref, mask_ref,
                      or_ref, oi_ref, *, dcw):
    """One (batch, coil) step: complex_mul(model_term, sens_map) + fft2c + DC."""
    mr, mi = mr_ref[0, 0], mi_ref[0, 0]          # (H, W) model term
    sr, si = sr_ref[0, 0], si_ref[0, 0]          # (H, W) this coil's sens map
    pr = mr * sr - mi * si
    pi = mr * si + mi * sr
    er, ei = _dft2_plane(pr, pi, ar_ref[...], ai_ref[...],
                         btr_ref[...], bti_ref[...])
    msk = mask_ref[0] > 0.0
    inv = 1.0 / (1.0 + dcw)
    rr, ri = rr_ref[0, 0], ri_ref[0, 0]
    # reference: where(mask, (ref + dcw * pred) / (1 + dcw), pred)
    or_ref[0, 0] = jnp.where(msk, (rr + dcw * er) * inv, er)
    oi_ref[0, 0] = jnp.where(msk, (ri + dcw * ei) * inv, ei)


def expand_dc_fused(mr, mi, sr, si, rr, ri, mask_bhw, dcw, ar, ai, btr, bti):
    b, c, h, w = sr.shape
    spec_ah = pl.BlockSpec((h, h), lambda i, j: (0, 0))
    spec_bw = pl.BlockSpec((w, w), lambda i, j: (0, 0))
    spec_m = pl.BlockSpec((1, 1, h, w), lambda i, j: (i, 0, 0, 0))
    spec_c = pl.BlockSpec((1, 1, h, w), lambda i, j: (i, j, 0, 0))
    spec_msk = pl.BlockSpec((1, h, w), lambda i, j: (i, 0, 0))
    return pl.pallas_call(
        functools.partial(_expand_dc_kernel, dcw=float(dcw)),
        grid=(b, c),
        in_specs=[spec_ah, spec_ah, spec_bw, spec_bw,
                  spec_m, spec_m, spec_c, spec_c, spec_c, spec_c, spec_msk],
        out_specs=(spec_c, spec_c),
        out_shape=(jax.ShapeDtypeStruct((b, c, h, w), F32),) * 2,
        compiler_params=pltpu.CompilerParams(
            dimension_semantics=("parallel", "parallel")),
    )(ar, ai, btr, bti, mr, mi, sr, si, rr, ri, mask_bhw)


def _ifft_rss_kernel(ar_ref, ai_ref, btr_ref, bti_ref, kr_ref, ki_ref, o_ref):
    """Final stage: per-coil ifft2c + |.|^2 accumulated over coils, sqrt at the end."""
    j = pl.program_id(1)
    yr, yi = _dft2_plane(kr_ref[0, 0], ki_ref[0, 0],
                         ar_ref[...], ai_ref[...], btr_ref[...], bti_ref[...])
    mag = yr * yr + yi * yi

    @pl.when(j == 0)
    def _():
        o_ref[0, 0] = mag

    @pl.when(j > 0)
    def _():
        o_ref[0, 0] += mag

    @pl.when(j == pl.num_programs(1) - 1)
    def _():
        o_ref[0, 0] = jnp.sqrt(o_ref[0, 0])


def ifft_rss_fused(kr, ki, ar, ai, btr, bti):
    b, c, h, w = kr.shape
    spec_ah = pl.BlockSpec((h, h), lambda i, j: (0, 0))
    spec_bw = pl.BlockSpec((w, w), lambda i, j: (0, 0))
    spec_in = pl.BlockSpec((1, 1, h, w), lambda i, j: (i, j, 0, 0))
    spec_out = pl.BlockSpec((1, 1, h, w), lambda i, j: (i, 0, 0, 0))
    return pl.pallas_call(
        _ifft_rss_kernel,
        grid=(b, c),
        in_specs=[spec_ah, spec_ah, spec_bw, spec_bw, spec_in, spec_in],
        out_specs=spec_out,
        out_shape=jax.ShapeDtypeStruct((b, 1, h, w), F32),
        compiler_params=pltpu.CompilerParams(
            dimension_semantics=("parallel", "arbitrary")),
    )(ar, ai, btr, bti, kr, ki)


def _rss_div_kernel(xr_ref, xi_ref, or_ref, oi_ref):
    """Fused sens-map normalization: multiply by rsqrt(sum_c |x|^2)."""
    xr, xi = xr_ref[0], xi_ref[0]
    # NOTE: no epsilon, matching the reference divide_root_sum_of_squares exactly.
    inv = jax.lax.rsqrt(jnp.sum(xr * xr + xi * xi, axis=0, keepdims=True))
    or_ref[0] = xr * inv
    oi_ref[0] = xi * inv


def rss_divide(xr, xi):
    b, c, h, w = xr.shape
    spec = pl.BlockSpec((1, c, h, w), lambda i: (i, 0, 0, 0))
    return pl.pallas_call(
        _rss_div_kernel,
        grid=(b,),
        in_specs=[spec, spec],
        out_specs=(spec, spec),
        out_shape=(jax.ShapeDtypeStruct((b, c, h, w), F32),) * 2,
        compiler_params=pltpu.CompilerParams(dimension_semantics=("parallel",)),
    )(xr, xi)


def _norm_kernel(x_ref, xn_ref, m_ref, s_ref, *, n_elem):
    """Per-row (per-channel) normalization over a lane-dense H*W axis."""
    x = x_ref[...]                                          # (rows, H*W)
    mean = jnp.sum(x, axis=1, keepdims=True) * (1.0 / n_elem)
    d = x - mean
    var = jnp.sum(d * d, axis=1, keepdims=True) * (1.0 / (n_elem - 1.0))  # unbiased
    xn_ref[...] = d * jax.lax.rsqrt(var)
    m_ref[...] = mean
    s_ref[...] = jnp.sqrt(var)


def channel_norm(x2d):
    m, l = x2d.shape
    return pl.pallas_call(
        functools.partial(_norm_kernel, n_elem=float(l)),
        out_shape=(jax.ShapeDtypeStruct((m, l), F32),
                   jax.ShapeDtypeStruct((m, 1), F32),
                   jax.ShapeDtypeStruct((m, 1), F32)),
    )(x2d)


def _conv_mm_kernel(p_ref, w_ref, b_ref, o_ref, *, act):
    """Fused conv-as-matmul: (Cout_p, 9C) @ (9C, lane_tile) + bias [+ SiLU]."""
    y = jnp.dot(w_ref[...], p_ref[0], preferred_element_type=jnp.float32)
    y = y + b_ref[...]
    if act:                                                  # SiLU via EUP recip
        y = y * pl.reciprocal(1.0 + jnp.exp(-y), approx=True)
    o_ref[0] = y


def conv3x3_silu(x, wmat, bcol, cout, act):
    """3x3 conv (pad=1) + bias [+ SiLU] with H*W on the lane axis.  x: (B, C, H, W).

    im2col is done with shifted slices in XLA (fused under jit), channel-major, so
    no transposes are needed and the Pallas matmul output is lane-dense."""
    # TODO(synk): move im2col into the kernel (padded (C, H+2, W+2) tile in VMEM,
    # 9 shifted matmuls) to remove the 9x HBM expansion at real fastMRI sizes.
    b, c, h, w = x.shape
    hw = h * w
    xp = jnp.pad(x, ((0, 0), (0, 0), (1, 1), (1, 1)))
    cols = [xp[:, :, dh:dh + h, dw:dw + w] for dh in range(3) for dw in range(3)]
    patches = jnp.stack(cols, axis=1).reshape(b, 9 * c, hw)   # (B, 9C, H*W)
    cout_p = wmat.shape[0]
    lane_tile = 128 if hw % 128 == 0 else hw
    out = pl.pallas_call(
        functools.partial(_conv_mm_kernel, act=act),
        grid=(b, hw // lane_tile),
        in_specs=[pl.BlockSpec((1, 9 * c, lane_tile), lambda i, j: (i, 0, j)),
                  pl.BlockSpec((cout_p, 9 * c), lambda i, j: (0, 0)),
                  pl.BlockSpec((cout_p, 1), lambda i, j: (0, 0))],
        out_specs=pl.BlockSpec((1, cout_p, lane_tile), lambda i, j: (i, 0, j)),
        out_shape=jax.ShapeDtypeStruct((b, cout_p, hw), F32),
        compiler_params=pltpu.CompilerParams(
            dimension_semantics=("parallel", "parallel")),
    )(patches, wmat, bcol)
    return out[:, :cout].reshape(b, cout, h, w)


# ---------------------------------------------------------------------------
# fastMRI-style helpers
# ---------------------------------------------------------------------------

def _join(xr, xi):
    return jnp.stack([xr, xi], axis=-1)


class CenteredFFT:
    """fft2c / ifft2c (ortho, centered) via pre-computed DFT matrices.
    Column matrices are pre-transposed once so kernels apply them as a plain
    right-multiplication (no in-kernel transpose)."""

    def __init__(self, h, w):
        fr, fi = self._mats(h, False)
        gr, gi = self._mats(w, False)
        ir, ii = self._mats(h, True)
        jr, ji = self._mats(w, True)
        self._fft_args = (jnp.asarray(fr, F32), jnp.asarray(fi, F32),
                          jnp.asarray(gr.T, F32), jnp.asarray(gi.T, F32))
        self._ifft_args = (jnp.asarray(ir, F32), jnp.asarray(ii, F32),
                           jnp.asarray(jr.T, F32), jnp.asarray(ji.T, F32))

    @staticmethod
    def _mats(n, inverse):
        eye = np.eye(n)
        z = np.fft.ifftshift(eye, axes=0)
        m = (np.fft.ifft if inverse else np.fft.fft)(z, axis=0, norm="ortho")
        m = np.fft.fftshift(m, axes=0)
        return m.real.astype(np.float32), m.imag.astype(np.float32)

    def fft_args(self):
        return self._fft_args

    def ifft_args(self):
        return self._ifft_args


# ---------------------------------------------------------------------------
# Model components
# ---------------------------------------------------------------------------

def _init_conv(key, cout, cin):
    k1, k2 = jax.random.split(key)
    bound = 1.0 / math.sqrt(cin * 9)
    w = jax.random.uniform(k1, (cout, cin, 3, 3), minval=-bound, maxval=bound, dtype=F32)
    b = jax.random.uniform(k2, (cout,), minval=-bound, maxval=bound, dtype=F32)
    return w, b


def _prep_conv(w, b):
    """Reshape/pad conv weights ONCE at init: (Cout, Cin, 3, 3) -> (Cout_p, 9*Cin)."""
    cout, cin, _, _ = w.shape
    cout_p = ((cout + 7) // 8) * 8
    wmat = w.transpose(0, 2, 3, 1).reshape(cout, 9 * cin)    # [co, (dh,dw,ci)]
    wmat = jnp.pad(wmat, ((0, cout_p - cout), (0, 0)))
    bcol = jnp.pad(b.reshape(cout, 1), ((0, cout_p - cout), (0, 0)))
    return wmat, bcol, cout


class StandInRegularizer:
    # TODO(synk): the reference ResXUNet definition is not included in the provided
    # source; this is a small 3-layer conv/SiLU stand-in with the same
    # (n_channels -> 2) I/O contract.
    def __init__(self, key, n_channels, n):
        k1, k2, k3 = jax.random.split(key, 3)
        self.c1 = _prep_conv(*_init_conv(k1, n, n_channels))
        self.c2 = _prep_conv(*_init_conv(k2, n, n))
        self.c3 = _prep_conv(*_init_conv(k3, 2, n))

    def __call__(self, x, internals=None):
        h = conv3x3_silu(x, *self.c1, act=True)
        h = conv3x3_silu(h, *self.c2, act=True)
        out = conv3x3_silu(h, *self.c3, act=False)
        # TODO(synk): interconnection feature maps are passed through unchanged.
        return out, internals


class NormNetJ:
    def __init__(self, key, n, n_channels, interconnections):
        self.interconnections = interconnections
        self.model = StandInRegularizer(key, n_channels, n)

    @staticmethod
    def complex_to_chan_dim(x):
        b, c, h, w, two = x.shape
        assert two == 2
        return x.transpose(0, 1, 4, 2, 3).reshape(b, 2 * c, h, w)

    @staticmethod
    def chan_complex_to_last_dim(x):
        b, c2, h, w = x.shape
        c = c2 // 2
        return x.reshape(b, c, 2, h, w).transpose(0, 1, 3, 4, 2)

    @staticmethod
    def norm(x):
        b, c, h, w = x.shape
        xn, mean, std = channel_norm(x.reshape(b * c, h * w))   # lane-dense rows
        xn = xn.reshape(b, c, h, w)
        mean = mean.reshape(b, c, 1, 1)
        std = std.reshape(b, c, 1, 1)
        return xn, mean[:, :2], std[:, :2]

    @staticmethod
    def unnorm(x, mean, std):
        return x * std + mean

    @staticmethod
    def pad(x):
        _, _, h, w = x.shape
        w_mult = ((w - 1) | 15) + 1
        h_mult = ((h - 1) | 15) + 1
        w_pad = [math.floor((w_mult - w) / 2), math.ceil((w_mult - w) / 2)]
        h_pad = [math.floor((h_mult - h) / 2), math.ceil((h_mult - h) / 2)]
        x = jnp.pad(x, ((0, 0), (0, 0), (h_pad[0], h_pad[1]), (w_pad[0], w_pad[1])))
        return x, (h_pad, w_pad, h_mult, w_mult)

    @staticmethod
    def unpad(x, h_pad, w_pad, h_mult, w_mult):
        return x[..., h_pad[0]:h_mult - h_pad[1], w_pad[0]:w_mult - w_pad[1]]

    def __call__(self, x, internals=None):
        assert x.shape[-1] == 2
        x = self.complex_to_chan_dim(x)
        x, mean, std = self.norm(x)
        x, pad_sizes = self.pad(x)
        x, internals = self.model(x, internals)
        x = self.unpad(x, *pad_sizes)
        x = self.unnorm(x, mean, std)
        x = self.chan_complex_to_last_dim(x)
        if self.interconnections:
            return x, internals
        return x


class SensitivityModelJ:
    def __init__(self, key, sense_n, fft):
        self.model = NormNetJ(key, sense_n, 2, interconnections=False)
        self.fft = fft

    @staticmethod
    def mask_center(x, mask_from, mask_to):
        out = jnp.zeros_like(x)
        return out.at[:, :, :, mask_from:mask_to].set(x[:, :, :, mask_from:mask_to])

    def __call__(self, masked_kspace, pad=None, num_low_freqs=None):
        # pad / num_low_freqs are static Python ints computed on the host (the
        # torch.nonzero center search), so this whole call is jittable.
        if pad is not None:
            x = self.mask_center(masked_kspace, pad, pad + num_low_freqs)
        else:
            x = masked_kspace
        b, c, h, w, _ = x.shape
        xr = x[..., 0].reshape(b * c, h, w)
        xi = x[..., 1].reshape(b * c, h, w)
        yr, yi = dft2_slices(xr, xi, *self.fft.ifft_args())     # ifft2c, all coils
        x = _join(yr, yi).reshape(b * c, 1, h, w, 2)             # chans_to_batch_dim
        x = self.model(x)
        x = x.reshape(b, c, h, w, 2)                             # batch_chans_to_chan_dim
        xr, xi = x[..., 0], x[..., 1]
        or_, oi_ = rss_divide(xr, xi)                            # |.|^2-reduce + rsqrt
        return _join(or_, oi_)


class ImageBlockJ:
    def __init__(self, i_model, fft, dc_weight=0.01, dense=True, interconnections=True):
        self.i_model = i_model
        self.fft = fft
        self.dc_weight = float(dc_weight)
        self.dense = dense
        self.interconnections = interconnections

    def __call__(self, current_kspace, ref_kspace, mask_bhw, sens_maps, sens_conj,
                 concat, interconnections=None):
        cr, ci = sens_conj
        # fused: per-coil ifft2c + complex_mul(sens_conj) + coil-sum accumulation
        rr, ri = sens_reduce_fused(current_kspace[..., 0], current_kspace[..., 1],
                                   cr, ci, *self.fft.ifft_args())
        inp = _join(rr, ri)
        if concat is None or not self.dense:
            concat = inp
        else:
            concat = jnp.concatenate([inp, concat], axis=1)
        if self.interconnections:
            model_term, interconnections = self.i_model(concat, interconnections)
        else:
            model_term = self.i_model(concat)
        # fused: per-coil complex_mul(model_term, sens_maps) + fft2c + data consistency
        kr, ki = expand_dc_fused(model_term[..., 0], model_term[..., 1],
                                 sens_maps[..., 0], sens_maps[..., 1],
                                 ref_kspace[..., 0], ref_kspace[..., 1],
                                 mask_bhw, self.dc_weight, *self.fft.fft_args())
        kspace = _join(kr, ki)
        if self.interconnections:
            return kspace, concat, interconnections
        return kspace, concat


class DIRCNJ:
    def __init__(self, key, num_cascades=2, n=8, sense_n=8, h=16, w=16,
                 dense=True, interconnections=True):
        self.fft = CenteredFFT(h, w)
        self.interconnections = interconnections
        keys = jax.random.split(key, num_cascades + 1)
        self.sens_net = SensitivityModelJ(keys[0], sense_n, self.fft)
        self.i_cascades = [
            ImageBlockJ(NormNetJ(keys[i + 1], n, 2 * (i + 1) if dense else 2,
                                 interconnections=interconnections),
                        self.fft, dc_weight=0.01, dense=dense,
                        interconnections=interconnections)
            for i in range(num_cascades)
        ]

    @staticmethod
    def calculate_mask(masked_kspace):
        x = masked_kspace[..., 0] ** 2 + masked_kspace[..., 1] ** 2   # (B,C,H,W)
        x = jnp.sum(x, axis=1, keepdims=True)
        x = jnp.sum(x, axis=2, keepdims=True)[..., None]              # (B,1,1,W,1)
        return x != 0

    def forward(self, masked_kspace, pad=None, num_low_freqs=None):
        b, c, h, w, _ = masked_kspace.shape
        kspace_pred = masked_kspace
        mask = self.calculate_mask(masked_kspace)
        sens_maps = self.sens_net(masked_kspace, pad, num_low_freqs)
        sens_conj = (sens_maps[..., 0], -sens_maps[..., 1])            # complex conj
        mask_bhw = jnp.broadcast_to(
            mask[:, 0, 0, :, 0].astype(F32)[:, None, :], (b, h, w))
        i_concat = None
        interconnections = None
        for blk in self.i_cascades:
            if self.interconnections:
                kspace_pred, i_concat, interconnections = blk(
                    kspace_pred, masked_kspace, mask_bhw, sens_maps, sens_conj,
                    i_concat, interconnections)
            else:
                kspace_pred, i_concat = blk(
                    kspace_pred, masked_kspace, mask_bhw, sens_maps, sens_conj,
                    i_concat)
        # fused final stage: per-coil ifft2c + |.|^2 coil reduce + sqrt
        return ifft_rss_fused(kspace_pred[..., 0], kspace_pred[..., 1],
                              *self.fft.ifft_args())

    __call__ = forward


# ---------------------------------------------------------------------------
# Host-side mask-center search (torch.nonzero equivalent), hoisted out of jit
# ---------------------------------------------------------------------------

def compute_center_pad(masked_kspace_np):
    # TODO(synk): like the reference's mask.squeeze() logic, this assumes batch=1
    # and a mask with zero columns on both sides of the center.
    x = masked_kspace_np[..., 0] ** 2 + masked_kspace_np[..., 1] ** 2
    cols = x.sum(axis=(0, 1, 2)) != 0                        # (W,) sampled-column mask
    w = cols.shape[0]
    cent = w // 2
    left = int(np.nonzero(cols[:cent] == 0)[0][-1])
    right = int(np.nonzero(cols[cent:] == 0)[0][0]) + cent
    num_low_freqs = right - left
    pad = (w - num_low_freqs + 1) // 2
    return pad, num_low_freqs


# ---------------------------------------------------------------------------
# main
# ---------------------------------------------------------------------------

if __name__ == "__main__":
    key = jax.random.PRNGKey(0)
    # batch must be 1 to match the reference's mask.squeeze() center-search semantics
    B, C, H, W = 1, 4, 16, 16
    k_data, k_model = jax.random.split(key)

    kspace = jax.random.normal(k_data, (B, C, H, W, 2), dtype=F32)
    # undersampling pattern: fully-sampled center band plus a few outer columns
    sampled_cols = np.zeros(W, dtype=bool)
    sampled_cols[[1, 6, 7, 8, 9, 13]] = True
    col_mask = jnp.asarray(sampled_cols, F32)[None, None, None, :, None]
    masked_kspace = kspace * col_mask

    model = DIRCNJ(k_model, num_cascades=2, n=8, sense_n=8, h=H, w=W)

    # hoist the data-dependent center search so the full forward can be jitted
    pad, nlf = compute_center_pad(np.asarray(masked_kspace))
    fwd = jax.jit(functools.partial(model.forward, pad=pad, num_low_freqs=nlf))

    out = jax.block_until_ready(fwd(masked_kspace))

    assert out.shape == (B, 1, H, W), out.shape
    assert np.all(np.isfinite(np.asarray(out)))
    print("KERNEL_OK")
</pallas_src>

<mosaic_0001>
module attributes {stable_mosaic.version = 11 : i64} {
  func.func @_dft2_slice_kernel(%arg0: i32, %arg1: memref<16x16xf32, #tpu.memory_space<vmem>>, %arg2: memref<16x16xf32, #tpu.memory_space<vmem>>, %arg3: memref<16x16xf32, #tpu.memory_space<vmem>>, %arg4: memref<16x16xf32, #tpu.memory_space<vmem>>, %arg5: memref<1x16x16xf32, #tpu.memory_space<vmem>>, %arg6: memref<1x16x16xf32, #tpu.memory_space<vmem>>, %arg7: memref<1x16x16xf32, #tpu.memory_space<vmem>>, %arg8: memref<1x16x16xf32, #tpu.memory_space<vmem>>) attributes {dimension_semantics = [#tpu.dimension_semantics<parallel>], iteration_bounds = array<i64: 4>, scalar_prefetch = 0 : i64, scratch_operands = 0 : i64, tpu.core_type = #tpu.core_type<tc>, window_params = [{pipeline_mode = #tpu.pipeline_mode<synchronous>, transform_indices = @transform_0, window_bounds = array<i64: 16, 16>}, {pipeline_mode = #tpu.pipeline_mode<synchronous>, transform_indices = @transform_1, window_bounds = array<i64: 16, 16>}, {pipeline_mode = #tpu.pipeline_mode<synchronous>, transform_indices = @transform_2, window_bounds = array<i64: 16, 16>}, {pipeline_mode = #tpu.pipeline_mode<synchronous>, transform_indices = @transform_3, window_bounds = array<i64: 16, 16>}, {transform_indices = @transform_4, window_bounds = array<i64: 1, 16, 16>}, {transform_indices = @transform_5, window_bounds = array<i64: 1, 16, 16>}, {transform_indices = @transform_6, window_bounds = array<i64: 1, 16, 16>}, {transform_indices = @transform_7, window_bounds = array<i64: 1, 16, 16>}]} {
    %c0 = arith.constant 0 : index
    %c0_0 = arith.constant 0 : index
    %c0_1 = arith.constant 0 : index
    %0 = vector.load %arg5[%c0, %c0_0, %c0_1] : memref<1x16x16xf32, #tpu.memory_space<vmem>>, vector<1x16x16xf32>
    %1 = vector.shape_cast %0 : vector<1x16x16xf32> to vector<16x16xf32>
    %c0_2 = arith.constant 0 : index
    %c0_3 = arith.constant 0 : index
    %c0_4 = arith.constant 0 : index
    %2 = vector.load %arg6[%c0_2, %c0_3, %c0_4] : memref<1x16x16xf32, #tpu.memory_space<vmem>>, vector<1x16x16xf32>
    %3 = vector.shape_cast %2 : vector<1x16x16xf32> to vector<16x16xf32>
    %c0_5 = arith.constant 0 : index
    %c0_6 = arith.constant 0 : index
    %4 = vector.load %arg1[%c0_5, %c0_6] : memref<16x16xf32, #tpu.memory_space<vmem>>, vector<16x16xf32>
    %c0_7 = arith.constant 0 : index
    %c0_8 = arith.constant 0 : index
    %5 = vector.load %arg2[%c0_7, %c0_8] : memref<16x16xf32, #tpu.memory_space<vmem>>, vector<16x16xf32>
    %c0_9 = arith.constant 0 : index
    %c0_10 = arith.constant 0 : index
    %6 = vector.load %arg3[%c0_9, %c0_10] : memref<16x16xf32, #tpu.memory_space<vmem>>, vector<16x16xf32>
    %c0_11 = arith.constant 0 : index
    %c0_12 = arith.constant 0 : index
    %7 = vector.load %arg4[%c0_11, %c0_12] : memref<16x16xf32, #tpu.memory_space<vmem>>, vector<16x16xf32>
    %cst = arith.constant dense<0.000000e+00> : vector<16x16xf32>
    %8 = tpu.matmul %1, %6, %cst {dimension_numbers = #tpu.dot_dimension_numbers<[1], [0], [0], [1], [0, 0, 1, 1], [], []>} : vector<16x16xf32>, vector<16x16xf32>, vector<16x16xf32> -> vector<16x16xf32>
    %cst_13 = arith.constant dense<0.000000e+00> : vector<16x16xf32>
    %9 = tpu.matmul %3, %7, %cst_13 {dimension_numbers = #tpu.dot_dimension_numbers<[1], [0], [0], [1], [0, 0, 1, 1], [], []>} : vector<16x16xf32>, vector<16x16xf32>, vector<16x16xf32> -> vector<16x16xf32>
    %10 = arith.addf %1, %3 : vector<16x16xf32>
    %11 = arith.addf %6, %7 : vector<16x16xf32>
    %cst_14 = arith.constant dense<0.000000e+00> : vector<16x16xf32>
    %12 = tpu.matmul %10, %11, %cst_14 {dimension_numbers = #tpu.dot_dimension_numbers<[1], [0], [0], [1], [0, 0, 1, 1], [], []>} : vector<16x16xf32>, vector<16x16xf32>, vector<16x16xf32> -> vector<16x16xf32>
    %13 = arith.subf %8, %9 : vector<16x16xf32>
    %14 = arith.subf %12, %8 : vector<16x16xf32>
    %15 = arith.subf %14, %9 : vector<16x16xf32>
    %cst_15 = arith.constant dense<0.000000e+00> : vector<16x16xf32>
    %16 = tpu.matmul %4, %13, %cst_15 {dimension_numbers = #tpu.dot_dimension_numbers<[1], [0], [0], [1], [0, 0, 1, 1], [], []>} : vector<16x16xf32>, vector<16x16xf32>, vector<16x16xf32> -> vector<16x16xf32>
    %cst_16 = arith.constant dense<0.000000e+00> : vector<16x16xf32>
    %17 = tpu.matmul %5, %15, %cst_16 {dimension_numbers = #tpu.dot_dimension_numbers<[1], [0], [0], [1], [0, 0, 1, 1], [], []>} : vector<16x16xf32>, vector<16x16xf32>, vector<16x16xf32> -> vector<16x16xf32>
    %18 = arith.addf %4, %5 : vector<16x16xf32>
    %19 = arith.addf %13, %15 : vector<16x16xf32>
    %cst_17 = arith.constant dense<0.000000e+00> : vector<16x16xf32>
    %20 = tpu.matmul %18, %19, %cst_17 {dimension_numbers = #tpu.dot_dimension_numbers<[1], [0], [0], [1], [0, 0, 1, 1], [], []>} : vector<16x16xf32>, vector<16x16xf32>, vector<16x16xf32> -> vector<16x16xf32>
    %21 = arith.subf %16, %17 : vector<16x16xf32>
    %22 = arith.subf %20, %16 : vector<16x16xf32>
    %23 = arith.subf %22, %17 : vector<16x16xf32>
    %c0_18 = arith.constant 0 : index
    %c0_19 = arith.constant 0 : index
    %c0_20 = arith.constant 0 : index
    %24 = vector.load %arg7[%c0_18, %c0_19, %c0_20] : memref<1x16x16xf32, #tpu.memory_space<vmem>>, vector<1x16x16xf32>
    %25 = vector.shape_cast %24 : vector<1x16x16xf32> to vector<16x16xf32>
    %26 = vector.shape_cast %21 : vector<16x16xf32> to vector<1x16x16xf32>
    tpu.vector_store %arg7[%c0_18, %c0_19, %c0_20], %26 {strides = array<i32>} : memref<1x16x16xf32, #tpu.memory_space<vmem>>, vector<1x16x16xf32>,
    %c0_21 = arith.constant 0 : index
    %c0_22 = arith.constant 0 : index
    %c0_23 = arith.constant 0 : index
    %27 = vector.load %arg8[%c0_21, %c0_22, %c0_23] : memref<1x16x16xf32, #tpu.memory_space<vmem>>, vector<1x16x16xf32>
    %28 = vector.shape_cast %27 : vector<1x16x16xf32> to vector<16x16xf32>
    %29 = vector.shape_cast %23 : vector<16x16xf32> to vector<1x16x16xf32>
    tpu.vector_store %arg8[%c0_21, %c0_22, %c0_23], %29 {strides = array<i32>} : memref<1x16x16xf32, #tpu.memory_space<vmem>>, vector<1x16x16xf32>,
    return
  }
  func.func @transform_0(%arg0: i32) -> (i32, i32) {
    %c0_i32 = arith.constant 0 : i32
    %c0_i32_0 = arith.constant 0 : i32
    %c0_i32_1 = arith.constant 0 : i32
    return %c0_i32, %c0_i32_0 : i32, i32
  }
  func.func @transform_1(%arg0: i32) -> (i32, i32) {
    %c0_i32 = arith.constant 0 : i32
    %c0_i32_0 = arith.constant 0 : i32
    %c0_i32_1 = arith.constant 0 : i32
    return %c0_i32, %c0_i32_0 : i32, i32
  }
  func.func @transform_2(%arg0: i32) -> (i32, i32) {
    %c0_i32 = arith.constant 0 : i32
    %c0_i32_0 = arith.constant 0 : i32
    %c0_i32_1 = arith.constant 0 : i32
    return %c0_i32, %c0_i32_0 : i32, i32
  }
  func.func @transform_3(%arg0: i32) -> (i32, i32) {
    %c0_i32 = arith.constant 0 : i32
    %c0_i32_0 = arith.constant 0 : i32
    %c0_i32_1 = arith.constant 0 : i32
    return %c0_i32, %c0_i32_0 : i32, i32
  }
  func.func @transform_4(%arg0: i32) -> (i32, i32, i32) {
    %c0_i32 = arith.constant 0 : i32
    %c0_i32_0 = arith.constant 0 : i32
    %c0_i32_1 = arith.constant 0 : i32
    return %arg0, %c0_i32, %c0_i32_0 : i32, i32, i32
  }
  func.func @transform_5(%arg0: i32) -> (i32, i32, i32) {
    %c0_i32 = arith.constant 0 : i32
    %c0_i32_0 = arith.constant 0 : i32
    %c0_i32_1 = arith.constant 0 : i32
    return %arg0, %c0_i32, %c0_i32_0 : i32, i32, i32
  }
  func.func @transform_6(%arg0: i32) -> (i32, i32, i32) {
    %c0_i32 = arith.constant 0 : i32
    %c0_i32_0 = arith.constant 0 : i32
    %c0_i32_1 = arith.constant 0 : i32
    return %arg0, %c0_i32, %c0_i32_0 : i32, i32, i32
  }
  func.func @transform_7(%arg0: i32) -> (i32, i32, i32) {
    %c0_i32 = arith.constant 0 : i32
    %c0_i32_0 = arith.constant 0 : i32
    %c0_i32_1 = arith.constant 0 : i32
    return %arg0, %c0_i32, %c0_i32_0 : i32, i32, i32
  }
}

module attributes {stable_mosaic.version = 11 : i64} {
  func.func @_norm_kernel(%arg0: memref<8x256xf32, #tpu.memory_space<vmem>>, %arg1: memref<8x256xf32, #tpu.memory_space<vmem>>, %arg2: memref<8x1xf32, #tpu.memory_space<vmem>>, %arg3: memref<8x1xf32, #tpu.memory_space<vmem>>) attributes {dimension_semantics = [], scalar_prefetch = 0 : i64, scratch_operands = 0 : i64, tpu.core_type = #tpu.core_type<tc>} {
    %c0 = arith.constant 0 : index
    %c0_0 = arith.constant 0 : index
    %0 = vector.load %arg0[%c0, %c0_0] : memref<8x256xf32, #tpu.memory_space<vmem>>, vector<8x256xf32>
    %cst = arith.constant dense<0.000000e+00> : vector<8xf32>
    %1 = vector.multi_reduction <add>, %0, %cst [1] : vector<8x256xf32> to vector<8xf32>
    %2 = vector.shape_cast %1 : vector<8xf32> to vector<8x1xf32>
    %cst_1 = arith.constant 3.906250e-03 : f32
    %3 = vector.broadcast %cst_1 : f32 to vector<8x1xf32>
    %4 = arith.mulf %2, %3 : vector<8x1xf32>
    %5 = vector.broadcast %4 : vector<8x1xf32> to vector<8x256xf32>
    %6 = arith.subf %0, %5 : vector<8x256xf32>
    %7 = arith.mulf %6, %6 : vector<8x256xf32>
    %cst_2 = arith.constant dense<0.000000e+00> : vector<8xf32>
    %8 = vector.multi_reduction <add>, %7, %cst_2 [1] : vector<8x256xf32> to vector<8xf32>
    %9 = vector.shape_cast %8 : vector<8xf32> to vector<8x1xf32>
    %cst_3 = arith.constant 0.00392156886 : f32
    %10 = vector.broadcast %cst_3 : f32 to vector<8x1xf32>
    %11 = arith.mulf %9, %10 : vector<8x1xf32>
    %12 = math.rsqrt %11 : vector<8x1xf32>
    %13 = vector.broadcast %12 : vector<8x1xf32> to vector<8x256xf32>
    %14 = arith.mulf %6, %13 : vector<8x256xf32>
    %c0_4 = arith.constant 0 : index
    %c0_5 = arith.constant 0 : index
    %15 = vector.load %arg1[%c0_4, %c0_5] : memref<8x256xf32, #tpu.memory_space<vmem>>, vector<8x256xf32>
    tpu.vector_store %arg1[%c0_4, %c0_5], %14 {strides = array<i32>} : memref<8x256xf32, #tpu.memory_space<vmem>>, vector<8x256xf32>,
    %c0_6 = arith.constant 0 : index
    %c0_7 = arith.constant 0 : index
    %16 = vector.load %arg2[%c0_6, %c0_7] : memref<8x1xf32, #tpu.memory_space<vmem>>, vector<8x1xf32>
    tpu.vector_store %arg2[%c0_6, %c0_7], %4 {strides = array<i32>} : memref<8x1xf32, #tpu.memory_space<vmem>>, vector<8x1xf32>,
    %17 = math.sqrt %11 : vector<8x1xf32>
    %c0_8 = arith.constant 0 : index
    %c0_9 = arith.constant 0 : index
    %18 = vector.load %arg3[%c0_8, %c0_9] : memref<8x1xf32, #tpu.memory_space<vmem>>, vector<8x1xf32>
    tpu.vector_store %arg3[%c0_8, %c0_9], %17 {strides = array<i32>} : memref<8x1xf32, #tpu.memory_space<vmem>>, vector<8x1xf32>,
    return
  }
}

module attributes {stable_mosaic.version = 11 : i64} {
  func.func @_conv_mm_kernel(%arg0: i32, %arg1: i32, %arg2: memref<1x18x128xf32, #tpu.memory_space<vmem>>, %arg3: memref<8x18xf32, #tpu.memory_space<vmem>>, %arg4: memref<8x1xf32, #tpu.memory_space<vmem>>, %arg5: memref<1x8x128xf32, #tpu.memory_space<vmem>>) attributes {dimension_semantics = [#tpu.dimension_semantics<parallel>, #tpu.dimension_semantics<parallel>], iteration_bounds = array<i64: 4, 2>, scalar_prefetch = 0 : i64, scratch_operands = 0 : i64, tpu.core_type = #tpu.core_type<tc>, window_params = [{transform_indices = @transform_0, window_bounds = array<i64: 1, 18, 128>}, {pipeline_mode = #tpu.pipeline_mode<synchronous>, transform_indices = @transform_1, window_bounds = array<i64: 8, 18>}, {pipeline_mode = #tpu.pipeline_mode<synchronous>, transform_indices = @transform_2, window_bounds = array<i64: 8, 1>}, {transform_indices = @transform_3, window_bounds = array<i64: 1, 8, 128>}]} {
    %c0 = arith.constant 0 : index
    %c0_0 = arith.constant 0 : index
    %0 = vector.load %arg3[%c0, %c0_0] : memref<8x18xf32, #tpu.memory_space<vmem>>, vector<8x18xf32>
    %c0_1 = arith.constant 0 : index
    %c0_2 = arith.constant 0 : index
    %c0_3 = arith.constant 0 : index
    %1 = vector.load %arg2[%c0_1, %c0_2, %c0_3] : memref<1x18x128xf32, #tpu.memory_space<vmem>>, vector<1x18x128xf32>
    %2 = vector.shape_cast %1 : vector<1x18x128xf32> to vector<18x128xf32>
    %cst = arith.constant dense<0.000000e+00> : vector<8x128xf32>
    %3 = tpu.matmul %0, %2, %cst {dimension_numbers = #tpu.dot_dimension_numbers<[1], [0], [0], [1], [0, 0, 1, 1], [], []>} : vector<8x18xf32>, vector<18x128xf32>, vector<8x128xf32> -> vector<8x128xf32>
    %c0_4 = arith.constant 0 : index
    %c0_5 = arith.constant 0 : index
    %4 = vector.load %arg4[%c0_4, %c0_5] : memref<8x1xf32, #tpu.memory_space<vmem>>, vector<8x1xf32>
    %5 = vector.broadcast %4 : vector<8x1xf32> to vector<8x128xf32>
    %6 = arith.addf %3, %5 : vector<8x128xf32>
    %cst_6 = arith.constant 0.000000e+00 : f32
    %7 = vector.broadcast %cst_6 : f32 to vector<8x128xf32>
    %8 = arith.subf %7, %6 : vector<8x128xf32>
    %9 = math.exp %8 : vector<8x128xf32>
    %cst_7 = arith.constant 1.000000e+00 : f32
    %10 = vector.broadcast %cst_7 : f32 to vector<8x128xf32>
    %11 = arith.addf %10, %9 : vector<8x128xf32>
    %12 = tpu.reciprocal %11 {approx = true} : vector<8x128xf32> -> vector<8x128xf32>
    %13 = arith.mulf %6, %12 : vector<8x128xf32>
    %c0_8 = arith.constant 0 : index
    %c0_9 = arith.constant 0 : index
    %c0_10 = arith.constant 0 : index
    %14 = vector.load %arg5[%c0_8, %c0_9, %c0_10] : memref<1x8x128xf32, #tpu.memory_space<vmem>>, vector<1x8x128xf32>
    %15 = vector.shape_cast %14 : vector<1x8x128xf32> to vector<8x128xf32>
    %16 = vector.shape_cast %13 : vector<8x128xf32> to vector<1x8x128xf32>
    tpu.vector_store %arg5[%c0_8, %c0_9, %c0_10], %16 {strides = array<i32>} : memref<1x8x128xf32, #tpu.memory_space<vmem>>, vector<1x8x128xf32>,
    return
  }
  func.func @transform_0(%arg0: i32, %arg1: i32) -> (i32, i32, i32) {
    %c0_i32 = arith.constant 0 : i32
    %c0_i32_0 = arith.constant 0 : i32
    return %arg0, %c0_i32, %arg1 : i32, i32, i32
  }
  func.func @transform_1(%arg0: i32, %arg1: i32) -> (i32, i32) {
    %c0_i32 = arith.constant 0 : i32
    %c0_i32_0 = arith.constant 0 : i32
    %c0_i32_1 = arith.constant 0 : i32
    return %c0_i32, %c0_i32_0 : i32, i32
  }
  func.func @transform_2(%arg0: i32, %arg1: i32) -> (i32, i32) {
    %c0_i32 = arith.constant 0 : i32
    %c0_i32_0 = arith.constant 0 : i32
    %c0_i32_1 = arith.constant 0 : i32
    return %c0_i32, %c0_i32_0 : i32, i32
  }
  func.func @transform_3(%arg0: i32, %arg1: i32) -> (i32, i32, i32) {
    %c0_i32 = arith.constant 0 : i32
    %c0_i32_0 = arith.constant 0 : i32
    return %arg0, %c0_i32, %arg1 : i32, i32, i32
  }
}

module attributes {stable_mosaic.version = 11 : i64} {
  func.func @_conv_mm_kernel(%arg0: i32, %arg1: i32, %arg2: memref<1x72x128xf32, #tpu.memory_space<vmem>>, %arg3: memref<8x72xf32, #tpu.memory_space<vmem>>, %arg4: memref<8x1xf32, #tpu.memory_space<vmem>>, %arg5: memref<1x8x128xf32, #tpu.memory_space<vmem>>) attributes {dimension_semantics = [#tpu.dimension_semantics<parallel>, #tpu.dimension_semantics<parallel>], iteration_bounds = array<i64: 4, 2>, scalar_prefetch = 0 : i64, scratch_operands = 0 : i64, tpu.core_type = #tpu.core_type<tc>, window_params = [{transform_indices = @transform_0, window_bounds = array<i64: 1, 72, 128>}, {pipeline_mode = #tpu.pipeline_mode<synchronous>, transform_indices = @transform_1, window_bounds = array<i64: 8, 72>}, {pipeline_mode = #tpu.pipeline_mode<synchronous>, transform_indices = @transform_2, window_bounds = array<i64: 8, 1>}, {transform_indices = @transform_3, window_bounds = array<i64: 1, 8, 128>}]} {
    %c0 = arith.constant 0 : index
    %c0_0 = arith.constant 0 : index
    %0 = vector.load %arg3[%c0, %c0_0] : memref<8x72xf32, #tpu.memory_space<vmem>>, vector<8x72xf32>
    %c0_1 = arith.constant 0 : index
    %c0_2 = arith.constant 0 : index
    %c0_3 = arith.constant 0 : index
    %1 = vector.load %arg2[%c0_1, %c0_2, %c0_3] : memref<1x72x128xf32, #tpu.memory_space<vmem>>, vector<1x72x128xf32>
    %2 = vector.shape_cast %1 : vector<1x72x128xf32> to vector<72x128xf32>
    %cst = arith.constant dense<0.000000e+00> : vector<8x128xf32>
    %3 = tpu.matmul %0, %2, %cst {dimension_numbers = #tpu.dot_dimension_numbers<[1], [0], [0], [1], [0, 0, 1, 1], [], []>} : vector<8x72xf32>, vector<72x128xf32>, vector<8x128xf32> -> vector<8x128xf32>
    %c0_4 = arith.constant 0 : index
    %c0_5 = arith.constant 0 : index
    %4 = vector.load %arg4[%c0_4, %c0_5] : memref<8x1xf32, #tpu.memory_space<vmem>>, vector<8x1xf32>
    %5 = vector.broadcast %4 : vector<8x1xf32> to vector<8x128xf32>
    %6 = arith.addf %3, %5 : vector<8x128xf32>
    %cst_6 = arith.constant 0.000000e+00 : f32
    %7 = vector.broadcast %cst_6 : f32 to vector<8x128xf32>
    %8 = arith.subf %7, %6 : vector<8x128xf32>
    %9 = math.exp %8 : vector<8x128xf32>
    %cst_7 = arith.constant 1.000000e+00 : f32
    %10 = vector.broadcast %cst_7 : f32 to vector<8x128xf32>
    %11 = arith.addf %10, %9 : vector<8x128xf32>
    %12 = tpu.reciprocal %11 {approx = true} : vector<8x128xf32> -> vector<8x128xf32>
    %13 = arith.mulf %6, %12 : vector<8x128xf32>
    %c0_8 = arith.constant 0 : index
    %c0_9 = arith.constant 0 : index
    %c0_10 = arith.constant 0 : index
    %14 = vector.load %arg5[%c0_8, %c0_9, %c0_10] : memref<1x8x128xf32, #tpu.memory_space<vmem>>, vector<1x8x128xf32>
    %15 = vector.shape_cast %14 : vector<1x8x128xf32> to vector<8x128xf32>
    %16 = vector.shape_cast %13 : vector<8x128xf32> to vector<1x8x128xf32>
    tpu.vector_store %arg5[%c0_8, %c0_9, %c0_10], %16 {strides = array<i32>} : memref<1x8x128xf32, #tpu.memory_space<vmem>>, vector<1x8x128xf32>,
    return
  }
  func.func @transform_0(%arg0: i32, %arg1: i32) -> (i32, i32, i32) {
    %c0_i32 = arith.constant 0 : i32
    %c0_i32_0 = arith.constant 0 : i32
    return %arg0, %c0_i32, %arg1 : i32, i32, i32
  }
  func.func @transform_1(%arg0: i32, %arg1: i32) -> (i32, i32) {
    %c0_i32 = arith.constant 0 : i32
    %c0_i32_0 = arith.constant 0 : i32
    %c0_i32_1 = arith.constant 0 : i32
    return %c0_i32, %c0_i32_0 : i32, i32
  }
  func.func @transform_2(%arg0: i32, %arg1: i32) -> (i32, i32) {
    %c0_i32 = arith.constant 0 : i32
    %c0_i32_0 = arith.constant 0 : i32
    %c0_i32_1 = arith.constant 0 : i32
    return %c0_i32, %c0_i32_0 : i32, i32
  }
  func.func @transform_3(%arg0: i32, %arg1: i32) -> (i32, i32, i32) {
    %c0_i32 = arith.constant 0 : i32
    %c0_i32_0 = arith.constant 0 : i32
    return %arg0, %c0_i32, %arg1 : i32, i32, i32
  }
}

module attributes {stable_mosaic.version = 11 : i64} {
  func.func @_rss_div_kernel(%arg0: i32, %arg1: memref<1x4x16x16xf32, #tpu.memory_space<vmem>>, %arg2: memref<1x4x16x16xf32, #tpu.memory_space<vmem>>, %arg3: memref<1x4x16x16xf32, #tpu.memory_space<vmem>>, %arg4: memref<1x4x16x16xf32, #tpu.memory_space<vmem>>) attributes {dimension_semantics = [#tpu.dimension_semantics<parallel>], iteration_bounds = array<i64: 1>, scalar_prefetch = 0 : i64, scratch_operands = 0 : i64, tpu.core_type = #tpu.core_type<tc>, window_params = [{transform_indices = @transform_0, window_bounds = array<i64: 1, 4, 16, 16>}, {transform_indices = @transform_1, window_bounds = array<i64: 1, 4, 16, 16>}, {transform_indices = @transform_2, window_bounds = array<i64: 1, 4, 16, 16>}, {transform_indices = @transform_3, window_bounds = array<i64: 1, 4, 16, 16>}]} {
    %c0 = arith.constant 0 : index
    %c0_0 = arith.constant 0 : index
    %c0_1 = arith.constant 0 : index
    %c0_2 = arith.constant 0 : index
    %0 = vector.load %arg1[%c0, %c0_0, %c0_1, %c0_2] : memref<1x4x16x16xf32, #tpu.memory_space<vmem>>, vector<1x4x16x16xf32>
    %1 = vector.shape_cast %0 : vector<1x4x16x16xf32> to vector<4x16x16xf32>
    %c0_3 = arith.constant 0 : index
    %c0_4 = arith.constant 0 : index
    %c0_5 = arith.constant 0 : index
    %c0_6 = arith.constant 0 : index
    %2 = vector.load %arg2[%c0_3, %c0_4, %c0_5, %c0_6] : memref<1x4x16x16xf32, #tpu.memory_space<vmem>>, vector<1x4x16x16xf32>
    %3 = vector.shape_cast %2 : vector<1x4x16x16xf32> to vector<4x16x16xf32>
    %4 = arith.mulf %1, %1 : vector<4x16x16xf32>
    %5 = arith.mulf %3, %3 : vector<4x16x16xf32>
    %6 = arith.addf %4, %5 : vector<4x16x16xf32>
    %cst = arith.constant dense<0.000000e+00> : vector<16x16xf32>
    %7 = vector.multi_reduction <add>, %6, %cst [0] : vector<4x16x16xf32> to vector<16x16xf32>
    %8 = vector.shape_cast %7 : vector<16x16xf32> to vector<1x16x16xf32>
    %9 = math.rsqrt %8 : vector<1x16x16xf32>
    %10 = vector.broadcast %9 : vector<1x16x16xf32> to vector<4x16x16xf32>
    %11 = arith.mulf %1, %10 : vector<4x16x16xf32>
    %c0_7 = arith.constant 0 : index
    %c0_8 = arith.constant 0 : index
    %c0_9 = arith.constant 0 : index
    %c0_10 = arith.constant 0 : index
    %12 = vector.load %arg3[%c0_7, %c0_8, %c0_9, %c0_10] : memref<1x4x16x16xf32, #tpu.memory_space<vmem>>, vector<1x4x16x16xf32>
    %13 = vector.shape_cast %12 : vector<1x4x16x16xf32> to vector<4x16x16xf32>
    %14 = vector.shape_cast %11 : vector<4x16x16xf32> to vector<1x4x16x16xf32>
    tpu.vector_store %arg3[%c0_7, %c0_8, %c0_9, %c0_10], %14 {strides = array<i32>} : memref<1x4x16x16xf32, #tpu.memory_space<vmem>>, vector<1x4x16x16xf32>,
    %15 = vector.broadcast %9 : vector<1x16x16xf32> to vector<4x16x16xf32>
    %16 = arith.mulf %3, %15 : vector<4x16x16xf32>
    %c0_11 = arith.constant 0 : index
    %c0_12 = arith.constant 0 : index
    %c0_13 = arith.constant 0 : index
    %c0_14 = arith.constant 0 : index
    %17 = vector.load %arg4[%c0_11, %c0_12, %c0_13, %c0_14] : memref<1x4x16x16xf32, #tpu.memory_space<vmem>>, vector<1x4x16x16xf32>
    %18 = vector.shape_cast %17 : vector<1x4x16x16xf32> to vector<4x16x16xf32>
    %19 = vector.shape_cast %16 : vector<4x16x16xf32> to vector<1x4x16x16xf32>
    tpu.vector_store %arg4[%c0_11, %c0_12, %c0_13, %c0_14], %19 {strides = array<i32>} : memref<1x4x16x16xf32, #tpu.memory_space<vmem>>, vector<1x4x16x16xf32>,
    return
  }
  func.func @transform_0(%arg0: i32) -> (i32, i32, i32, i32) {
    %c0_i32 = arith.constant 0 : i32
    %c0_i32_0 = arith.constant 0 : i32
    %c0_i32_1 = arith.constant 0 : i32
    %c0_i32_2 = arith.constant 0 : i32
    return %arg0, %c0_i32, %c0_i32_0, %c0_i32_1 : i32, i32, i32, i32
  }
  func.func @transform_1(%arg0: i32) -> (i32, i32, i32, i32) {
    %c0_i32 = arith.constant 0 : i32
    %c0_i32_0 = arith.constant 0 : i32
    %c0_i32_1 = arith.constant 0 : i32
    %c0_i32_2 = arith.constant 0 : i32
    return %arg0, %c0_i32, %c0_i32_0, %c0_i32_1 : i32, i32, i32, i32
  }
  func.func @transform_2(%arg0: i32) -> (i32, i32, i32, i32) {
    %c0_i32 = arith.constant 0 : i32
    %c0_i32_0 = arith.constant 0 : i32
    %c0_i32_1 = arith.constant 0 : i32
    %c0_i32_2 = arith.constant 0 : i32
    return %arg0, %c0_i32, %c0_i32_0, %c0_i32_1 : i32, i32, i32, i32
  }
  func.func @transform_3(%arg0: i32) -> (i32, i32, i32, i32) {
    %c0_i32 = arith.constant 0 : i32
    %c0_i32_0 = arith.constant 0 : i32
    %c0_i32_1 = arith.constant 0 : i32
    %c0_i32_2 = arith.constant 0 : i32
    return %arg0, %c0_i32, %c0_i32_0, %c0_i32_1 : i32, i32, i32, i32
  }
}

module attributes {stable_mosaic.version = 11 : i64} {
  func.func @_conv_mm_kernel(%arg0: i32, %arg1: i32, %arg2: memref<1x72x128xf32, #tpu.memory_space<vmem>>, %arg3: memref<8x72xf32, #tpu.memory_space<vmem>>, %arg4: memref<8x1xf32, #tpu.memory_space<vmem>>, %arg5: memref<1x8x128xf32, #tpu.memory_space<vmem>>) attributes {dimension_semantics = [#tpu.dimension_semantics<parallel>, #tpu.dimension_semantics<parallel>], iteration_bounds = array<i64: 4, 2>, scalar_prefetch = 0 : i64, scratch_operands = 0 : i64, tpu.core_type = #tpu.core_type<tc>, window_params = [{transform_indices = @transform_0, window_bounds = array<i64: 1, 72, 128>}, {pipeline_mode = #tpu.pipeline_mode<synchronous>, transform_indices = @transform_1, window_bounds = array<i64: 8, 72>}, {pipeline_mode = #tpu.pipeline_mode<synchronous>, transform_indices = @transform_2, window_bounds = array<i64: 8, 1>}, {transform_indices = @transform_3, window_bounds = array<i64: 1, 8, 128>}]} {
    %c0 = arith.constant 0 : index
    %c0_0 = arith.constant 0 : index
    %0 = vector.load %arg3[%c0, %c0_0] : memref<8x72xf32, #tpu.memory_space<vmem>>, vector<8x72xf32>
    %c0_1 = arith.constant 0 : index
    %c0_2 = arith.constant 0 : index
    %c0_3 = arith.constant 0 : index
    %1 = vector.load %arg2[%c0_1, %c0_2, %c0_3] : memref<1x72x128xf32, #tpu.memory_space<vmem>>, vector<1x72x128xf32>
    %2 = vector.shape_cast %1 : vector<1x72x128xf32> to vector<72x128xf32>
    %cst = arith.constant dense<0.000000e+00> : vector<8x128xf32>
    %3 = tpu.matmul %0, %2, %cst {dimension_numbers = #tpu.dot_dimension_numbers<[1], [0], [0], [1], [0, 0, 1, 1], [], []>} : vector<8x72xf32>, vector<72x128xf32>, vector<8x128xf32> -> vector<8x128xf32>
    %c0_4 = arith.constant 0 : index
    %c0_5 = arith.constant 0 : index
    %4 = vector.load %arg4[%c0_4, %c0_5] : memref<8x1xf32, #tpu.memory_space<vmem>>, vector<8x1xf32>
    %5 = vector.broadcast %4 : vector<8x1xf32> to vector<8x128xf32>
    %6 = arith.addf %3, %5 : vector<8x128xf32>
    %c0_6 = arith.constant 0 : index
    %c0_7 = arith.constant 0 : index
    %c0_8 = arith.constant 0 : index
    %7 = vector.load %arg5[%c0_6, %c0_7, %c0_8] : memref<1x8x128xf32, #tpu.memory_space<vmem>>, vector<1x8x128xf32>
    %8 = vector.shape_cast %7 : vector<1x8x128xf32> to vector<8x128xf32>
    %9 = vector.shape_cast %6 : vector<8x128xf32> to vector<1x8x128xf32>
    tpu.vector_store %arg5[%c0_6, %c0_7, %c0_8], %9 {strides = array<i32>} : memref<1x8x128xf32, #tpu.memory_space<vmem>>, vector<1x8x128xf32>,
    return
  }
  func.func @transform_0(%arg0: i32, %arg1: i32) -> (i32, i32, i32) {
    %c0_i32 = arith.constant 0 : i32
    %c0_i32_0 = arith.constant 0 : i32
    return %arg0, %c0_i32, %arg1 : i32, i32, i32
  }
  func.func @transform_1(%arg0: i32, %arg1: i32) -> (i32, i32) {
    %c0_i32 = arith.constant 0 : i32
    %c0_i32_0 = arith.constant 0 : i32
    %c0_i32_1 = arith.constant 0 : i32
    return %c0_i32, %c0_i32_0 : i32, i32
  }
  func.func @transform_2(%arg0: i32, %arg1: i32) -> (i32, i32) {
    %c0_i32 = arith.constant 0 : i32
    %c0_i32_0 = arith.constant 0 : i32
    %c0_i32_1 = arith.constant 0 : i32
    return %c0_i32, %c0_i32_0 : i32, i32
  }
  func.func @transform_3(%arg0: i32, %arg1: i32) -> (i32, i32, i32) {
    %c0_i32 = arith.constant 0 : i32
    %c0_i32_0 = arith.constant 0 : i32
    return %arg0, %c0_i32, %arg1 : i32, i32, i32
  }
}

module attributes {stable_mosaic.version = 11 : i64} {
  func.func @_sens_reduce_kernel(%arg0: i32, %arg1: i32, %arg2: memref<16x16xf32, #tpu.memory_space<vmem>>, %arg3: memref<16x16xf32, #tpu.memory_space<vmem>>, %arg4: memref<16x16xf32, #tpu.memory_space<vmem>>, %arg5: memref<16x16xf32, #tpu.memory_space<vmem>>, %arg6: memref<1x1x16x16xf32, #tpu.memory_space<vmem>>, %arg7: memref<1x1x16x16xf32, #tpu.memory_space<vmem>>, %arg8: memref<1x1x16x16xf32, #tpu.memory_space<vmem>>, %arg9: memref<1x1x16x16xf32, #tpu.memory_space<vmem>>, %arg10: memref<1x1x16x16xf32, #tpu.memory_space<vmem>>, %arg11: memref<1x1x16x16xf32, #tpu.memory_space<vmem>>) attributes {dimension_semantics = [#tpu.dimension_semantics<parallel>, #tpu.dimension_semantics<arbitrary>], iteration_bounds = array<i64: 1, 4>, scalar_prefetch = 0 : i64, scratch_operands = 0 : i64, tpu.core_type = #tpu.core_type<tc>, window_params = [{pipeline_mode = #tpu.pipeline_mode<synchronous>, transform_indices = @transform_0, window_bounds = array<i64: 16, 16>}, {pipeline_mode = #tpu.pipeline_mode<synchronous>, transform_indices = @transform_1, window_bounds = array<i64: 16, 16>}, {pipeline_mode = #tpu.pipeline_mode<synchronous>, transform_indices = @transform_2, window_bounds = array<i64: 16, 16>}, {pipeline_mode = #tpu.pipeline_mode<synchronous>, transform_indices = @transform_3, window_bounds = array<i64: 16, 16>}, {transform_indices = @transform_4, window_bounds = array<i64: 1, 1, 16, 16>}, {transform_indices = @transform_5, window_bounds = array<i64: 1, 1, 16, 16>}, {transform_indices = @transform_6, window_bounds = array<i64: 1, 1, 16, 16>}, {transform_indices = @transform_7, window_bounds = array<i64: 1, 1, 16, 16>}, {transform_indices = @transform_8, window_bounds = array<i64: 1, 1, 16, 16>}, {transform_indices = @transform_9, window_bounds = array<i64: 1, 1, 16, 16>}]} {
    %c0 = arith.constant 0 : index
    %c0_0 = arith.constant 0 : index
    %c0_1 = arith.constant 0 : index
    %c0_2 = arith.constant 0 : index
    %0 = vector.load %arg6[%c0, %c0_0, %c0_1, %c0_2] : memref<1x1x16x16xf32, #tpu.memory_space<vmem>>, vector<1x1x16x16xf32>
    %1 = vector.shape_cast %0 : vector<1x1x16x16xf32> to vector<16x16xf32>
    %c0_3 = arith.constant 0 : index
    %c0_4 = arith.constant 0 : index
    %c0_5 = arith.constant 0 : index
    %c0_6 = arith.constant 0 : index
    %2 = vector.load %arg7[%c0_3, %c0_4, %c0_5, %c0_6] : memref<1x1x16x16xf32, #tpu.memory_space<vmem>>, vector<1x1x16x16xf32>
    %3 = vector.shape_cast %2 : vector<1x1x16x16xf32> to vector<16x16xf32>
    %c0_7 = arith.constant 0 : index
    %c0_8 = arith.constant 0 : index
    %4 = vector.load %arg2[%c0_7, %c0_8] : memref<16x16xf32, #tpu.memory_space<vmem>>, vector<16x16xf32>
    %c0_9 = arith.constant 0 : index
    %c0_10 = arith.constant 0 : index
    %5 = vector.load %arg3[%c0_9, %c0_10] : memref<16x16xf32, #tpu.memory_space<vmem>>, vector<16x16xf32>
    %c0_11 = arith.constant 0 : index
    %c0_12 = arith.constant 0 : index
    %6 = vector.load %arg4[%c0_11, %c0_12] : memref<16x16xf32, #tpu.memory_space<vmem>>, vector<16x16xf32>
    %c0_13 = arith.constant 0 : index
    %c0_14 = arith.constant 0 : index
    %7 = vector.load %arg5[%c0_13, %c0_14] : memref<16x16xf32, #tpu.memory_space<vmem>>, vector<16x16xf32>
    %cst = arith.constant dense<0.000000e+00> : vector<16x16xf32>
    %8 = tpu.matmul %1, %6, %cst {dimension_numbers = #tpu.dot_dimension_numbers<[1], [0], [0], [1], [0, 0, 1, 1], [], []>} : vector<16x16xf32>, vector<16x16xf32>, vector<16x16xf32> -> vector<16x16xf32>
    %cst_15 = arith.constant dense<0.000000e+00> : vector<16x16xf32>
    %9 = tpu.matmul %3, %7, %cst_15 {dimension_numbers = #tpu.dot_dimension_numbers<[1], [0], [0], [1], [0, 0, 1, 1], [], []>} : vector<16x16xf32>, vector<16x16xf32>, vector<16x16xf32> -> vector<16x16xf32>
    %10 = arith.addf %1, %3 : vector<16x16xf32>
    %11 = arith.addf %6, %7 : vector<16x16xf32>
    %cst_16 = arith.constant dense<0.000000e+00> : vector<16x16xf32>
    %12 = tpu.matmul %10, %11, %cst_16 {dimension_numbers = #tpu.dot_dimension_numbers<[1], [0], [0], [1], [0, 0, 1, 1], [], []>} : vector<16x16xf32>, vector<16x16xf32>, vector<16x16xf32> -> vector<16x16xf32>
    %13 = arith.subf %8, %9 : vector<16x16xf32>
    %14 = arith.subf %12, %8 : vector<16x16xf32>
    %15 = arith.subf %14, %9 : vector<16x16xf32>
    %cst_17 = arith.constant dense<0.000000e+00> : vector<16x16xf32>
    %16 = tpu.matmul %4, %13, %cst_17 {dimension_numbers = #tpu.dot_dimension_numbers<[1], [0], [0], [1], [0, 0, 1, 1], [], []>} : vector<16x16xf32>, vector<16x16xf32>, vector<16x16xf32> -> vector<16x16xf32>
    %cst_18 = arith.constant dense<0.000000e+00> : vector<16x16xf32>
    %17 = tpu.matmul %5, %15, %cst_18 {dimension_numbers = #tpu.dot_dimension_numbers<[1], [0], [0], [1], [0, 0, 1, 1], [], []>} : vector<16x16xf32>, vector<16x16xf32>, vector<16x16xf32> -> vector<16x16xf32>
    %18 = arith.addf %4, %5 : vector<16x16xf32>
    %19 = arith.addf %13, %15 : vector<16x16xf32>
    %cst_19 = arith.constant dense<0.000000e+00> : vector<16x16xf32>
    %20 = tpu.matmul %18, %19, %cst_19 {dimension_numbers = #tpu.dot_dimension_numbers<[1], [0], [0], [1], [0, 0, 1, 1], [], []>} : vector<16x16xf32>, vector<16x16xf32>, vector<16x16xf32> -> vector<16x16xf32>
    %21 = arith.subf %16, %17 : vector<16x16xf32>
    %22 = arith.subf %20, %16 : vector<16x16xf32>
    %23 = arith.subf %22, %17 : vector<16x16xf32>
    %c0_20 = arith.constant 0 : index
    %c0_21 = arith.constant 0 : index
    %c0_22 = arith.constant 0 : index
    %c0_23 = arith.constant 0 : index
    %24 = vector.load %arg8[%c0_20, %c0_21, %c0_22, %c0_23] : memref<1x1x16x16xf32, #tpu.memory_space<vmem>>, vector<1x1x16x16xf32>
    %25 = vector.shape_cast %24 : vector<1x1x16x16xf32> to vector<16x16xf32>
    %c0_24 = arith.constant 0 : index
    %c0_25 = arith.constant 0 : index
    %c0_26 = arith.constant 0 : index
    %c0_27 = arith.constant 0 : index
    %26 = vector.load %arg9[%c0_24, %c0_25, %c0_26, %c0_27] : memref<1x1x16x16xf32, #tpu.memory_space<vmem>>, vector<1x1x16x16xf32>
    %27 = vector.shape_cast %26 : vector<1x1x16x16xf32> to vector<16x16xf32>
    %28 = arith.mulf %21, %25 : vector<16x16xf32>
    %29 = arith.mulf %23, %27 : vector<16x16xf32>
    %30 = arith.subf %28, %29 : vector<16x16xf32>
    %31 = arith.mulf %21, %27 : vector<16x16xf32>
    %32 = arith.mulf %23, %25 : vector<16x16xf32>
    %33 = arith.addf %31, %32 : vector<16x16xf32>
    %c0_i32 = arith.constant 0 : i32
    %34 = arith.cmpi eq, %arg1, %c0_i32 : i32
    %35 = arith.extui %34 : i1 to i32
    %c0_i32_28 = arith.constant 0 : i32
    %36 = arith.cmpi ne, %35, %c0_i32_28 : i32
    scf.if %36 {
      %c0_31 = arith.constant 0 : index
      %c0_32 = arith.constant 0 : index
      %c0_33 = arith.constant 0 : index
      %c0_34 = arith.constant 0 : index
      %40 = vector.load %arg10[%c0_31, %c0_32, %c0_33, %c0_34] : memref<1x1x16x16xf32, #tpu.memory_space<vmem>>, vector<1x1x16x16xf32>
      %41 = vector.shape_cast %40 : vector<1x1x16x16xf32> to vector<16x16xf32>
      %42 = vector.shape_cast %30 : vector<16x16xf32> to vector<1x1x16x16xf32>
      tpu.vector_store %arg10[%c0_31, %c0_32, %c0_33, %c0_34], %42 {strides = array<i32>} : memref<1x1x16x16xf32, #tpu.memory_space<vmem>>, vector<1x1x16x16xf32>,
      %c0_35 = arith.constant 0 : index
      %c0_36 = arith.constant 0 : index
      %c0_37 = arith.constant 0 : index
      %c0_38 = arith.constant 0 : index
      %43 = vector.load %arg11[%c0_35, %c0_36, %c0_37, %c0_38] : memref<1x1x16x16xf32, #tpu.memory_space<vmem>>, vector<1x1x16x16xf32>
      %44 = vector.shape_cast %43 : vector<1x1x16x16xf32> to vector<16x16xf32>
      %45 = vector.shape_cast %33 : vector<16x16xf32> to vector<1x1x16x16xf32>
      tpu.vector_store %arg11[%c0_35, %c0_36, %c0_37, %c0_38], %45 {strides = array<i32>} : memref<1x1x16x16xf32, #tpu.memory_space<vmem>>, vector<1x1x16x16xf32>,
    } else {
    }
    %c0_i32_29 = arith.constant 0 : i32
    %37 = arith.cmpi sgt, %arg1, %c0_i32_29 : i32
    %38 = arith.extui %37 : i1 to i32
    %c0_i32_30 = arith.constant 0 : i32
    %39 = arith.cmpi ne, %38, %c0_i32_30 : i32
    scf.if %39 {
      %c0_31 = arith.constant 0 : index
      %c0_32 = arith.constant 0 : index
      %c0_33 = arith.constant 0 : index
      %c0_34 = arith.constant 0 : index
      %40 = vector.load %arg10[%c0_31, %c0_32, %c0_33, %c0_34] : memref<1x1x16x16xf32, #tpu.memory_space<vmem>>, vector<1x1x16x16xf32>
      %41 = vector.shape_cast %40 : vector<1x1x16x16xf32> to vector<16x16xf32>
      %42 = arith.addf %41, %30 : vector<16x16xf32>
      %c0_35 = arith.constant 0 : index
      %c0_36 = arith.constant 0 : index
      %c0_37 = arith.constant 0 : index
      %c0_38 = arith.constant 0 : index
      %43 = vector.load %arg10[%c0_35, %c0_36, %c0_37, %c0_38] : memref<1x1x16x16xf32, #tpu.memory_space<vmem>>, vector<1x1x16x16xf32>
      %44 = vector.shape_cast %43 : vector<1x1x16x16xf32> to vector<16x16xf32>
      %45 = vector.shape_cast %42 : vector<16x16xf32> to vector<1x1x16x16xf32>
      tpu.vector_store %arg10[%c0_35, %c0_36, %c0_37, %c0_38], %45 {strides = array<i32>} : memref<1x1x16x16xf32, #tpu.memory_space<vmem>>, vector<1x1x16x16xf32>,
      %c0_39 = arith.constant 0 : index
      %c0_40 = arith.constant 0 : index
      %c0_41 = arith.constant 0 : index
      %c0_42 = arith.constant 0 : index
      %46 = vector.load %arg11[%c0_39, %c0_40, %c0_41, %c0_42] : memref<1x1x16x16xf32, #tpu.memory_space<vmem>>, vector<1x1x16x16xf32>
      %47 = vector.shape_cast %46 : vector<1x1x16x16xf32> to vector<16x16xf32>
      %48 = arith.addf %47, %33 : vector<16x16xf32>
      %c0_43 = arith.constant 0 : index
      %c0_44 = arith.constant 0 : index
      %c0_45 = arith.constant 0 : index
      %c0_46 = arith.constant 0 : index
      %49 = vector.load %arg11[%c0_43, %c0_44, %c0_45, %c0_46] : memref<1x1x16x16xf32, #tpu.memory_space<vmem>>, vector<1x1x16x16xf32>
      %50 = vector.shape_cast %49 : vector<1x1x16x16xf32> to vector<16x16xf32>
      %51 = vector.shape_cast %48 : vector<16x16xf32> to vector<1x1x16x16xf32>
      tpu.vector_store %arg11[%c0_43, %c0_44, %c0_45, %c0_46], %51 {strides = array<i32>} : memref<1x1x16x16xf32, #tpu.memory_space<vmem>>, vector<1x1x16x16xf32>,
    } else {
    }
    return
  }
  func.func @transform_0(%arg0: i32, %arg1: i32) -> (i32, i32) {
    %c0_i32 = arith.constant 0 : i32
    %c0_i32_0 = arith.constant 0 : i32
    %c0_i32_1 = arith.constant 0 : i32
    return %c0_i32, %c0_i32_0 : i32, i32
  }
  func.func @transform_1(%arg0: i32, %arg1: i32) -> (i32, i32) {
    %c0_i32 = arith.constant 0 : i32
    %c0_i32_0 = arith.constant 0 : i32
    %c0_i32_1 = arith.constant 0 : i32
    return %c0_i32, %c0_i32_0 : i32, i32
  }
  func.func @transform_2(%arg0: i32, %arg1: i32) -> (i32, i32) {
    %c0_i32 = arith.constant 0 : i32
    %c0_i32_0 = arith.constant 0 : i32
    %c0_i32_1 = arith.constant 0 : i32
    return %c0_i32, %c0_i32_0 : i32, i32
  }
  func.func @transform_3(%arg0: i32, %arg1: i32) -> (i32, i32) {
    %c0_i32 = arith.constant 0 : i32
    %c0_i32_0 = arith.constant 0 : i32
    %c0_i32_1 = arith.constant 0 : i32
    return %c0_i32, %c0_i32_0 : i32, i32
  }
  func.func @transform_4(%arg0: i32, %arg1: i32) -> (i32, i32, i32, i32) {
    %c0_i32 = arith.constant 0 : i32
    %c0_i32_0 = arith.constant 0 : i32
    %c0_i32_1 = arith.constant 0 : i32
    return %arg0, %arg1, %c0_i32, %c0_i32_0 : i32, i32, i32, i32
  }
  func.func @transform_5(%arg0: i32, %arg1: i32) -> (i32, i32, i32, i32) {
    %c0_i32 = arith.constant 0 : i32
    %c0_i32_0 = arith.constant 0 : i32
    %c0_i32_1 = arith.constant 0 : i32
    return %arg0, %arg1, %c0_i32, %c0_i32_0 : i32, i32, i32, i32
  }
  func.func @transform_6(%arg0: i32, %arg1: i32) -> (i32, i32, i32, i32) {
    %c0_i32 = arith.constant 0 : i32
    %c0_i32_0 = arith.constant 0 : i32
    %c0_i32_1 = arith.constant 0 : i32
    return %arg0, %arg1, %c0_i32, %c0_i32_0 : i32, i32, i32, i32
  }
  func.func @transform_7(%arg0: i32, %arg1: i32) -> (i32, i32, i32, i32) {
    %c0_i32 = arith.constant 0 : i32
    %c0_i32_0 = arith.constant 0 : i32
    %c0_i32_1 = arith.constant 0 : i32
    return %arg0, %arg1, %c0_i32, %c0_i32_0 : i32, i32, i32, i32
  }
  func.func @transform_8(%arg0: i32, %arg1: i32) -> (i32, i32, i32, i32) {
    %c0_i32 = arith.constant 0 : i32
    %c0_i32_0 = arith.constant 0 : i32
    %c0_i32_1 = arith.constant 0 : i32
    %c0_i32_2 = arith.constant 0 : i32
    return %arg0, %c0_i32, %c0_i32_0, %c0_i32_1 : i32, i32, i32, i32
  }
  func.func @transform_9(%arg0: i32, %arg1: i32) -> (i32, i32, i32, i32) {
    %c0_i32 = arith.constant 0 : i32
    %c0_i32_0 = arith.constant 0 : i32
    %c0_i32_1 = arith.constant 0 : i32
    %c0_i32_2 = arith.constant 0 : i32
    return %arg0, %c0_i32, %c0_i32_0, %c0_i32_1 : i32, i32, i32, i32
  }
}

module attributes {stable_mosaic.version = 11 : i64} {
  func.func @_norm_kernel(%arg0: memref<2x256xf32, #tpu.memory_space<vmem>>, %arg1: memref<2x256xf32, #tpu.memory_space<vmem>>, %arg2: memref<2x1xf32, #tpu.memory_space<vmem>>, %arg3: memref<2x1xf32, #tpu.memory_space<vmem>>) attributes {dimension_semantics = [], scalar_prefetch = 0 : i64, scratch_operands = 0 : i64, tpu.core_type = #tpu.core_type<tc>} {
    %c0 = arith.constant 0 : index
    %c0_0 = arith.constant 0 : index
    %0 = vector.load %arg0[%c0, %c0_0] : memref<2x256xf32, #tpu.memory_space<vmem>>, vector<2x256xf32>
    %cst = arith.constant dense<0.000000e+00> : vector<2xf32>
    %1 = vector.multi_reduction <add>, %0, %cst [1] : vector<2x256xf32> to vector<2xf32>
    %2 = vector.shape_cast %1 : vector<2xf32> to vector<2x1xf32>
    %cst_1 = arith.constant 3.906250e-03 : f32
    %3 = vector.broadcast %cst_1 : f32 to vector<2x1xf32>
    %4 = arith.mulf %2, %3 : vector<2x1xf32>
    %5 = vector.broadcast %4 : vector<2x1xf32> to vector<2x256xf32>
    %6 = arith.subf %0, %5 : vector<2x256xf32>
    %7 = arith.mulf %6, %6 : vector<2x256xf32>
    %cst_2 = arith.constant dense<0.000000e+00> : vector<2xf32>
    %8 = vector.multi_reduction <add>, %7, %cst_2 [1] : vector<2x256xf32> to vector<2xf32>
    %9 = vector.shape_cast %8 : vector<2xf32> to vector<2x1xf32>
    %cst_3 = arith.constant 0.00392156886 : f32
    %10 = vector.broadcast %cst_3 : f32 to vector<2x1xf32>
    %11 = arith.mulf %9, %10 : vector<2x1xf32>
    %12 = math.rsqrt %11 : vector<2x1xf32>
    %13 = vector.broadcast %12 : vector<2x1xf32> to vector<2x256xf32>
    %14 = arith.mulf %6, %13 : vector<2x256xf32>
    %c0_4 = arith.constant 0 : index
    %c0_5 = arith.constant 0 : index
    %15 = vector.load %arg1[%c0_4, %c0_5] : memref<2x256xf32, #tpu.memory_space<vmem>>, vector<2x256xf32>
    tpu.vector_store %arg1[%c0_4, %c0_5], %14 {strides = array<i32>} : memref<2x256xf32, #tpu.memory_space<vmem>>, vector<2x256xf32>,
    %c0_6 = arith.constant 0 : index
    %c0_7 = arith.constant 0 : index
    %16 = vector.load %arg2[%c0_6, %c0_7] : memref<2x1xf32, #tpu.memory_space<vmem>>, vector<2x1xf32>
    tpu.vector_store %arg2[%c0_6, %c0_7], %4 {strides = array<i32>} : memref<2x1xf32, #tpu.memory_space<vmem>>, vector<2x1xf32>,
    %17 = math.sqrt %11 : vector<2x1xf32>
    %c0_8 = arith.constant 0 : index
    %c0_9 = arith.constant 0 : index
    %18 = vector.load %arg3[%c0_8, %c0_9] : memref<2x1xf32, #tpu.memory_space<vmem>>, vector<2x1xf32>
    tpu.vector_store %arg3[%c0_8, %c0_9], %17 {strides = array<i32>} : memref<2x1xf32, #tpu.memory_space<vmem>>, vector<2x1xf32>,
    return
  }
}

module attributes {stable_mosaic.version = 11 : i64} {
  func.func @_conv_mm_kernel(%arg0: i32, %arg1: i32, %arg2: memref<1x18x128xf32, #tpu.memory_space<vmem>>, %arg3: memref<8x18xf32, #tpu.memory_space<vmem>>, %arg4: memref<8x1xf32, #tpu.memory_space<vmem>>, %arg5: memref<1x8x128xf32, #tpu.memory_space<vmem>>) attributes {dimension_semantics = [#tpu.dimension_semantics<parallel>, #tpu.dimension_semantics<parallel>], iteration_bounds = array<i64: 1, 2>, scalar_prefetch = 0 : i64, scratch_operands = 0 : i64, tpu.core_type = #tpu.core_type<tc>, window_params = [{transform_indices = @transform_0, window_bounds = array<i64: 1, 18, 128>}, {pipeline_mode = #tpu.pipeline_mode<synchronous>, transform_indices = @transform_1, window_bounds = array<i64: 8, 18>}, {pipeline_mode = #tpu.pipeline_mode<synchronous>, transform_indices = @transform_2, window_bounds = array<i64: 8, 1>}, {transform_indices = @transform_3, window_bounds = array<i64: 1, 8, 128>}]} {
    %c0 = arith.constant 0 : index
    %c0_0 = arith.constant 0 : index
    %0 = vector.load %arg3[%c0, %c0_0] : memref<8x18xf32, #tpu.memory_space<vmem>>, vector<8x18xf32>
    %c0_1 = arith.constant 0 : index
    %c0_2 = arith.constant 0 : index
    %c0_3 = arith.constant 0 : index
    %1 = vector.load %arg2[%c0_1, %c0_2, %c0_3] : memref<1x18x128xf32, #tpu.memory_space<vmem>>, vector<1x18x128xf32>
    %2 = vector.shape_cast %1 : vector<1x18x128xf32> to vector<18x128xf32>
    %cst = arith.constant dense<0.000000e+00> : vector<8x128xf32>
    %3 = tpu.matmul %0, %2, %cst {dimension_numbers = #tpu.dot_dimension_numbers<[1], [0], [0], [1], [0, 0, 1, 1], [], []>} : vector<8x18xf32>, vector<18x128xf32>, vector<8x128xf32> -> vector<8x128xf32>
    %c0_4 = arith.constant 0 : index
    %c0_5 = arith.constant 0 : index
    %4 = vector.load %arg4[%c0_4, %c0_5] : memref<8x1xf32, #tpu.memory_space<vmem>>, vector<8x1xf32>
    %5 = vector.broadcast %4 : vector<8x1xf32> to vector<8x128xf32>
    %6 = arith.addf %3, %5 : vector<8x128xf32>
    %cst_6 = arith.constant 0.000000e+00 : f32
    %7 = vector.broadcast %cst_6 : f32 to vector<8x128xf32>
    %8 = arith.subf %7, %6 : vector<8x128xf32>
    %9 = math.exp %8 : vector<8x128xf32>
    %cst_7 = arith.constant 1.000000e+00 : f32
    %10 = vector.broadcast %cst_7 : f32 to vector<8x128xf32>
    %11 = arith.addf %10, %9 : vector<8x128xf32>
    %12 = tpu.reciprocal %11 {approx = true} : vector<8x128xf32> -> vector<8x128xf32>
    %13 = arith.mulf %6, %12 : vector<8x128xf32>
    %c0_8 = arith.constant 0 : index
    %c0_9 = arith.constant 0 : index
    %c0_10 = arith.constant 0 : index
    %14 = vector.load %arg5[%c0_8, %c0_9, %c0_10] : memref<1x8x128xf32, #tpu.memory_space<vmem>>, vector<1x8x128xf32>
    %15 = vector.shape_cast %14 : vector<1x8x128xf32> to vector<8x128xf32>
    %16 = vector.shape_cast %13 : vector<8x128xf32> to vector<1x8x128xf32>
    tpu.vector_store %arg5[%c0_8, %c0_9, %c0_10], %16 {strides = array<i32>} : memref<1x8x128xf32, #tpu.memory_space<vmem>>, vector<1x8x128xf32>,
    return
  }
  func.func @transform_0(%arg0: i32, %arg1: i32) -> (i32, i32, i32) {
    %c0_i32 = arith.constant 0 : i32
    %c0_i32_0 = arith.constant 0 : i32
    return %arg0, %c0_i32, %arg1 : i32, i32, i32
  }
  func.func @transform_1(%arg0: i32, %arg1: i32) -> (i32, i32) {
    %c0_i32 = arith.constant 0 : i32
    %c0_i32_0 = arith.constant 0 : i32
    %c0_i32_1 = arith.constant 0 : i32
    return %c0_i32, %c0_i32_0 : i32, i32
  }
  func.func @transform_2(%arg0: i32, %arg1: i32) -> (i32, i32) {
    %c0_i32 = arith.constant 0 : i32
    %c0_i32_0 = arith.constant 0 : i32
    %c0_i32_1 = arith.constant 0 : i32
    return %c0_i32, %c0_i32_0 : i32, i32
  }
  func.func @transform_3(%arg0: i32, %arg1: i32) -> (i32, i32, i32) {
    %c0_i32 = arith.constant 0 : i32
    %c0_i32_0 = arith.constant 0 : i32
    return %arg0, %c0_i32, %arg1 : i32, i32, i32
  }
}

module attributes {stable_mosaic.version = 11 : i64} {
  func.func @_conv_mm_kernel(%arg0: i32, %arg1: i32, %arg2: memref<1x72x128xf32, #tpu.memory_space<vmem>>, %arg3: memref<8x72xf32, #tpu.memory_space<vmem>>, %arg4: memref<8x1xf32, #tpu.memory_space<vmem>>, %arg5: memref<1x8x128xf32, #tpu.memory_space<vmem>>) attributes {dimension_semantics = [#tpu.dimension_semantics<parallel>, #tpu.dimension_semantics<parallel>], iteration_bounds = array<i64: 1, 2>, scalar_prefetch = 0 : i64, scratch_operands = 0 : i64, tpu.core_type = #tpu.core_type<tc>, window_params = [{transform_indices = @transform_0, window_bounds = array<i64: 1, 72, 128>}, {pipeline_mode = #tpu.pipeline_mode<synchronous>, transform_indices = @transform_1, window_bounds = array<i64: 8, 72>}, {pipeline_mode = #tpu.pipeline_mode<synchronous>, transform_indices = @transform_2, window_bounds = array<i64: 8, 1>}, {transform_indices = @transform_3, window_bounds = array<i64: 1, 8, 128>}]} {
    %c0 = arith.constant 0 : index
    %c0_0 = arith.constant 0 : index
    %0 = vector.load %arg3[%c0, %c0_0] : memref<8x72xf32, #tpu.memory_space<vmem>>, vector<8x72xf32>
    %c0_1 = arith.constant 0 : index
    %c0_2 = arith.constant 0 : index
    %c0_3 = arith.constant 0 : index
    %1 = vector.load %arg2[%c0_1, %c0_2, %c0_3] : memref<1x72x128xf32, #tpu.memory_space<vmem>>, vector<1x72x128xf32>
    %2 = vector.shape_cast %1 : vector<1x72x128xf32> to vector<72x128xf32>
    %cst = arith.constant dense<0.000000e+00> : vector<8x128xf32>
    %3 = tpu.matmul %0, %2, %cst {dimension_numbers = #tpu.dot_dimension_numbers<[1], [0], [0], [1], [0, 0, 1, 1], [], []>} : vector<8x72xf32>, vector<72x128xf32>, vector<8x128xf32> -> vector<8x128xf32>
    %c0_4 = arith.constant 0 : index
    %c0_5 = arith.constant 0 : index
    %4 = vector.load %arg4[%c0_4, %c0_5] : memref<8x1xf32, #tpu.memory_space<vmem>>, vector<8x1xf32>
    %5 = vector.broadcast %4 : vector<8x1xf32> to vector<8x128xf32>
    %6 = arith.addf %3, %5 : vector<8x128xf32>
    %c0_6 = arith.constant 0 : index
    %c0_7 = arith.constant 0 : index
    %c0_8 = arith.constant 0 : index
    %7 = vector.load %arg5[%c0_6, %c0_7, %c0_8] : memref<1x8x128xf32, #tpu.memory_space<vmem>>, vector<1x8x128xf32>
    %8 = vector.shape_cast %7 : vector<1x8x128xf32> to vector<8x128xf32>
    %9 = vector.shape_cast %6 : vector<8x128xf32> to vector<1x8x128xf32>
    tpu.vector_store %arg5[%c0_6, %c0_7, %c0_8], %9 {strides = array<i32>} : memref<1x8x128xf32, #tpu.memory_space<vmem>>, vector<1x8x128xf32>,
    return
  }
  func.func @transform_0(%arg0: i32, %arg1: i32) -> (i32, i32, i32) {
    %c0_i32 = arith.constant 0 : i32
    %c0_i32_0 = arith.constant 0 : i32
    return %arg0, %c0_i32, %arg1 : i32, i32, i32
  }
  func.func @transform_1(%arg0: i32, %arg1: i32) -> (i32, i32) {
    %c0_i32 = arith.constant 0 : i32
    %c0_i32_0 = arith.constant 0 : i32
    %c0_i32_1 = arith.constant 0 : i32
    return %c0_i32, %c0_i32_0 : i32, i32
  }
  func.func @transform_2(%arg0: i32, %arg1: i32) -> (i32, i32) {
    %c0_i32 = arith.constant 0 : i32
    %c0_i32_0 = arith.constant 0 : i32
    %c0_i32_1 = arith.constant 0 : i32
    return %c0_i32, %c0_i32_0 : i32, i32
  }
  func.func @transform_3(%arg0: i32, %arg1: i32) -> (i32, i32, i32) {
    %c0_i32 = arith.constant 0 : i32
    %c0_i32_0 = arith.constant 0 : i32
    return %arg0, %c0_i32, %arg1 : i32, i32, i32
  }
}

module attributes {stable_mosaic.version = 11 : i64} {
  func.func @_conv_mm_kernel(%arg0: i32, %arg1: i32, %arg2: memref<1x72x128xf32, #tpu.memory_space<vmem>>, %arg3: memref<8x72xf32, #tpu.memory_space<vmem>>, %arg4: memref<8x1xf32, #tpu.memory_space<vmem>>, %arg5: memref<1x8x128xf32, #tpu.memory_space<vmem>>) attributes {dimension_semantics = [#tpu.dimension_semantics<parallel>, #tpu.dimension_semantics<parallel>], iteration_bounds = array<i64: 1, 2>, scalar_prefetch = 0 : i64, scratch_operands = 0 : i64, tpu.core_type = #tpu.core_type<tc>, window_params = [{transform_indices = @transform_0, window_bounds = array<i64: 1, 72, 128>}, {pipeline_mode = #tpu.pipeline_mode<synchronous>, transform_indices = @transform_1, window_bounds = array<i64: 8, 72>}, {pipeline_mode = #tpu.pipeline_mode<synchronous>, transform_indices = @transform_2, window_bounds = array<i64: 8, 1>}, {transform_indices = @transform_3, window_bounds = array<i64: 1, 8, 128>}]} {
    %c0 = arith.constant 0 : index
    %c0_0 = arith.constant 0 : index
    %0 = vector.load %arg3[%c0, %c0_0] : memref<8x72xf32, #tpu.memory_space<vmem>>, vector<8x72xf32>
    %c0_1 = arith.constant 0 : index
    %c0_2 = arith.constant 0 : index
    %c0_3 = arith.constant 0 : index
    %1 = vector.load %arg2[%c0_1, %c0_2, %c0_3] : memref<1x72x128xf32, #tpu.memory_space<vmem>>, vector<1x72x128xf32>
    %2 = vector.shape_cast %1 : vector<1x72x128xf32> to vector<72x128xf32>
    %cst = arith.constant dense<0.000000e+00> : vector<8x128xf32>
    %3 = tpu.matmul %0, %2, %cst {dimension_numbers = #tpu.dot_dimension_numbers<[1], [0], [0], [1], [0, 0, 1, 1], [], []>} : vector<8x72xf32>, vector<72x128xf32>, vector<8x128xf32> -> vector<8x128xf32>
    %c0_4 = arith.constant 0 : index
    %c0_5 = arith.constant 0 : index
    %4 = vector.load %arg4[%c0_4, %c0_5] : memref<8x1xf32, #tpu.memory_space<vmem>>, vector<8x1xf32>
    %5 = vector.broadcast %4 : vector<8x1xf32> to vector<8x128xf32>
    %6 = arith.addf %3, %5 : vector<8x128xf32>
    %cst_6 = arith.constant 0.000000e+00 : f32
    %7 = vector.broadcast %cst_6 : f32 to vector<8x128xf32>
    %8 = arith.subf %7, %6 : vector<8x128xf32>
    %9 = math.exp %8 : vector<8x128xf32>
    %cst_7 = arith.constant 1.000000e+00 : f32
    %10 = vector.broadcast %cst_7 : f32 to vector<8x128xf32>
    %11 = arith.addf %10, %9 : vector<8x128xf32>
    %12 = tpu.reciprocal %11 {approx = true} : vector<8x128xf32> -> vector<8x128xf32>
    %13 = arith.mulf %6, %12 : vector<8x128xf32>
    %c0_8 = arith.constant 0 : index
    %c0_9 = arith.constant 0 : index
    %c0_10 = arith.constant 0 : index
    %14 = vector.load %arg5[%c0_8, %c0_9, %c0_10] : memref<1x8x128xf32, #tpu.memory_space<vmem>>, vector<1x8x128xf32>
    %15 = vector.shape_cast %14 : vector<1x8x128xf32> to vector<8x128xf32>
    %16 = vector.shape_cast %13 : vector<8x128xf32> to vector<1x8x128xf32>
    tpu.vector_store %arg5[%c0_8, %c0_9, %c0_10], %16 {strides = array<i32>} : memref<1x8x128xf32, #tpu.memory_space<vmem>>, vector<1x8x128xf32>,
    return
  }
  func.func @transform_0(%arg0: i32, %arg1: i32) -> (i32, i32, i32) {
    %c0_i32 = arith.constant 0 : i32
    %c0_i32_0 = arith.constant 0 : i32
    return %arg0, %c0_i32, %arg1 : i32, i32, i32
  }
  func.func @transform_1(%arg0: i32, %arg1: i32) -> (i32, i32) {
    %c0_i32 = arith.constant 0 : i32
    %c0_i32_0 = arith.constant 0 : i32
    %c0_i32_1 = arith.constant 0 : i32
    return %c0_i32, %c0_i32_0 : i32, i32
  }
  func.func @transform_2(%arg0: i32, %arg1: i32) -> (i32, i32) {
    %c0_i32 = arith.constant 0 : i32
    %c0_i32_0 = arith.constant 0 : i32
    %c0_i32_1 = arith.constant 0 : i32
    return %c0_i32, %c0_i32_0 : i32, i32
  }
  func.func @transform_3(%arg0: i32, %arg1: i32) -> (i32, i32, i32) {
    %c0_i32 = arith.constant 0 : i32
    %c0_i32_0 = arith.constant 0 : i32
    return %arg0, %c0_i32, %arg1 : i32, i32, i32
  }
}

module attributes {stable_mosaic.version = 11 : i64} {
  func.func @_norm_kernel(%arg0: memref<4x256xf32, #tpu.memory_space<vmem>>, %arg1: memref<4x256xf32, #tpu.memory_space<vmem>>, %arg2: memref<4x1xf32, #tpu.memory_space<vmem>>, %arg3: memref<4x1xf32, #tpu.memory_space<vmem>>) attributes {dimension_semantics = [], scalar_prefetch = 0 : i64, scratch_operands = 0 : i64, tpu.core_type = #tpu.core_type<tc>} {
    %c0 = arith.constant 0 : index
    %c0_0 = arith.constant 0 : index
    %0 = vector.load %arg0[%c0, %c0_0] : memref<4x256xf32, #tpu.memory_space<vmem>>, vector<4x256xf32>
    %cst = arith.constant dense<0.000000e+00> : vector<4xf32>
    %1 = vector.multi_reduction <add>, %0, %cst [1] : vector<4x256xf32> to vector<4xf32>
    %2 = vector.shape_cast %1 : vector<4xf32> to vector<4x1xf32>
    %cst_1 = arith.constant 3.906250e-03 : f32
    %3 = vector.broadcast %cst_1 : f32 to vector<4x1xf32>
    %4 = arith.mulf %2, %3 : vector<4x1xf32>
    %5 = vector.broadcast %4 : vector<4x1xf32> to vector<4x256xf32>
    %6 = arith.subf %0, %5 : vector<4x256xf32>
    %7 = arith.mulf %6, %6 : vector<4x256xf32>
    %cst_2 = arith.constant dense<0.000000e+00> : vector<4xf32>
    %8 = vector.multi_reduction <add>, %7, %cst_2 [1] : vector<4x256xf32> to vector<4xf32>
    %9 = vector.shape_cast %8 : vector<4xf32> to vector<4x1xf32>
    %cst_3 = arith.constant 0.00392156886 : f32
    %10 = vector.broadcast %cst_3 : f32 to vector<4x1xf32>
    %11 = arith.mulf %9, %10 : vector<4x1xf32>
    %12 = math.rsqrt %11 : vector<4x1xf32>
    %13 = vector.broadcast %12 : vector<4x1xf32> to vector<4x256xf32>
    %14 = arith.mulf %6, %13 : vector<4x256xf32>
    %c0_4 = arith.constant 0 : index
    %c0_5 = arith.constant 0 : index
    %15 = vector.load %arg1[%c0_4, %c0_5] : memref<4x256xf32, #tpu.memory_space<vmem>>, vector<4x256xf32>
    tpu.vector_store %arg1[%c0_4, %c0_5], %14 {strides = array<i32>} : memref<4x256xf32, #tpu.memory_space<vmem>>, vector<4x256xf32>,
    %c0_6 = arith.constant 0 : index
    %c0_7 = arith.constant 0 : index
    %16 = vector.load %arg2[%c0_6, %c0_7] : memref<4x1xf32, #tpu.memory_space<vmem>>, vector<4x1xf32>
    tpu.vector_store %arg2[%c0_6, %c0_7], %4 {strides = array<i32>} : memref<4x1xf32, #tpu.memory_space<vmem>>, vector<4x1xf32>,
    %17 = math.sqrt %11 : vector<4x1xf32>
    %c0_8 = arith.constant 0 : index
    %c0_9 = arith.constant 0 : index
    %18 = vector.load %arg3[%c0_8, %c0_9] : memref<4x1xf32, #tpu.memory_space<vmem>>, vector<4x1xf32>
    tpu.vector_store %arg3[%c0_8, %c0_9], %17 {strides = array<i32>} : memref<4x1xf32, #tpu.memory_space<vmem>>, vector<4x1xf32>,
    return
  }
}

module attributes {stable_mosaic.version = 11 : i64} {
  func.func @_expand_dc_kernel(%arg0: i32, %arg1: i32, %arg2: memref<16x16xf32, #tpu.memory_space<vmem>>, %arg3: memref<16x16xf32, #tpu.memory_space<vmem>>, %arg4: memref<16x16xf32, #tpu.memory_space<vmem>>, %arg5: memref<16x16xf32, #tpu.memory_space<vmem>>, %arg6: memref<1x1x16x16xf32, #tpu.memory_space<vmem>>, %arg7: memref<1x1x16x16xf32, #tpu.memory_space<vmem>>, %arg8: memref<1x1x16x16xf32, #tpu.memory_space<vmem>>, %arg9: memref<1x1x16x16xf32, #tpu.memory_space<vmem>>, %arg10: memref<1x1x16x16xf32, #tpu.memory_space<vmem>>, %arg11: memref<1x1x16x16xf32, #tpu.memory_space<vmem>>, %arg12: memref<1x16x16xf32, #tpu.memory_space<vmem>>, %arg13: memref<1x1x16x16xf32, #tpu.memory_space<vmem>>, %arg14: memref<1x1x16x16xf32, #tpu.memory_space<vmem>>) attributes {dimension_semantics = [#tpu.dimension_semantics<parallel>, #tpu.dimension_semantics<parallel>], iteration_bounds = array<i64: 1, 4>, scalar_prefetch = 0 : i64, scratch_operands = 0 : i64, tpu.core_type = #tpu.core_type<tc>, window_params = [{pipeline_mode = #tpu.pipeline_mode<synchronous>, transform_indices = @transform_0, window_bounds = array<i64: 16, 16>}, {pipeline_mode = #tpu.pipeline_mode<synchronous>, transform_indices = @transform_1, window_bounds = array<i64: 16, 16>}, {pipeline_mode = #tpu.pipeline_mode<synchronous>, transform_indices = @transform_2, window_bounds = array<i64: 16, 16>}, {pipeline_mode = #tpu.pipeline_mode<synchronous>, transform_indices = @transform_3, window_bounds = array<i64: 16, 16>}, {transform_indices = @transform_4, window_bounds = array<i64: 1, 1, 16, 16>}, {transform_indices = @transform_5, window_bounds = array<i64: 1, 1, 16, 16>}, {transform_indices = @transform_6, window_bounds = array<i64: 1, 1, 16, 16>}, {transform_indices = @transform_7, window_bounds = array<i64: 1, 1, 16, 16>}, {transform_indices = @transform_8, window_bounds = array<i64: 1, 1, 16, 16>}, {transform_indices = @transform_9, window_bounds = array<i64: 1, 1, 16, 16>}, {transform_indices = @transform_10, window_bounds = array<i64: 1, 16, 16>}, {transform_indices = @transform_11, window_bounds = array<i64: 1, 1, 16, 16>}, {transform_indices = @transform_12, window_bounds = array<i64: 1, 1, 16, 16>}]} {
    %c0 = arith.constant 0 : index
    %c0_0 = arith.constant 0 : index
    %c0_1 = arith.constant 0 : index
    %c0_2 = arith.constant 0 : index
    %0 = vector.load %arg6[%c0, %c0_0, %c0_1, %c0_2] : memref<1x1x16x16xf32, #tpu.memory_space<vmem>>, vector<1x1x16x16xf32>
    %1 = vector.shape_cast %0 : vector<1x1x16x16xf32> to vector<16x16xf32>
    %c0_3 = arith.constant 0 : index
    %c0_4 = arith.constant 0 : index
    %c0_5 = arith.constant 0 : index
    %c0_6 = arith.constant 0 : index
    %2 = vector.load %arg7[%c0_3, %c0_4, %c0_5, %c0_6] : memref<1x1x16x16xf32, #tpu.memory_space<vmem>>, vector<1x1x16x16xf32>
    %3 = vector.shape_cast %2 : vector<1x1x16x16xf32> to vector<16x16xf32>
    %c0_7 = arith.constant 0 : index
    %c0_8 = arith.constant 0 : index
    %c0_9 = arith.constant 0 : index
    %c0_10 = arith.constant 0 : index
    %4 = vector.load %arg8[%c0_7, %c0_8, %c0_9, %c0_10] : memref<1x1x16x16xf32, #tpu.memory_space<vmem>>, vector<1x1x16x16xf32>
    %5 = vector.shape_cast %4 : vector<1x1x16x16xf32> to vector<16x16xf32>
    %c0_11 = arith.constant 0 : index
    %c0_12 = arith.constant 0 : index
    %c0_13 = arith.constant 0 : index
    %c0_14 = arith.constant 0 : index
    %6 = vector.load %arg9[%c0_11, %c0_12, %c0_13, %c0_14] : memref<1x1x16x16xf32, #tpu.memory_space<vmem>>, vector<1x1x16x16xf32>
    %7 = vector.shape_cast %6 : vector<1x1x16x16xf32> to vector<16x16xf32>
    %8 = arith.mulf %1, %5 : vector<16x16xf32>
    %9 = arith.mulf %3, %7 : vector<16x16xf32>
    %10 = arith.subf %8, %9 : vector<16x16xf32>
    %11 = arith.mulf %1, %7 : vector<16x16xf32>
    %12 = arith.mulf %3, %5 : vector<16x16xf32>
    %13 = arith.addf %11, %12 : vector<16x16xf32>
    %c0_15 = arith.constant 0 : index
    %c0_16 = arith.constant 0 : index
    %14 = vector.load %arg2[%c0_15, %c0_16] : memref<16x16xf32, #tpu.memory_space<vmem>>, vector<16x16xf32>
    %c0_17 = arith.constant 0 : index
    %c0_18 = arith.constant 0 : index
    %15 = vector.load %arg3[%c0_17, %c0_18] : memref<16x16xf32, #tpu.memory_space<vmem>>, vector<16x16xf32>
    %c0_19 = arith.constant 0 : index
    %c0_20 = arith.constant 0 : index
    %16 = vector.load %arg4[%c0_19, %c0_20] : memref<16x16xf32, #tpu.memory_space<vmem>>, vector<16x16xf32>
    %c0_21 = arith.constant 0 : index
    %c0_22 = arith.constant 0 : index
    %17 = vector.load %arg5[%c0_21, %c0_22] : memref<16x16xf32, #tpu.memory_space<vmem>>, vector<16x16xf32>
    %cst = arith.constant dense<0.000000e+00> : vector<16x16xf32>
    %18 = tpu.matmul %10, %16, %cst {dimension_numbers = #tpu.dot_dimension_numbers<[1], [0], [0], [1], [0, 0, 1, 1], [], []>} : vector<16x16xf32>, vector<16x16xf32>, vector<16x16xf32> -> vector<16x16xf32>
    %cst_23 = arith.constant dense<0.000000e+00> : vector<16x16xf32>
    %19 = tpu.matmul %13, %17, %cst_23 {dimension_numbers = #tpu.dot_dimension_numbers<[1], [0], [0], [1], [0, 0, 1, 1], [], []>} : vector<16x16xf32>, vector<16x16xf32>, vector<16x16xf32> -> vector<16x16xf32>
    %20 = arith.addf %10, %13 : vector<16x16xf32>
    %21 = arith.addf %16, %17 : vector<16x16xf32>
    %cst_24 = arith.constant dense<0.000000e+00> : vector<16x16xf32>
    %22 = tpu.matmul %20, %21, %cst_24 {dimension_numbers = #tpu.dot_dimension_numbers<[1], [0], [0], [1], [0, 0, 1, 1], [], []>} : vector<16x16xf32>, vector<16x16xf32>, vector<16x16xf32> -> vector<16x16xf32>
    %23 = arith.subf %18, %19 : vector<16x16xf32>
    %24 = arith.subf %22, %18 : vector<16x16xf32>
    %25 = arith.subf %24, %19 : vector<16x16xf32>
    %cst_25 = arith.constant dense<0.000000e+00> : vector<16x16xf32>
    %26 = tpu.matmul %14, %23, %cst_25 {dimension_numbers = #tpu.dot_dimension_numbers<[1], [0], [0], [1], [0, 0, 1, 1], [], []>} : vector<16x16xf32>, vector<16x16xf32>, vector<16x16xf32> -> vector<16x16xf32>
    %cst_26 = arith.constant dense<0.000000e+00> : vector<16x16xf32>
    %27 = tpu.matmul %15, %25, %cst_26 {dimension_numbers = #tpu.dot_dimension_numbers<[1], [0], [0], [1], [0, 0, 1, 1], [], []>} : vector<16x16xf32>, vector<16x16xf32>, vector<16x16xf32> -> vector<16x16xf32>
    %28 = arith.addf %14, %15 : vector<16x16xf32>
    %29 = arith.addf %23, %25 : vector<16x16xf32>
    %cst_27 = arith.constant dense<0.000000e+00> : vector<16x16xf32>
    %30 = tpu.matmul %28, %29, %cst_27 {dimension_numbers = #tpu.dot_dimension_numbers<[1], [0], [0], [1], [0, 0, 1, 1], [], []>} : vector<16x16xf32>, vector<16x16xf32>, vector<16x16xf32> -> vector<16x16xf32>
    %31 = arith.subf %26, %27 : vector<16x16xf32>
    %32 = arith.subf %30, %26 : vector<16x16xf32>
    %33 = arith.subf %32, %27 : vector<16x16xf32>
    %c0_28 = arith.constant 0 : index
    %c0_29 = arith.constant 0 : index
    %c0_30 = arith.constant 0 : index
    %34 = vector.load %arg12[%c0_28, %c0_29, %c0_30] : memref<1x16x16xf32, #tpu.memory_space<vmem>>, vector<1x16x16xf32>
    %35 = vector.shape_cast %34 : vector<1x16x16xf32> to vector<16x16xf32>
    %cst_31 = arith.constant 0.000000e+00 : f32
    %36 = vector.broadcast %cst_31 : f32 to vector<16x16xf32>
    %37 = arith.cmpf ogt, %35, %36 : vector<16x16xf32>
    %c0_32 = arith.constant 0 : index
    %c0_33 = arith.constant 0 : index
    %c0_34 = arith.constant 0 : index
    %c0_35 = arith.constant 0 : index
    %38 = vector.load %arg10[%c0_32, %c0_33, %c0_34, %c0_35] : memref<1x1x16x16xf32, #tpu.memory_space<vmem>>, vector<1x1x16x16xf32>
    %39 = vector.shape_cast %38 : vector<1x1x16x16xf32> to vector<16x16xf32>
    %c0_36 = arith.constant 0 : index
    %c0_37 = arith.constant 0 : index
    %c0_38 = arith.constant 0 : index
    %c0_39 = arith.constant 0 : index
    %40 = vector.load %arg11[%c0_36, %c0_37, %c0_38, %c0_39] : memref<1x1x16x16xf32, #tpu.memory_space<vmem>>, vector<1x1x16x16xf32>
    %41 = vector.shape_cast %40 : vector<1x1x16x16xf32> to vector<16x16xf32>
    %cst_40 = arith.constant 0.00999999977 : f32
    %42 = vector.broadcast %cst_40 : f32 to vector<16x16xf32>
    %43 = arith.mulf %42, %31 : vector<16x16xf32>
    %44 = arith.addf %39, %43 : vector<16x16xf32>
    %cst_41 = arith.constant 9.900990e-01 : f32
    %45 = vector.broadcast %cst_41 : f32 to vector<16x16xf32>
    %46 = arith.mulf %44, %45 : vector<16x16xf32>
    %47 = arith.select %37, %46, %31 : vector<16x16xi1>, vector<16x16xf32>
    %c0_42 = arith.constant 0 : index
    %c0_43 = arith.constant 0 : index
    %c0_44 = arith.constant 0 : index
    %c0_45 = arith.constant 0 : index
    %48 = vector.load %arg13[%c0_42, %c0_43, %c0_44, %c0_45] : memref<1x1x16x16xf32, #tpu.memory_space<vmem>>, vector<1x1x16x16xf32>
    %49 = vector.shape_cast %48 : vector<1x1x16x16xf32> to vector<16x16xf32>
    %50 = vector.shape_cast %47 : vector<16x16xf32> to vector<1x1x16x16xf32>
    tpu.vector_store %arg13[%c0_42, %c0_43, %c0_44, %c0_45], %50 {strides = array<i32>} : memref<1x1x16x16xf32, #tpu.memory_space<vmem>>, vector<1x1x16x16xf32>,
    %cst_46 = arith.constant 0.00999999977 : f32
    %51 = vector.broadcast %cst_46 : f32 to vector<16x16xf32>
    %52 = arith.mulf %51, %33 : vector<16x16xf32>
    %53 = arith.addf %41, %52 : vector<16x16xf32>
    %cst_47 = arith.constant 9.900990e-01 : f32
    %54 = vector.broadcast %cst_47 : f32 to vector<16x16xf32>
    %55 = arith.mulf %53, %54 : vector<16x16xf32>
    %56 = arith.select %37, %55, %33 : vector<16x16xi1>, vector<16x16xf32>
    %c0_48 = arith.constant 0 : index
    %c0_49 = arith.constant 0 : index
    %c0_50 = arith.constant 0 : index
    %c0_51 = arith.constant 0 : index
    %57 = vector.load %arg14[%c0_48, %c0_49, %c0_50, %c0_51] : memref<1x1x16x16xf32, #tpu.memory_space<vmem>>, vector<1x1x16x16xf32>
    %58 = vector.shape_cast %57 : vector<1x1x16x16xf32> to vector<16x16xf32>
    %59 = vector.shape_cast %56 : vector<16x16xf32> to vector<1x1x16x16xf32>
    tpu.vector_store %arg14[%c0_48, %c0_49, %c0_50, %c0_51], %59 {strides = array<i32>} : memref<1x1x16x16xf32, #tpu.memory_space<vmem>>, vector<1x1x16x16xf32>,
    return
  }
  func.func @transform_0(%arg0: i32, %arg1: i32) -> (i32, i32) {
    %c0_i32 = arith.constant 0 : i32
    %c0_i32_0 = arith.constant 0 : i32
    %c0_i32_1 = arith.constant 0 : i32
    return %c0_i32, %c0_i32_0 : i32, i32
  }
  func.func @transform_1(%arg0: i32, %arg1: i32) -> (i32, i32) {
    %c0_i32 = arith.constant 0 : i32
    %c0_i32_0 = arith.constant 0 : i32
    %c0_i32_1 = arith.constant 0 : i32
    return %c0_i32, %c0_i32_0 : i32, i32
  }
  func.func @transform_2(%arg0: i32, %arg1: i32) -> (i32, i32) {
    %c0_i32 = arith.constant 0 : i32
    %c0_i32_0 = arith.constant 0 : i32
    %c0_i32_1 = arith.constant 0 : i32
    return %c0_i32, %c0_i32_0 : i32, i32
  }
  func.func @transform_3(%arg0: i32, %arg1: i32) -> (i32, i32) {
    %c0_i32 = arith.constant 0 : i32
    %c0_i32_0 = arith.constant 0 : i32
    %c0_i32_1 = arith.constant 0 : i32
    return %c0_i32, %c0_i32_0 : i32, i32
  }
  func.func @transform_4(%arg0: i32, %arg1: i32) -> (i32, i32, i32, i32) {
    %c0_i32 = arith.constant 0 : i32
    %c0_i32_0 = arith.constant 0 : i32
    %c0_i32_1 = arith.constant 0 : i32
    %c0_i32_2 = arith.constant 0 : i32
    return %arg0, %c0_i32, %c0_i32_0, %c0_i32_1 : i32, i32, i32, i32
  }
  func.func @transform_5(%arg0: i32, %arg1: i32) -> (i32, i32, i32, i32) {
    %c0_i32 = arith.constant 0 : i32
    %c0_i32_0 = arith.constant 0 : i32
    %c0_i32_1 = arith.constant 0 : i32
    %c0_i32_2 = arith.constant 0 : i32
    return %arg0, %c0_i32, %c0_i32_0, %c0_i32_1 : i32, i32, i32, i32
  }
  func.func @transform_6(%arg0: i32, %arg1: i32) -> (i32, i32, i32, i32) {
    %c0_i32 = arith.constant 0 : i32
    %c0_i32_0 = arith.constant 0 : i32
    %c0_i32_1 = arith.constant 0 : i32
    return %arg0, %arg1, %c0_i32, %c0_i32_0 : i32, i32, i32, i32
  }
  func.func @transform_7(%arg0: i32, %arg1: i32) -> (i32, i32, i32, i32) {
    %c0_i32 = arith.constant 0 : i32
    %c0_i32_0 = arith.constant 0 : i32
    %c0_i32_1 = arith.constant 0 : i32
    return %arg0, %arg1, %c0_i32, %c0_i32_0 : i32, i32, i32, i32
  }
  func.func @transform_8(%arg0: i32, %arg1: i32) -> (i32, i32, i32, i32) {
    %c0_i32 = arith.constant 0 : i32
    %c0_i32_0 = arith.constant 0 : i32
    %c0_i32_1 = arith.constant 0 : i32
    return %arg0, %arg1, %c0_i32, %c0_i32_0 : i32, i32, i32, i32
  }
  func.func @transform_9(%arg0: i32, %arg1: i32) -> (i32, i32, i32, i32) {
    %c0_i32 = arith.constant 0 : i32
    %c0_i32_0 = arith.constant 0 : i32
    %c0_i32_1 = arith.constant 0 : i32
    return %arg0, %arg1, %c0_i32, %c0_i32_0 : i32, i32, i32, i32
  }
  func.func @transform_10(%arg0: i32, %arg1: i32) -> (i32, i32, i32) {
    %c0_i32 = arith.constant 0 : i32
    %c0_i32_0 = arith.constant 0 : i32
    %c0_i32_1 = arith.constant 0 : i32
    return %arg0, %c0_i32, %c0_i32_0 : i32, i32, i32
  }
  func.func @transform_11(%arg0: i32, %arg1: i32) -> (i32, i32, i32, i32) {
    %c0_i32 = arith.constant 0 : i32
    %c0_i32_0 = arith.constant 0 : i32
    %c0_i32_1 = arith.constant 0 : i32
    return %arg0, %arg1, %c0_i32, %c0_i32_0 : i32, i32, i32, i32
  }
  func.func @transform_12(%arg0: i32, %arg1: i32) -> (i32, i32, i32, i32) {
    %c0_i32 = arith.constant 0 : i32
    %c0_i32_0 = arith.constant 0 : i32
    %c0_i32_1 = arith.constant 0 : i32
    return %arg0, %arg1, %c0_i32, %c0_i32_0 : i32, i32, i32, i32
  }
}

module attributes {stable_mosaic.version = 11 : i64} {
  func.func @_conv_mm_kernel(%arg0: i32, %arg1: i32, %arg2: memref<1x36x128xf32, #tpu.memory_space<vmem>>, %arg3: memref<8x36xf32, #tpu.memory_space<vmem>>, %arg4: memref<8x1xf32, #tpu.memory_space<vmem>>, %arg5: memref<1x8x128xf32, #tpu.memory_space<vmem>>) attributes {dimension_semantics = [#tpu.dimension_semantics<parallel>, #tpu.dimension_semantics<parallel>], iteration_bounds = array<i64: 1, 2>, scalar_prefetch = 0 : i64, scratch_operands = 0 : i64, tpu.core_type = #tpu.core_type<tc>, window_params = [{transform_indices = @transform_0, window_bounds = array<i64: 1, 36, 128>}, {pipeline_mode = #tpu.pipeline_mode<synchronous>, transform_indices = @transform_1, window_bounds = array<i64: 8, 36>}, {pipeline_mode = #tpu.pipeline_mode<synchronous>, transform_indices = @transform_2, window_bounds = array<i64: 8, 1>}, {transform_indices = @transform_3, window_bounds = array<i64: 1, 8, 128>}]} {
    %c0 = arith.constant 0 : index
    %c0_0 = arith.constant 0 : index
    %0 = vector.load %arg3[%c0, %c0_0] : memref<8x36xf32, #tpu.memory_space<vmem>>, vector<8x36xf32>
    %c0_1 = arith.constant 0 : index
    %c0_2 = arith.constant 0 : index
    %c0_3 = arith.constant 0 : index
    %1 = vector.load %arg2[%c0_1, %c0_2, %c0_3] : memref<1x36x128xf32, #tpu.memory_space<vmem>>, vector<1x36x128xf32>
    %2 = vector.shape_cast %1 : vector<1x36x128xf32> to vector<36x128xf32>
    %cst = arith.constant dense<0.000000e+00> : vector<8x128xf32>
    %3 = tpu.matmul %0, %2, %cst {dimension_numbers = #tpu.dot_dimension_numbers<[1], [0], [0], [1], [0, 0, 1, 1], [], []>} : vector<8x36xf32>, vector<36x128xf32>, vector<8x128xf32> -> vector<8x128xf32>
    %c0_4 = arith.constant 0 : index
    %c0_5 = arith.constant 0 : index
    %4 = vector.load %arg4[%c0_4, %c0_5] : memref<8x1xf32, #tpu.memory_space<vmem>>, vector<8x1xf32>
    %5 = vector.broadcast %4 : vector<8x1xf32> to vector<8x128xf32>
    %6 = arith.addf %3, %5 : vector<8x128xf32>
    %cst_6 = arith.constant 0.000000e+00 : f32
    %7 = vector.broadcast %cst_6 : f32 to vector<8x128xf32>
    %8 = arith.subf %7, %6 : vector<8x128xf32>
    %9 = math.exp %8 : vector<8x128xf32>
    %cst_7 = arith.constant 1.000000e+00 : f32
    %10 = vector.broadcast %cst_7 : f32 to vector<8x128xf32>
    %11 = arith.addf %10, %9 : vector<8x128xf32>
    %12 = tpu.reciprocal %11 {approx = true} : vector<8x128xf32> -> vector<8x128xf32>
    %13 = arith.mulf %6, %12 : vector<8x128xf32>
    %c0_8 = arith.constant 0 : index
    %c0_9 = arith.constant 0 : index
    %c0_10 = arith.constant 0 : index
    %14 = vector.load %arg5[%c0_8, %c0_9, %c0_10] : memref<1x8x128xf32, #tpu.memory_space<vmem>>, vector<1x8x128xf32>
    %15 = vector.shape_cast %14 : vector<1x8x128xf32> to vector<8x128xf32>
    %16 = vector.shape_cast %13 : vector<8x128xf32> to vector<1x8x128xf32>
    tpu.vector_store %arg5[%c0_8, %c0_9, %c0_10], %16 {strides = array<i32>} : memref<1x8x128xf32, #tpu.memory_space<vmem>>, vector<1x8x128xf32>,
    return
  }
  func.func @transform_0(%arg0: i32, %arg1: i32) -> (i32, i32, i32) {
    %c0_i32 = arith.constant 0 : i32
    %c0_i32_0 = arith.constant 0 : i32
    return %arg0, %c0_i32, %arg1 : i32, i32, i32
  }
  func.func @transform_1(%arg0: i32, %arg1: i32) -> (i32, i32) {
    %c0_i32 = arith.constant 0 : i32
    %c0_i32_0 = arith.constant 0 : i32
    %c0_i32_1 = arith.constant 0 : i32
    return %c0_i32, %c0_i32_0 : i32, i32
  }
  func.func @transform_2(%arg0: i32, %arg1: i32) -> (i32, i32) {
    %c0_i32 = arith.constant 0 : i32
    %c0_i32_0 = arith.constant 0 : i32
    %c0_i32_1 = arith.constant 0 : i32
    return %c0_i32, %c0_i32_0 : i32, i32
  }
  func.func @transform_3(%arg0: i32, %arg1: i32) -> (i32, i32, i32) {
    %c0_i32 = arith.constant 0 : i32
    %c0_i32_0 = arith.constant 0 : i32
    return %arg0, %c0_i32, %arg1 : i32, i32, i32
  }
}

module attributes {stable_mosaic.version = 11 : i64} {
  func.func @_ifft_rss_kernel(%arg0: i32, %arg1: i32, %arg2: memref<16x16xf32, #tpu.memory_space<vmem>>, %arg3: memref<16x16xf32, #tpu.memory_space<vmem>>, %arg4: memref<16x16xf32, #tpu.memory_space<vmem>>, %arg5: memref<16x16xf32, #tpu.memory_space<vmem>>, %arg6: memref<1x1x16x16xf32, #tpu.memory_space<vmem>>, %arg7: memref<1x1x16x16xf32, #tpu.memory_space<vmem>>, %arg8: memref<1x1x16x16xf32, #tpu.memory_space<vmem>>) attributes {dimension_semantics = [#tpu.dimension_semantics<parallel>, #tpu.dimension_semantics<arbitrary>], iteration_bounds = array<i64: 1, 4>, scalar_prefetch = 0 : i64, scratch_operands = 0 : i64, tpu.core_type = #tpu.core_type<tc>, window_params = [{pipeline_mode = #tpu.pipeline_mode<synchronous>, transform_indices = @transform_0, window_bounds = array<i64: 16, 16>}, {pipeline_mode = #tpu.pipeline_mode<synchronous>, transform_indices = @transform_1, window_bounds = array<i64: 16, 16>}, {pipeline_mode = #tpu.pipeline_mode<synchronous>, transform_indices = @transform_2, window_bounds = array<i64: 16, 16>}, {pipeline_mode = #tpu.pipeline_mode<synchronous>, transform_indices = @transform_3, window_bounds = array<i64: 16, 16>}, {transform_indices = @transform_4, window_bounds = array<i64: 1, 1, 16, 16>}, {transform_indices = @transform_5, window_bounds = array<i64: 1, 1, 16, 16>}, {transform_indices = @transform_6, window_bounds = array<i64: 1, 1, 16, 16>}]} {
    %c0 = arith.constant 0 : index
    %c0_0 = arith.constant 0 : index
    %c0_1 = arith.constant 0 : index
    %c0_2 = arith.constant 0 : index
    %0 = vector.load %arg6[%c0, %c0_0, %c0_1, %c0_2] : memref<1x1x16x16xf32, #tpu.memory_space<vmem>>, vector<1x1x16x16xf32>
    %1 = vector.shape_cast %0 : vector<1x1x16x16xf32> to vector<16x16xf32>
    %c0_3 = arith.constant 0 : index
    %c0_4 = arith.constant 0 : index
    %c0_5 = arith.constant 0 : index
    %c0_6 = arith.constant 0 : index
    %2 = vector.load %arg7[%c0_3, %c0_4, %c0_5, %c0_6] : memref<1x1x16x16xf32, #tpu.memory_space<vmem>>, vector<1x1x16x16xf32>
    %3 = vector.shape_cast %2 : vector<1x1x16x16xf32> to vector<16x16xf32>
    %c0_7 = arith.constant 0 : index
    %c0_8 = arith.constant 0 : index
    %4 = vector.load %arg2[%c0_7, %c0_8] : memref<16x16xf32, #tpu.memory_space<vmem>>, vector<16x16xf32>
    %c0_9 = arith.constant 0 : index
    %c0_10 = arith.constant 0 : index
    %5 = vector.load %arg3[%c0_9, %c0_10] : memref<16x16xf32, #tpu.memory_space<vmem>>, vector<16x16xf32>
    %c0_11 = arith.constant 0 : index
    %c0_12 = arith.constant 0 : index
    %6 = vector.load %arg4[%c0_11, %c0_12] : memref<16x16xf32, #tpu.memory_space<vmem>>, vector<16x16xf32>
    %c0_13 = arith.constant 0 : index
    %c0_14 = arith.constant 0 : index
    %7 = vector.load %arg5[%c0_13, %c0_14] : memref<16x16xf32, #tpu.memory_space<vmem>>, vector<16x16xf32>
    %cst = arith.constant dense<0.000000e+00> : vector<16x16xf32>
    %8 = tpu.matmul %1, %6, %cst {dimension_numbers = #tpu.dot_dimension_numbers<[1], [0], [0], [1], [0, 0, 1, 1], [], []>} : vector<16x16xf32>, vector<16x16xf32>, vector<16x16xf32> -> vector<16x16xf32>
    %cst_15 = arith.constant dense<0.000000e+00> : vector<16x16xf32>
    %9 = tpu.matmul %3, %7, %cst_15 {dimension_numbers = #tpu.dot_dimension_numbers<[1], [0], [0], [1], [0, 0, 1, 1], [], []>} : vector<16x16xf32>, vector<16x16xf32>, vector<16x16xf32> -> vector<16x16xf32>
    %10 = arith.addf %1, %3 : vector<16x16xf32>
    %11 = arith.addf %6, %7 : vector<16x16xf32>
    %cst_16 = arith.constant dense<0.000000e+00> : vector<16x16xf32>
    %12 = tpu.matmul %10, %11, %cst_16 {dimension_numbers = #tpu.dot_dimension_numbers<[1], [0], [0], [1], [0, 0, 1, 1], [], []>} : vector<16x16xf32>, vector<16x16xf32>, vector<16x16xf32> -> vector<16x16xf32>
    %13 = arith.subf %8, %9 : vector<16x16xf32>
    %14 = arith.subf %12, %8 : vector<16x16xf32>
    %15 = arith.subf %14, %9 : vector<16x16xf32>
    %cst_17 = arith.constant dense<0.000000e+00> : vector<16x16xf32>
    %16 = tpu.matmul %4, %13, %cst_17 {dimension_numbers = #tpu.dot_dimension_numbers<[1], [0], [0], [1], [0, 0, 1, 1], [], []>} : vector<16x16xf32>, vector<16x16xf32>, vector<16x16xf32> -> vector<16x16xf32>
    %cst_18 = arith.constant dense<0.000000e+00> : vector<16x16xf32>
    %17 = tpu.matmul %5, %15, %cst_18 {dimension_numbers = #tpu.dot_dimension_numbers<[1], [0], [0], [1], [0, 0, 1, 1], [], []>} : vector<16x16xf32>, vector<16x16xf32>, vector<16x16xf32> -> vector<16x16xf32>
    %18 = arith.addf %4, %5 : vector<16x16xf32>
    %19 = arith.addf %13, %15 : vector<16x16xf32>
    %cst_19 = arith.constant dense<0.000000e+00> : vector<16x16xf32>
    %20 = tpu.matmul %18, %19, %cst_19 {dimension_numbers = #tpu.dot_dimension_numbers<[1], [0], [0], [1], [0, 0, 1, 1], [], []>} : vector<16x16xf32>, vector<16x16xf32>, vector<16x16xf32> -> vector<16x16xf32>
    %21 = arith.subf %16, %17 : vector<16x16xf32>
    %22 = arith.subf %20, %16 : vector<16x16xf32>
    %23 = arith.subf %22, %17 : vector<16x16xf32>
    %24 = arith.mulf %21, %21 : vector<16x16xf32>
    %25 = arith.mulf %23, %23 : vector<16x16xf32>
    %26 = arith.addf %24, %25 : vector<16x16xf32>
    %c0_i32 = arith.constant 0 : i32
    %27 = arith.cmpi eq, %arg1, %c0_i32 : i32
    %28 = arith.extui %27 : i1 to i32
    %c0_i32_20 = arith.constant 0 : i32
    %29 = arith.cmpi ne, %28, %c0_i32_20 : i32
    scf.if %29 {
      %c0_24 = arith.constant 0 : index
      %c0_25 = arith.constant 0 : index
      %c0_26 = arith.constant 0 : index
      %c0_27 = arith.constant 0 : index
      %36 = vector.load %arg8[%c0_24, %c0_25, %c0_26, %c0_27] : memref<1x1x16x16xf32, #tpu.memory_space<vmem>>, vector<1x1x16x16xf32>
      %37 = vector.shape_cast %36 : vector<1x1x16x16xf32> to vector<16x16xf32>
      %38 = vector.shape_cast %26 : vector<16x16xf32> to vector<1x1x16x16xf32>
      tpu.vector_store %arg8[%c0_24, %c0_25, %c0_26, %c0_27], %38 {strides = array<i32>} : memref<1x1x16x16xf32, #tpu.memory_space<vmem>>, vector<1x1x16x16xf32>,
    } else {
    }
    %c0_i32_21 = arith.constant 0 : i32
    %30 = arith.cmpi sgt, %arg1, %c0_i32_21 : i32
    %31 = arith.extui %30 : i1 to i32
    %c0_i32_22 = arith.constant 0 : i32
    %32 = arith.cmpi ne, %31, %c0_i32_22 : i32
    scf.if %32 {
      %c0_24 = arith.constant 0 : index
      %c0_25 = arith.constant 0 : index
      %c0_26 = arith.constant 0 : index
      %c0_27 = arith.constant 0 : index
      %36 = vector.load %arg8[%c0_24, %c0_25, %c0_26, %c0_27] : memref<1x1x16x16xf32, #tpu.memory_space<vmem>>, vector<1x1x16x16xf32>
      %37 = vector.shape_cast %36 : vector<1x1x16x16xf32> to vector<16x16xf32>
      %38 = arith.addf %37, %26 : vector<16x16xf32>
      %c0_28 = arith.constant 0 : index
      %c0_29 = arith.constant 0 : index
      %c0_30 = arith.constant 0 : index
      %c0_31 = arith.constant 0 : index
      %39 = vector.load %arg8[%c0_28, %c0_29, %c0_30, %c0_31] : memref<1x1x16x16xf32, #tpu.memory_space<vmem>>, vector<1x1x16x16xf32>
      %40 = vector.shape_cast %39 : vector<1x1x16x16xf32> to vector<16x16xf32>
      %41 = vector.shape_cast %38 : vector<16x16xf32> to vector<1x1x16x16xf32>
      tpu.vector_store %arg8[%c0_28, %c0_29, %c0_30, %c0_31], %41 {strides = array<i32>} : memref<1x1x16x16xf32, #tpu.memory_space<vmem>>, vector<1x1x16x16xf32>,
    } else {
    }
    %c3_i32 = arith.constant 3 : i32
    %33 = arith.cmpi eq, %arg1, %c3_i32 : i32
    %34 = arith.extui %33 : i1 to i32
    %c0_i32_23 = arith.constant 0 : i32
    %35 = arith.cmpi ne, %34, %c0_i32_23 : i32
    scf.if %35 {
      %c0_24 = arith.constant 0 : index
      %c0_25 = arith.constant 0 : index
      %c0_26 = arith.constant 0 : index
      %c0_27 = arith.constant 0 : index
      %36 = vector.load %arg8[%c0_24, %c0_25, %c0_26, %c0_27] : memref<1x1x16x16xf32, #tpu.memory_space<vmem>>, vector<1x1x16x16xf32>
      %37 = vector.shape_cast %36 : vector<1x1x16x16xf32> to vector<16x16xf32>
      %38 = math.sqrt %37 : vector<16x16xf32>
      %c0_28 = arith.constant 0 : index
      %c0_29 = arith.constant 0 : index
      %c0_30 = arith.constant 0 : index
      %c0_31 = arith.constant 0 : index
      %39 = vector.load %arg8[%c0_28, %c0_29, %c0_30, %c0_31] : memref<1x1x16x16xf32, #tpu.memory_space<vmem>>, vector<1x1x16x16xf32>
      %40 = vector.shape_cast %39 : vector<1x1x16x16xf32> to vector<16x16xf32>
      %41 = vector.shape_cast %38 : vector<16x16xf32> to vector<1x1x16x16xf32>
      tpu.vector_store %arg8[%c0_28, %c0_29, %c0_30, %c0_31], %41 {strides = array<i32>} : memref<1x1x16x16xf32, #tpu.memory_space<vmem>>, vector<1x1x16x16xf32>,
    } else {
    }
    return
  }
  func.func @transform_0(%arg0: i32, %arg1: i32) -> (i32, i32) {
    %c0_i32 = arith.constant 0 : i32
    %c0_i32_0 = arith.constant 0 : i32
    %c0_i32_1 = arith.constant 0 : i32
    return %c0_i32, %c0_i32_0 : i32, i32
  }
  func.func @transform_1(%arg0: i32, %arg1: i32) -> (i32, i32) {
    %c0_i32 = arith.constant 0 : i32
    %c0_i32_0 = arith.constant 0 : i32
    %c0_i32_1 = arith.constant 0 : i32
    return %c0_i32, %c0_i32_0 : i32, i32
  }
  func.func @transform_2(%arg0: i32, %arg1: i32) -> (i32, i32) {
    %c0_i32 = arith.constant 0 : i32
    %c0_i32_0 = arith.constant 0 : i32
    %c0_i32_1 = arith.constant 0 : i32
    return %c0_i32, %c0_i32_0 : i32, i32
  }
  func.func @transform_3(%arg0: i32, %arg1: i32) -> (i32, i32) {
    %c0_i32 = arith.constant 0 : i32
    %c0_i32_0 = arith.constant 0 : i32
    %c0_i32_1 = arith.constant 0 : i32
    return %c0_i32, %c0_i32_0 : i32, i32
  }
  func.func @transform_4(%arg0: i32, %arg1: i32) -> (i32, i32, i32, i32) {
    %c0_i32 = arith.constant 0 : i32
    %c0_i32_0 = arith.constant 0 : i32
    %c0_i32_1 = arith.constant 0 : i32
    return %arg0, %arg1, %c0_i32, %c0_i32_0 : i32, i32, i32, i32
  }
  func.func @transform_5(%arg0: i32, %arg1: i32) -> (i32, i32, i32, i32) {
    %c0_i32 = arith.constant 0 : i32
    %c0_i32_0 = arith.constant 0 : i32
    %c0_i32_1 = arith.constant 0 : i32
    return %arg0, %arg1, %c0_i32, %c0_i32_0 : i32, i32, i32, i32
  }
  func.func @transform_6(%arg0: i32, %arg1: i32) -> (i32, i32, i32, i32) {
    %c0_i32 = arith.constant 0 : i32
    %c0_i32_0 = arith.constant 0 : i32
    %c0_i32_1 = arith.constant 0 : i32
    %c0_i32_2 = arith.constant 0 : i32
    return %arg0, %c0_i32, %c0_i32_0, %c0_i32_1 : i32, i32, i32, i32
  }
}

</mosaic_0001>

<bundles_post_ra>
// kernel: forward.20
= control target key start
LH: loop header
LB: loop body
LE: loop exit
PB: predicated region body
PF: predicated region fallthrough
CT: control target
= control target key end

     0   :  { %vm30_vm0 = vcmask 7168   ;;  %s94_s0 = inlined_call_operand.vmem [shape: f32[8,256], index: 0, kind: input, shape index: {}]   ;;  %s95_s2 = inlined_call_operand.vmem [shape: f32[8,1], index: 2, kind: output, shape index: {1}]   ;;  %s96_s1 = inlined_call_operand.vmem [shape: f32[8,256], index: 1, kind: output, shape index: {0}]   ;;  %s97_s3 = inlined_call_operand.vmem [shape: f32[8,1], index: 3, kind: output, shape index: {2}]  }
   0x1   :  { %v11_v0 = vld [vmem:[%s94_s0] sm:$0xff]  ;;  %v12_v1 = vld [vmem:[%s94_s0 + $0x8] sm:$0xff] }
   0x2   :  { %v13_v2 = vadd.f32 %v12_v1, %v11_v0 }
   0x4   :  { %14 = vadd.xlane.f32.xlu0 %v13_v2 }
  0x91   :  { %v15_v3 = vpop.xlane.xlu0 %14 }
  0x92   :  { %v16_v4 = vmul.f32 0.00390625, %v15_v3 }
  0x94   :  { %v17_v5 = vsub.f32 %v11_v0, %v16_v4  ;;  %v18_v6 = vsub.f32 %v12_v1, %v16_v4  ;;  %31 = vst.msk [vmem:[%s95_s2] sm:$0xff] %vm30_vm0, %v16_v4 }
  0x96   :  { %v19_v7 = vmul.f32 %v17_v5, %v17_v5  ;;  %v20_v8 = vmul.f32 %v18_v6, %v18_v6 }
  0x98   :  { %v21_v9 = vadd.f32 %v20_v8, %v19_v7 }
  0x9a   :  { %22 = vadd.xlane.f32.xlu0 %v21_v9 }
 0x127   :  { %v23_v10 = vpop.xlane.xlu0 %22 }
 0x128   :  { %v24_v11 = vmul.f32 0.003921569, %v23_v10 }
 0x12a   :  { %52 = vrsqrt.f32 %v24_v11  ;;  %vm34_vm1 = vcmp.eq.f32.partialorder %v24_v11, inf  ;;  %v37_v16 = vand.u32 2147483648, %v24_v11  ;;  %vm36_vm2 = vcmp.eq.f32.partialorder %v24_v11, 0.0 }
 0x134   :  { %v53_v12 = vpop.eup %52 }
 0x135   :  { %v26_v13 = vmul.f32 %v53_v12, %v17_v5  ;;  %v27_v14 = vmul.f32 %v53_v12, %v18_v6  ;;  %v33_v15 = vmul.f32 %v53_v12, %v24_v11 }
 0x137   :  { %28 = vst [vmem:[%s96_s1] sm:$0xff] %v26_v13  ;;  %29 = vst [vmem:[%s96_s1 + $0x8] sm:$0xff] %v27_v14  ;;  %v35_v17 = vsel %vm34_vm1, %v24_v11, %v33_v15 }
 0x138   :  { %v38_v18 = vsel %vm36_vm2, %v37_v16, %v35_v17 }
 0x139   :  { %39 = vst.msk [vmem:[%s97_s3] sm:$0xff] %vm30_vm0, %v38_v18 }

// kernel: forward.19
= control target key start
LH: loop header
LB: loop body
LE: loop exit
PB: predicated region body
PF: predicated region fallthrough
CT: control target
= control target key end

     0   :  { %13 = vsyncpa [#allocation3], 0  ;;  %s1583_s0 = inlined_call_operand.hbm [shape: f32[16,16], index: 0, kind: input, shape index: {}, may-alias: {0,2}]   ;;  %s1584_s1 = inlined_call_operand.hbm [shape: f32[16,16], index: 1, kind: input, shape index: {}, may-alias: {1,3}]   ;;  %s1585_s2 = inlined_call_operand.hbm [shape: f32[16,16], index: 2, kind: input, shape index: {}, may-alias: {0,2}]   ;;  %s1586_s3 = inlined_call_operand.hbm [shape: f32[16,16], index: 3, kind: input, shape index: {}, may-alias: {1,3}]   ;;  %s1587_s4 = inlined_call_operand.vmem [shape: f32[4,16,16], index: 4, kind: input, shape index: {}]   ;;  %s1588_s5 = inlined_call_operand.vmem [shape: f32[4,16,16], index: 5, kind: input, shape index: {}]   ;;  %s1589_s6 = inlined_call_operand.vmem [shape: f32[4,16,16], index: 6, kind: output, shape index: {0}]   ;;  %s1590_s7 = inlined_call_operand.vmem [shape: f32[4,16,16], index: 7, kind: output, shape index: {1}]  }
   0x1   :  { %14 = vsyncpa [#allocation5], 0 }
   0x2   :  { %15 = vsyncpa [#allocation8], 0  ;;  %s1393_s24 = smov 0  }
   0x3 LB: > { %s1399_s25 = sadd.s32 4294967295, %s1345_s24   ;;  %p1037_p0 = scmp.ge.s32.totalorder %s1345_s24, 1  ;;  %s1345_s24 = sphi %s1393_s24, %s21_s24  }
   0x4   : > { %p214_p1 = scmp.lt.s32.totalorder %s1345_s24, 5  ;;  %p1591_p2 = scmp.eq.s32.totalorder %s1399_s25, 0 }
   0x5   : > { %s1347_s27 = smov [#allocation4]   ;;  %s1348_s29 = smov [#allocation2]  }
   0x6   : > { %p1404_p3 = pnand %p1037_p0, %p214_p1  ;;  %s239_s28 = sshll.u32 %s1347_s27, 4  ;;  %s1408_s28 = int_to_ptr.vmem [resolvable:$true] %s239_s28 }
   0x7   : > { %s226_s30 = sshll.u32 %s1348_s29, 4  ;;  %s1349_s9 = smov [#allocation6]   ;;  %s1412_s30 = int_to_ptr.vmem [resolvable:$true] %s226_s30 }
   0x8   : > { %s1593_s26 = scalar_select %p1404_p3, 1, 0 }
   0x9   : > { %p1180_p4 = pneg %p1404_p3  ;;  %s252_s10 = sshll.u32 %s1349_s9, 4  ;;  %s1420_s10 = int_to_ptr.vmem [resolvable:$true] %s252_s10 }
   0xa   : > { %s1350_s11 = smov [#allocation7]   ;;  %s1215_s15 = scalar_lea.hbm %s1584_s1, 256 }
   0xb   : > { %p1416_p5 = pnand %p1591_p2, %p1180_p4  ;;  %s1422_s12 = sshll.u32 %s1350_s11, 4  ;;  %s266_s12 = int_to_ptr.vmem [resolvable:$true] %s1422_s12 }
   0xc   : > { %p1216_p6 = scmp.ne.s32.totalorder %s1584_s1, %s1215_s15  ;;  %p1222_p10 = scmp.lt.u32.totalorder %s1215_s15, %s1584_s1 }
   0xd   : > { %p1432_p7 = pneg %p1416_p5 }
   0xf   : > { %p1218_p8 = pnand %p1432_p7, %p1216_p6 }
  0x11   : > { %p1219_p9 = pneg %p1218_p8 }
  0x13   : > { %p1224_p11 = pnand %p1222_p10, %p1219_p9 }
  0x15   : > { %1227 = shalt.err (!%p1224_p11)
}
  0x16   : > { %s1228_s21 = scalar_lea.vmem %s1408_s28, 256  ;;  %p1236_p1 = scmp.lt.s32.totalorder %s1408_s28, %s1408_s28 }
  0x17   : > { %p1229_p12 = scmp.ne.s32.totalorder %s1408_s28, %s1228_s21  ;;  %p1237_p4 = scmp.lt.s32.totalorder %s1228_s21, %s1228_s21 }
  0x19   : > { %p1231_p13 = pnand %p1229_p12, %p1432_p7  ;;  %p1238_p6 = por %p1237_p4, %p1236_p1 }
  0x1b   : > { %p1232_p0 = pneg %p1231_p13 }
  0x1d   : > { %p1239_p8 = pnand %p1238_p6, %p1232_p0 }
  0x1f   : > { %1242 = shalt.err (!%p1239_p8)
}
  0x20   : > { %s1351_s22 = smov 128   ;;  %s1352_s23 = smov 8  }
  0x21   : > { %1186 = dma.hbm_to_vmem [thread:$0]  (!%p1416_p5), %s1584_s1, 256, %s1408_s28, [#allocation5], %s1351_s22, %s1351_s22, %s1352_s23  }
  0x22   : > { %s1243_s13 = scalar_lea.hbm %s1583_s0, 256 }
  0x23   : > { %p1244_p9 = scmp.ne.s32.totalorder %s1583_s0, %s1243_s13  ;;  %p1250_p12 = scmp.lt.u32.totalorder %s1243_s13, %s1583_s0 }
  0x25   : > { %p1246_p10 = pnand %p1244_p9, %p1432_p7 }
  0x27   : > { %p1247_p11 = pneg %p1246_p10 }
  0x29   : > { %p1252_p13 = pnand %p1250_p12, %p1247_p11 }
  0x2b   : > { %1255 = shalt.err (!%p1252_p13)
}
  0x2c   : > { %s1256_s28 = scalar_lea.vmem %s1412_s30, 256  ;;  %p1264_p6 = scmp.lt.s32.totalorder %s1412_s30, %s1412_s30 }
  0x2d   : > { %p1257_p0 = scmp.ne.s32.totalorder %s1412_s30, %s1256_s28  ;;  %p1265_p8 = scmp.lt.s32.totalorder %s1256_s28, %s1256_s28 }
  0x2f   : > { %p1259_p1 = pnand %p1257_p0, %p1432_p7  ;;  %p1266_p9 = por %p1265_p8, %p1264_p6 }
  0x31   : > { %p1260_p4 = pneg %p1259_p1 }
  0x33   : > { %p1267_p10 = pnand %p1266_p9, %p1260_p4 }
  0x35   : > { %1270 = shalt.err (!%p1267_p10)
}
  0x36   : > { %1183 = dma.hbm_to_vmem [thread:$0]  (!%p1416_p5), %s1583_s0, 256, %s1412_s30, [#allocation3], %s1351_s22, %s1351_s22, %s1352_s23  }
  0x37   : > { %s1271_s29 = scalar_lea.hbm %s1585_s2, 256 }
  0x38   : > { %p1272_p11 = scmp.ne.s32.totalorder %s1585_s2, %s1271_s29  ;;  %p1278_p0 = scmp.lt.u32.totalorder %s1271_s29, %s1585_s2 }
  0x3a   : > { %p1274_p12 = pnand %p1272_p11, %p1432_p7 }
  0x3c   : > { %p1275_p13 = pneg %p1274_p12 }
  0x3e   : > { %p1280_p1 = pnand %p1278_p0, %p1275_p13 }
  0x40   : > { %1283 = shalt.err (!%p1280_p1)
}
  0x41   : > { %s1284_s30 = scalar_lea.vmem %s1420_s10, 256  ;;  %p1292_p9 = scmp.lt.s32.totalorder %s1420_s10, %s1420_s10 }
  0x42   : > { %p1285_p4 = scmp.ne.s32.totalorder %s1420_s10, %s1284_s30  ;;  %p1293_p10 = scmp.lt.s32.totalorder %s1284_s30, %s1284_s30 }
  0x44   : > { %p1287_p6 = pnand %p1285_p4, %p1432_p7  ;;  %p1294_p11 = por %p1293_p10, %p1292_p9 }
  0x46   : > { %p1288_p8 = pneg %p1287_p6 }
  0x48   : > { %p1295_p12 = pnand %p1294_p11, %p1288_p8 }
  0x4a   : > { %1298 = shalt.err (!%p1295_p12)
}
  0x4b   : > { %1189 = dma.hbm_to_vmem [thread:$0]  (!%p1416_p5), %s1585_s2, 256, %s1420_s10, [#allocation5], %s1351_s22, %s1351_s22, %s1352_s23  }
  0x4c   : > { %s1299_s19 = scalar_lea.hbm %s1586_s3, 256 }
  0x4d   : > { %p1300_p13 = scmp.ne.s32.totalorder %s1586_s3, %s1299_s19  ;;  %p1306_p4 = scmp.lt.u32.totalorder %s1299_s19, %s1586_s3 }
  0x4f   : > { %p1302_p0 = pnand %p1300_p13, %p1432_p7 }
  0x51   : > { %p1303_p1 = pneg %p1302_p0 }
  0x53   : > { %p1308_p6 = pnand %p1306_p4, %p1303_p1 }
  0x55   : > { %1311 = shalt.err (!%p1308_p6)
}
  0x56   : > { %s1312_s9 = scalar_lea.vmem %s266_s12, 256  ;;  %p1320_p11 = scmp.lt.s32.totalorder %s266_s12, %s266_s12 }
  0x57   : > { %p1313_p8 = scmp.ne.s32.totalorder %s266_s12, %s1312_s9  ;;  %p1321_p12 = scmp.lt.s32.totalorder %s1312_s9, %s1312_s9 }
  0x59   : > { %p1315_p9 = pnand %p1313_p8, %p1432_p7  ;;  %p1322_p2 = por %p1321_p12, %p1320_p11 }
  0x5b   : > { %p1316_p10 = pneg %p1315_p9 }
  0x5d   : > { %p1323_p3 = pnand %p1322_p2, %p1316_p10 }
  0x5f   : > { %1326 = shalt.err (!%p1323_p3)
}
  0x60   : > { %1192 = dma.hbm_to_vmem [thread:$0]  (!%p1416_p5), %s1586_s3, 256, %s266_s12, [#allocation8], %s1351_s22, %s1351_s22, %s1352_s23  }
  0x61   : > { %p1596_p13 = scmp.ne.s32.totalorder %s1593_s26, 0 }
  0x62   : > { %p1597_p7 = scmp.eq.s32.totalorder (!%p1596_p13), %s1399_s25, 0 }
  0x63   : > { %297 = sbr.rel (%p1596_p13) target bundleno = 568 (0x238), region = 44 }
  0x6a   : > { %1332 = dma.done.wait (%p1597_p7), [#allocation3], 256   ;;  %p1598_p0 = pmov %p1597_p7 }
  0x6c   : > { %1334 = vsyncadd (%p1598_p0), [#allocation3], 4294967040  ;;  %p1599_p2 = pmov %p1598_p0 }
  0x6d   : > { %p1600_p3 = pmov %p1598_p0 }
  0x6e   : > { %1336 = dma.done.wait (%p1599_p2), [#allocation5], 512  }
  0x6f   : > { %1338 = vsyncadd (%p1600_p3), [#allocation5], 4294966784  ;;  %p1601_p1 = pmov %p1598_p0 }
  0x70   : > { %p1602_p5 = pmov %p1598_p0 }
  0x71   : > { %1340 = dma.done.wait (%p1601_p1), [#allocation8], 256  }
  0x72   : > { %1342 = vsyncadd (%p1602_p5), [#allocation8], 4294967040  ;;  %p351_p4 = scmp.lt.s32.totalorder %s1399_s25, 3  ;;  %vm383_vm0 = vcmask 130048   ;;  %v379_v0 = vld [vmem:[#allocation6] sm:$0xff]  ;;  %v380_v1 = vld [vmem:[#allocation6 + $0x8] sm:$0xff] }
  0x73   : > { %v381_v2 = vld [vmem:[#allocation7] sm:$0xff]  ;;  %v1140_v3 = vpack.c.bf16 %v380_v1, %v379_v0  ;;  %v382_v4 = vld [vmem:[#allocation7 + $0x8] sm:$0xff]  ;;  %v375_v15 = vld [vmem:[#allocation2] sm:$0xff] }
  0x74   : > { %s1604_s25 = smov (!%p351_p4, %s1399_s25), 3  ;;  %v548_v5 = vadd.f32 %v381_v2, %v379_v0  ;;  %v1144_v7 = vpack.c.bf16 %v382_v4, %v381_v2  ;;  %v549_v8 = vadd.f32 %v382_v4, %v380_v1  ;;  %v377_v16 = vld [vmem:[#allocation4] sm:$0xff]  ;;  %v376_v31 = vld [vmem:[#allocation2 + $0x8] sm:$0xff]  ;;  %v378_v35 = vld [vmem:[#allocation4 + $0x8] sm:$0xff] }
  0x75   : > { %s1546_s26 = sshll.u32 %s1604_s25, 4  ;;  %1141 = vmatprep.subr.bf16.mxu0 %v1140_v3  ;;  %v799_v17 = vadd.f32 %v377_v16, %v375_v15  ;;  %v800_v37 = vadd.f32 %v378_v35, %v376_v31 }
  0x76   : > { %s355_s18 = scalar_lea.vmem %s1587_s4, %s1546_s26  ;;  %s360_s13 = scalar_lea.vmem %s1588_s5, %s1546_s26  ;;  %1145 = vmatprep.subr.bf16.mxu1 %v1144_v7  ;;  %1143 = vmatpush3.bf16.msra.mxu0 %v1140_v3  ;;  %v1148_v11 = vpack.c.bf16 %v549_v8, %v548_v5 }
  0x77   : > { %v371_v6 = vld [vmem:[%s355_s18] sm:$0xff]  ;;  %v372_v10 = vld [vmem:[%s355_s18 + $0x8] sm:$0xff]  ;;  %1147 = vmatpush3.bf16.msra.mxu1 %v1144_v7  ;;  %s365_s30 = scalar_lea.vmem %s1589_s6, %s1546_s26  ;;  %s370_s17 = scalar_lea.vmem %s1590_s7, %s1546_s26 }
  0x78   : > { %1102 = vmatprep.mubr.msk.f32.mxu0 %vm383_vm0, %v371_v6  ;;  %v373_v9 = vld [vmem:[%s360_s13] sm:$0xff]  ;;  %v374_v12 = vld [vmem:[%s360_s13 + $0x8] sm:$0xff]  ;;  %1149 = vmatprep.subr.bf16.mxu0 %v1148_v11 }
  0x79   : > { %1109 = vmatprep.mubr.msk.f32.mxu1 %vm383_vm0, %v373_v9  ;;  %v546_v13 = vadd.f32 %v373_v9, %v371_v6  ;;  %v547_v14 = vadd.f32 %v374_v12, %v372_v10  ;;  %1103 = vmatmul.mubr.msk.f32.vlgmr.msra.gmra.mrb[0].mxu0 %vm383_vm0, %v372_v10 }
  0x7a   : > { %1110 = vmatmul.mubr.msk.f32.vlgmr.msra.gmra.mrb[0].mxu1 %vm383_vm0, %v374_v12  ;;  %1151 = vmatpush3.bf16.msra.mxu0 %v1148_v11 }
  0x7b   : > { %1116 = vmatprep.mubr.msk.f32.mxu0 %vm383_vm0, %v546_v13  ;;  %1123 = vmatprep.mubr.msk.f32.mxu1 %vm383_vm0, %v375_v15 }
  0x7d   : > { %1117 = vmatmul.mubr.msk.f32.vlgmr.msra.gmra.mrb[2].mxu0 %vm383_vm0, %v547_v14 }
  0x7e   : > { %1130 = vmatprep.mubr.msk.f32.mxu0 %vm383_vm0, %v377_v16 }
 0x14c   : > { %v1104_v18 = vpop.f32.mrb[0].mxu0 }
 0x14d   : > { %v1111_v19 = vpop.f32.mrb[0].mxu1  ;;  %v456_v20 = vpop.f32.mrb[1].mxu0 }
 0x14e   : > { %v632_v21 = vsub.f32 %v1104_v18, %v1111_v19  ;;  %v537_v22 = vpop.f32.mrb[1].mxu1 }
 0x14f   : > { %v631_v23 = vsub.f32 %v456_v20, %v537_v22 }
 0x150   : > { %v1118_v24 = vpop.f32.mrb[2].mxu0 }
 0x151   : > { %v1152_v25 = vpack.c.bf16 %v632_v21, %v631_v23  ;;  %v634_v26 = vsub.f32 %v1118_v24, %v1104_v18  ;;  %v622_v27 = vpop.f32.mrb[3].mxu0 }
 0x152   : > { %v633_v28 = vsub.f32 %v622_v27, %v456_v20 }
 0x153   : > { %v636_v29 = vsub.f32 %v634_v26, %v1111_v19  ;;  %1153 = vmatprep.subr.bf16.mxu1 %v1152_v25 }
 0x154   : > { %v635_v30 = vsub.f32 %v633_v28, %v537_v22  ;;  %1155 = vmatpush3.bf16.msra.mxu1 %v1152_v25 }
 0x155   : > { %v802_v32 = vadd.f32 %v636_v29, %v632_v21 }
 0x156   : > { %v801_v33 = vadd.f32 %v635_v30, %v631_v23  ;;  %v1156_v34 = vpack.c.bf16 %v636_v29, %v635_v30 }
 0x157   : > { %1124 = vmatmul.mubr.msk.f32.vlgmr.msra.gmra.mrb[2].mxu1 %vm383_vm0, %v376_v31 }
 0x158   : > { %1157 = vmatprep.subr.bf16.mxu0 %v1156_v34  ;;  %v1160_v36 = vpack.c.bf16 %v802_v32, %v801_v33  ;;  %1137 = vmatprep.mubr.msk.f32.mxu1 %vm383_vm0, %v799_v17 }
 0x159   : > { %1159 = vmatpush3.bf16.msra.mxu0 %v1156_v34 }
 0x15a   : > { %1161 = vmatprep.subr.bf16.mxu1 %v1160_v36 }
 0x15b   : > { %1163 = vmatpush3.bf16.msra.mxu1 %v1160_v36 }
 0x15c   : > { %1131 = vmatmul.mubr.msk.f32.vlgmr.msra.gmra.mrb[4].mxu0 %vm383_vm0, %v378_v35 }
 0x15e   : > { %1138 = vmatmul.mubr.msk.f32.vlgmr.msra.gmra.mrb[4].mxu1 %vm383_vm0, %v800_v37 }
 0x22a   : > { %v1125_v38 = vpop.f32.mrb[2].mxu1 }
 0x22b   : > { %v709_v39 = vpop.f32.mrb[3].mxu1 }
 0x22f   : > { %v1132_v40 = vpop.f32.mrb[4].mxu0 }
 0x230   : > { %v885_v41 = vsub.f32 %v1125_v38, %v1132_v40  ;;  %v790_v42 = vpop.f32.mrb[5].mxu0 }
 0x231   : > { %v884_v43 = vsub.f32 %v709_v39, %v790_v42  ;;  %v1139_v44 = vpop.f32.mrb[4].mxu1 }
 0x232   : > { %891 = vst.msk [vmem:[%s365_s30 + $0x8] sm:$0xff] %vm383_vm0, %v885_v41  ;;  %v887_v45 = vsub.f32 %v1139_v44, %v1125_v38  ;;  %v875_v46 = vpop.f32.mrb[5].mxu1 }
 0x233   : > { %890 = vst.msk [vmem:[%s365_s30] sm:$0xff] %vm383_vm0, %v884_v43  ;;  %v886_v47 = vsub.f32 %v875_v46, %v709_v39 }
 0x234   : > { %v889_v48 = vsub.f32 %v887_v45, %v1132_v40 }
 0x235   : > { %v888_v49 = vsub.f32 %v886_v47, %v790_v42 }
 0x236   : > { %893 = vst.msk [vmem:[%s370_s17 + $0x8] sm:$0xff] %vm383_vm0, %v889_v48 }
 0x237   : > { %892 = vst.msk [vmem:[%s370_s17] sm:$0xff] %vm383_vm0, %v888_v49 }
 0x238 PF: > { %s21_s24 = sadd.s32 1, %s1345_s24  }
 0x239   : > { %p18_p6 = scmp.ge.s32.totalorder %s21_s24, 6  }
 0x23b   :  { %20 = sbr.rel (!%p18_p6) target bundleno = 3 (0x3), region = 106 }
 0x242   :  { %931 = vsyncpa [#allocation3], 1 }
 0x243   :  { %933 = vsyncpa [#allocation3 + $0x1], 1 }
 0x244   :  { %934 = vsyncpa [#allocation5], 1 }
 0x245   :  { %935 = vsyncpa [#allocation8], 1 }

// kernel: forward.21
= control target key start
LH: loop header
LB: loop body
LE: loop exit
PB: predicated region body
PF: predicated region fallthrough
CT: control target
= control target key end

     0   :  { %s596_s12 = smov 0   ;;  %s598_s13 = smov 0   ;;  %s693_s0 = inlined_call_operand.vmem [shape: f32[4,18,256], index: 0, kind: input, shape index: {}]   ;;  %s694_s1 = inlined_call_operand.vmem [shape: f32[8,18], index: 1, kind: input, shape index: {}]   ;;  %s695_s2 = inlined_call_operand.vmem [shape: f32[8,1], index: 2, kind: input, shape index: {}]   ;;  %s696_s3 = inlined_call_operand.vmem [shape: f32[4,8,256], index: 3, kind: output, shape index: {}]  }
   0x1   :  { %s600_s14 = smov 0   ;;  %s602_s15 = smov 0  }
   0x2   :  { %s604_s16 = smov 0   ;;  %s606_s17 = smov 0  }
   0x3   :  { %s608_s18 = smov 0  }
   0x4 LB: > { %s22_s19 = sadd.s32 1, %s562_s16  ;;  %s25_s20 = sadd.s32 1, %s566_s17  ;;  %s570_s18 = sphi %s608_s18, %s13_s18   ;;  %s566_s17 = sphi %s606_s17, %s702_s17   ;;  %s562_s16 = sphi %s604_s16, %s701_s16   ;;  %s558_s15 = sphi %s602_s15, %s700_s15   ;;  %s554_s14 = sphi %s600_s14, %s699_s14   ;;  %s550_s13 = sphi %s598_s13, %s698_s13   ;;  %s546_s12 = sphi %s596_s12, %s697_s12  }
   0x5   : > { %p23_p0 = scmp.ge.s32.totalorder %s22_s19, 2  ;;  %p41_p1 = scmp.ne.s32.totalorder %s550_s13, %s546_s12 }
   0x6   : > { %p42_p2 = scmp.eq.s32.totalorder %s570_s18, 0  ;;  %s34_s24 = sadd.s32 1, %s550_s13 }
   0x7   : > { %s704_s19 = smov (%p23_p0, %s22_s19), 0  ;;  %s706_s20 = smov (!%p23_p0, %s25_s20), %s566_s17 }
   0x8   : > { %p43_p3 = por %p42_p2, %p41_p1  ;;  %p27_p4 = scmp.ge.s32.totalorder %s706_s20, 4 }
   0x9   : > { %s30_s21 = ssub.s32 %s562_s16, %s704_s19  ;;  %p423_p6 = scmp.ge.s32.totalorder %s570_s18, 8 }
   0xa   : > { %s708_s20 = smov (%p27_p4, %s706_s20), 0 }
   0xb   : > { %s29_s22 = ssub.s32 %s566_s17, %s708_s20  ;;  %143 = sbr.rel (%p423_p6) target bundleno = 27 (0x1b), region = 24 }
   0xc   : > { %s31_s23 = sor.u32 %s30_s21, %s29_s22 }
   0xd   : > { %p32_p5 = scmp.eq.s32.totalorder %s31_s23, 0 }
   0xf   : > { %s647_s25 = scalar_select %p32_p5, %s550_s13, %s34_s24  }
  0x12   : > { %146 = sbr.rel (!%p43_p3) target bundleno = 27 (0x1b), region = 28  ;;  %s148_s26 = sand.u32 (%p43_p3), 1, %s550_s13  }
  0x13   : > { %s449_s27 = smul.u32 (%p43_p3), 6, %s566_s17 }
  0x14   : > { %s448_s28 = smul.u32 (%p43_p3), 24, %s148_s26 }
  0x15   : > { %s152_s29 = sadd.s32 (%p43_p3), %s562_s16, %s449_s27 }
  0x16   : > { %s424_s30 = sshll.u32 (%p43_p3), %s152_s29, 3  ;;  %s150_s7 = scalar_lea.vmem (%p43_p3), [#allocation2], %s448_s28 }
  0x17   : > { %s154_s6 = scalar_lea.vmem (%p43_p3), %s693_s0, %s424_s30 }
  0x18   : > { %v186_v0 = vld [vmem:[%s154_s6] sm:$0xff] (%p43_p3)  ;;  %v188_v1 = vld [vmem:[%s154_s6 + $0x10] sm:$0xff] (%p43_p3) }
  0x19   : > { %v190_v2 = vld [vmem:[%s154_s6 + $0x20] sm:$0xff]  ;;  %187 = vst [vmem:[%s150_s7] sm:$0xff] %v186_v0  ;;  %189 = vst [vmem:[%s150_s7 + $0x8] sm:$0xff] %v188_v1 }
  0x1a   : > { %191 = vst [vmem:[%s150_s7 + $0x10] sm:$0xff] %v190_v2 }
  0x1b PF: > { %p425_p7 = scmp.ge.s32.totalorder %s570_s18, 1  ;;  %p196_p8 = scmp.lt.s32.totalorder %s570_s18, 9 }
  0x1d   : > { %p197_p9 = pnand %p425_p7, %p196_p8 }
  0x1e   : > { %s203_s8 = sand.u32 (!%p197_p9), 1, %s546_s12   ;;  %v572_v3 = vmov (!%p197_p9), 0.0|0.0   ;;  %vm573_vm0 = vmmov (!%p197_p9), 0   ;;  %v574_v4 = vmov (!%p197_p9), 0.0   ;;  %v241_v5 = vld [vmem:[%s695_s2] sm:$0xff] (!%p197_p9)  ;;  %v575_v6 = vmov (!%p197_p9), 0  }
  0x1f   : > { %200 = sbr.rel (%p197_p9) target bundleno = 288 (0x120), region = 66  ;;  %445 = vmatprep.subr.bf16.mxu0 (!%p197_p9), %v572_v3  ;;  %442 = vmatprep.mubr.msk.f32.mxu0 (!%p197_p9), %vm573_vm0, %v574_v4  ;;  %vm251_vm1 = vcmask (!%p197_p9), 1041408   ;;  %v237_v11 = vld [vmem:[%s694_s1] sm:$0xff] (!%p197_p9)  ;;  %vm247_vm2 = vcmask (!%p197_p9), 146432   ;;  %p229_p10 = scmp.lt.s32.totalorder (!%p197_p9), %s558_s15, 3 }
  0x20   : > { %s450_s9 = smul.u32 (!%p197_p9), 24, %s203_s8  ;;  %511 = vset.pattern.permute.xlu0 (!%p197_p9), %v575_v6  ;;  %p231_p11 = scmp.lt.s32.totalorder (!%p197_p9), %s554_s14, 1 }
  0x21   : > { %244 = vperm.xlu0 (!%p197_p9), %511, %v241_v5  }
  0x22   : > { %s205_s21 = scalar_lea.vmem (!%p197_p9), [#allocation2], %s450_s9 }
  0x23   : > { %v238_v7 = vld [vmem:[%s205_s21] sm:$0xff] (!%p197_p9)  ;;  %v239_v8 = vld [vmem:[%s205_s21 + $0x8] sm:$0xff] (!%p197_p9)  ;;  %v240_v10 = vld [vmem:[%s205_s21 + $0x10] sm:$0x3] (!%p197_p9) }
  0x24   : > { %v446_v9 = vpack.c.bf16 (!%p197_p9), %v239_v8, %v238_v7 }
  0x26   : > { %447 = vmatpush3.bf16.msra.mxu0 %v446_v9  ;;  %s710_s15 = smov (!%p229_p10, %s558_s15), 3  ;;  %s712_s14 = smov (!%p231_p11, %s554_s14), 1 }
  0x27   : > { %440 = vmatprep.subr.mxu0 %v574_v4  ;;  %s426_s23 = sshll.u32 %s710_s15, 1 }
  0x28   : > { %s234_s24 = sadd.s32 %s426_s23, %s712_s14 }
  0x29   : > { %s427_s26 = sshll.u32 %s234_s24, 3 }
  0x2a   : > { %441 = vmatpush3.msk.msra.mxu0 %vm251_vm1, %v240_v10  ;;  %s236_s29 = scalar_lea.vmem %s696_s3, %s427_s26 }
  0x2b   : > { %443 = vmatmul.mubr.msk.f32.vlgmr.msra.gmra.mrb[0].mxu0 %vm247_vm2, %v237_v11 }
  0xa0   : > { %v245_v12 = vpop.permute.xlu0 %244 }
  0xfe   : > { %v321_v13 = vpop.f32.mrb[0].mxu0 }
  0xff   : > { %v322_v14 = vadd.f32 %v321_v13, %v245_v12  ;;  %v444_v15 = vpop.f32.mrb[1].mxu0 }
 0x101   : > { %v325_v16 = vsub.f32 0.0, %v322_v14 }
 0x103   : > { %v326_v17 = vmul.f32 1.442695, %v325_v16 }
 0x105   : > { %512 = vpow2.f32 %v326_v17 }
 0x10f   : > { %v513_v18 = vpop.eup %512 }
 0x110   : > { %v328_v19 = vadd.f32 1.0, %v513_v18 }
 0x112   : > { %514 = vrcp.f32 %v328_v19 }
 0x11c   : > { %v515_v20 = vpop.eup %514 }
 0x11d   : > { %v330_v21 = vmul.f32 %v515_v20, %v322_v14 }
 0x11f   : > { %331 = vst [vmem:[%s236_s29] sm:$0xff] %v330_v21 }
 0x120 PF: > { %s13_s18 = sadd.s32 1, %s570_s18   ;;  %s697_s12 = smov %s550_s13 }
 0x121   : > { %p10_p12 = scmp.ge.s32.totalorder %s13_s18, 10   ;;  %s698_s13 = smov %s647_s25 }
 0x122   : > { %s699_s14 = smov %s562_s16  ;;  %s700_s15 = smov %s566_s17 }
 0x123   : > { %s701_s16 = smov %s704_s19  ;;  %s702_s17 = smov %s708_s20 }
 0x124   :  { %12 = sbr.rel (!%p10_p12) target bundleno = 4 (0x4), region = 105 }

// kernel: forward.22
= control target key start
LH: loop header
LB: loop body
LE: loop exit
PB: predicated region body
PF: predicated region fallthrough
CT: control target
= control target key end

     0   :  { %s648_s12 = smov 0   ;;  %s650_s13 = smov 0   ;;  %s745_s0 = inlined_call_operand.vmem [shape: f32[4,72,256], index: 0, kind: input, shape index: {}]   ;;  %s746_s1 = inlined_call_operand.vmem [shape: f32[8,72], index: 1, kind: input, shape index: {}]   ;;  %s747_s2 = inlined_call_operand.vmem [shape: f32[8,1], index: 2, kind: input, shape index: {}]   ;;  %s748_s3 = inlined_call_operand.vmem [shape: f32[4,8,256], index: 3, kind: output, shape index: {}]  }
   0x1   :  { %s652_s14 = smov 0   ;;  %s654_s15 = smov 0  }
   0x2   :  { %s656_s16 = smov 0   ;;  %s658_s17 = smov 0  }
   0x3   :  { %s660_s18 = smov 0  }
   0x4 LB: > { %s22_s19 = sadd.s32 1, %s614_s16  ;;  %s25_s20 = sadd.s32 1, %s618_s17  ;;  %s622_s18 = sphi %s660_s18, %s13_s18   ;;  %s618_s17 = sphi %s658_s17, %s754_s17   ;;  %s614_s16 = sphi %s656_s16, %s753_s16   ;;  %s610_s15 = sphi %s654_s15, %s752_s15   ;;  %s606_s14 = sphi %s652_s14, %s751_s14   ;;  %s602_s13 = sphi %s650_s13, %s750_s13   ;;  %s598_s12 = sphi %s648_s12, %s749_s12  }
   0x5   : > { %p23_p0 = scmp.ge.s32.totalorder %s22_s19, 2  ;;  %p41_p1 = scmp.ne.s32.totalorder %s602_s13, %s598_s12 }
   0x6   : > { %p42_p2 = scmp.eq.s32.totalorder %s622_s18, 0  ;;  %s34_s24 = sadd.s32 1, %s602_s13 }
   0x7   : > { %s756_s19 = smov (%p23_p0, %s22_s19), 0  ;;  %s758_s20 = smov (!%p23_p0, %s25_s20), %s618_s17 }
   0x8   : > { %p43_p3 = por %p42_p2, %p41_p1  ;;  %p27_p4 = scmp.ge.s32.totalorder %s758_s20, 4 }
   0x9   : > { %s30_s21 = ssub.s32 %s614_s16, %s756_s19  ;;  %p449_p6 = scmp.ge.s32.totalorder %s622_s18, 8 }
   0xa   : > { %s760_s20 = smov (%p27_p4, %s758_s20), 0 }
   0xb   : > { %s29_s22 = ssub.s32 %s618_s17, %s760_s20  ;;  %143 = sbr.rel (%p449_p6) target bundleno = 30 (0x1e), region = 24 }
   0xc   : > { %s31_s23 = sor.u32 %s30_s21, %s29_s22 }
   0xd   : > { %p32_p5 = scmp.eq.s32.totalorder %s31_s23, 0 }
   0xf   : > { %s699_s25 = scalar_select %p32_p5, %s602_s13, %s34_s24  }
  0x12   : > { %146 = sbr.rel (!%p43_p3) target bundleno = 30 (0x1e), region = 28  ;;  %s148_s26 = sand.u32 (%p43_p3), 1, %s602_s13  }
  0x13   : > { %s501_s27 = smul.u32 (%p43_p3), 18, %s618_s17 }
  0x14   : > { %s500_s28 = smul.u32 (%p43_p3), 72, %s148_s26 }
  0x15   : > { %s152_s29 = sadd.s32 (%p43_p3), %s614_s16, %s501_s27 }
  0x16   : > { %s450_s30 = sshll.u32 (%p43_p3), %s152_s29, 3  ;;  %s150_s7 = scalar_lea.vmem (%p43_p3), [#allocation2], %s500_s28 }
  0x17   : > { %s154_s6 = scalar_lea.vmem (%p43_p3), %s745_s0, %s450_s30 }
  0x18   : > { %v198_v0 = vld [vmem:[%s154_s6] sm:$0xff] (%p43_p3)  ;;  %v200_v1 = vld [vmem:[%s154_s6 + $0x10] sm:$0xff] (%p43_p3) }
  0x19   : > { %v202_v2 = vld [vmem:[%s154_s6 + $0x20] sm:$0xff]  ;;  %199 = vst [vmem:[%s150_s7] sm:$0xff] %v198_v0  ;;  %201 = vst [vmem:[%s150_s7 + $0x8] sm:$0xff] %v200_v1  ;;  %v204_v3 = vld [vmem:[%s154_s6 + $0x30] sm:$0xff] }
  0x1a   : > { %203 = vst [vmem:[%s150_s7 + $0x10] sm:$0xff] %v202_v2  ;;  %v206_v4 = vld [vmem:[%s154_s6 + $0x40] sm:$0xff]  ;;  %v208_v5 = vld [vmem:[%s154_s6 + $0x50] sm:$0xff]  ;;  %205 = vst [vmem:[%s150_s7 + $0x18] sm:$0xff] %v204_v3 }
  0x1b   : > { %207 = vst [vmem:[%s150_s7 + $0x20] sm:$0xff] %v206_v4  ;;  %209 = vst [vmem:[%s150_s7 + $0x28] sm:$0xff] %v208_v5  ;;  %v210_v6 = vld [vmem:[%s154_s6 + $0x60] sm:$0xff]  ;;  %v212_v7 = vld [vmem:[%s154_s6 + $0x70] sm:$0xff] }
  0x1c   : > { %v214_v8 = vld [vmem:[%s154_s6 + $0x80] sm:$0xff]  ;;  %211 = vst [vmem:[%s150_s7 + $0x30] sm:$0xff] %v210_v6  ;;  %213 = vst [vmem:[%s150_s7 + $0x38] sm:$0xff] %v212_v7 }
  0x1d   : > { %215 = vst [vmem:[%s150_s7 + $0x40] sm:$0xff] %v214_v8 }
  0x1e PF: > { %p451_p7 = scmp.ge.s32.totalorder %s622_s18, 1  ;;  %p220_p8 = scmp.lt.s32.totalorder %s622_s18, 9 }
  0x20   : > { %p221_p9 = pnand %p451_p7, %p220_p8 }
  0x21   : > { %s227_s8 = sand.u32 (!%p221_p9), 1, %s598_s12   ;;  %v624_v9 = vmov (!%p221_p9), 0.0|0.0   ;;  %vm625_vm0 = vmmov (!%p221_p9), 0   ;;  %v626_v10 = vmov (!%p221_p9), 0.0   ;;  %v271_v11 = vld [vmem:[%s747_s2] sm:$0xff] (!%p221_p9)  ;;  %v627_v12 = vmov (!%p221_p9), 0  }
  0x22   : > { %224 = sbr.rel (%p221_p9) target bundleno = 303 (0x12f), region = 66  ;;  %488 = vmatprep.subr.bf16.mxu0 (!%p221_p9), %v624_v9  ;;  %485 = vmatprep.mubr.msk.f32.mxu0 (!%p221_p9), %vm625_vm0, %v626_v10  ;;  %v261_v26 = vld [vmem:[%s746_s1] sm:$0xff] (!%p221_p9)  ;;  %vm277_vm1 = vcmask (!%p221_p9), 588800   ;;  %p253_p10 = scmp.lt.s32.totalorder (!%p221_p9), %s610_s15, 3 }
  0x23   : > { %s502_s9 = smul.u32 (!%p221_p9), 72, %s227_s8  ;;  %563 = vset.pattern.permute.xlu0 (!%p221_p9), %v627_v12  ;;  %p255_p11 = scmp.lt.s32.totalorder (!%p221_p9), %s606_s14, 1 }
  0x24   : > { %274 = vperm.xlu0 (!%p221_p9), %563, %v271_v11  }
  0x25   : > { %s229_s21 = scalar_lea.vmem (!%p221_p9), [#allocation2], %s502_s9 }
  0x26   : > { %v262_v13 = vld [vmem:[%s229_s21] sm:$0xff] (!%p221_p9)  ;;  %v263_v14 = vld [vmem:[%s229_s21 + $0x8] sm:$0xff] (!%p221_p9)  ;;  %v264_v15 = vld [vmem:[%s229_s21 + $0x10] sm:$0xff] (!%p221_p9) }
  0x27   : > { %v489_v16 = vpack.c.bf16 (!%p221_p9), %v263_v14, %v262_v13  ;;  %v265_v17 = vld [vmem:[%s229_s21 + $0x18] sm:$0xff] (!%p221_p9)  ;;  %v266_v19 = vld [vmem:[%s229_s21 + $0x20] sm:$0xff] (!%p221_p9)  ;;  %v267_v20 = vld [vmem:[%s229_s21 + $0x28] sm:$0xff] (!%p221_p9) }
  0x28   : > { %v492_v18 = vpack.c.bf16 (!%p221_p9), %v265_v17, %v264_v15  ;;  %v495_v21 = vpack.c.bf16 (!%p221_p9), %v267_v20, %v266_v19  ;;  %v268_v22 = vld [vmem:[%s229_s21 + $0x30] sm:$0xff] (!%p221_p9)  ;;  %v269_v23 = vld [vmem:[%s229_s21 + $0x38] sm:$0xff] (!%p221_p9)  ;;  %v270_v25 = vld [vmem:[%s229_s21 + $0x40] sm:$0xff] (!%p221_p9) }
  0x29   : > { %490 = vmatpush3.bf16.msra.mxu0 %v489_v16  ;;  %v498_v24 = vpack.c.bf16 %v269_v23, %v268_v22  ;;  %s762_s15 = smov (!%p253_p10, %s610_s15), 3  ;;  %s764_s14 = smov (!%p255_p11, %s606_s14), 1 }
  0x2a   : > { %491 = vmatprep.subr.bf16.mxu0 %v624_v9  ;;  %s452_s23 = sshll.u32 %s762_s15, 1 }
  0x2b   : > { %s258_s24 = sadd.s32 %s452_s23, %s764_s14 }
  0x2c   : > { %s453_s26 = sshll.u32 %s258_s24, 3 }
  0x2d   : > { %493 = vmatpush3.bf16.msra.mxu0 %v492_v18  ;;  %s260_s29 = scalar_lea.vmem %s748_s3, %s453_s26 }
  0x2e   : > { %494 = vmatprep.subr.bf16.mxu0 %v624_v9 }
  0x31   : > { %496 = vmatpush3.bf16.msra.mxu0 %v495_v21 }
  0x32   : > { %497 = vmatprep.subr.bf16.mxu0 %v624_v9 }
  0x35   : > { %499 = vmatpush3.bf16.msra.mxu0 %v498_v24 }
  0x36   : > { %483 = vmatprep.subr.mxu0 %v626_v10 }
  0x39   : > { %484 = vmatpush3.msra.mxu0 %v270_v25 }
  0x3a   : > { %486 = vmatmul.mubr.msk.f32.vlgmr.msra.gmra.mrb[0].mxu0 %vm277_vm1, %v261_v26 }
  0xa3   : > { %v275_v27 = vpop.permute.xlu0 %274 }
 0x10d   : > { %v347_v28 = vpop.f32.mrb[0].mxu0 }
 0x10e   : > { %v348_v29 = vadd.f32 %v347_v28, %v275_v27  ;;  %v487_v30 = vpop.f32.mrb[1].mxu0 }
 0x110   : > { %v351_v31 = vsub.f32 0.0, %v348_v29 }
 0x112   : > { %v352_v32 = vmul.f32 1.442695, %v351_v31 }
 0x114   : > { %564 = vpow2.f32 %v352_v32 }
 0x11e   : > { %v565_v33 = vpop.eup %564 }
 0x11f   : > { %v354_v34 = vadd.f32 1.0, %v565_v33 }
 0x121   : > { %566 = vrcp.f32 %v354_v34 }
 0x12b   : > { %v567_v35 = vpop.eup %566 }
 0x12c   : > { %v356_v36 = vmul.f32 %v567_v35, %v348_v29 }
 0x12e   : > { %357 = vst [vmem:[%s260_s29] sm:$0xff] %v356_v36 }
 0x12f PF: > { %s13_s18 = sadd.s32 1, %s622_s18   ;;  %s749_s12 = smov %s602_s13 }
 0x130   : > { %p10_p12 = scmp.ge.s32.totalorder %s13_s18, 10   ;;  %s750_s13 = smov %s699_s25 }
 0x131   : > { %s751_s14 = smov %s614_s16  ;;  %s752_s15 = smov %s618_s17 }
 0x132   : > { %s753_s16 = smov %s756_s19  ;;  %s754_s17 = smov %s760_s20 }
 0x133   :  { %12 = sbr.rel (!%p10_p12) target bundleno = 4 (0x4), region = 105 }

// kernel: mul.13
= control target key start
LH: loop header
LB: loop body
LE: loop exit
PB: predicated region body
PF: predicated region fallthrough
CT: control target
= control target key end

     0   :  { %s37_s8 = smov 122   ;;  %vm7_vm0 = vcmask 15360   ;;  %s38_s9 = smov 124   ;;  %s55_s0 = inlined_call_operand.vmem [shape: f32[8], index: 0, kind: input, shape index: {}]   ;;  %s56_s1 = inlined_call_operand.vmem [shape: f32[4,2], index: 1, kind: output, shape index: {}]  }
   0x1   :  { %v4_v0 = vld [vmem:[%s55_s0] sm:$0x1]  ;;  %s36_s0 = smov 126  }
   0x2   :  { %5 = vst [vmem:[#allocation1] sm:$0x1] %v4_v0 }
   0x9   :  { %v9_v1 = vld [vmem:[#allocation1] sm:$0x1]  }
   0xa   :  { %v21_v2 = vld [vmem:[#allocation1] sm:$0x1]   ;;  %10 = vrot.lane.b32.xlu0 %v9_v1, %s36_s0 }
   0xb   :  { %22 = vrot.lane.b32.xlu1 %v21_v2, %s37_s8  ;;  %v6_v3 = vld [vmem:[#allocation1] sm:$0x1]  }
   0xc   :  { %v15_v4 = vld [vmem:[#allocation1] sm:$0x1]   ;;  %8 = vst.msk [vmem:[#allocation0] sm:$0x1] %vm7_vm0, %v6_v3  }
   0xe   :  { %16 = vrot.lane.b32.xlu0 %v15_v4, %s38_s9 }
  0x7c   :  { %v11_v5 = vpop.permute.xlu0 %10  }
  0x7d   :  { %v23_v6 = vpop.permute.xlu1 %22   ;;  %14 = vst.msk [vmem:[#allocation0 + $0x1] sm:$0x1] %vm7_vm0, %v11_v5  }
  0x7e   :  { %26 = vst.msk [vmem:[#allocation0 + $0x3] sm:$0x1] %vm7_vm0, %v23_v6  }
  0x80   :  { %v17_v7 = vpop.permute.xlu0 %16  }
  0x81   :  { %20 = vst.msk [vmem:[#allocation0 + $0x2] sm:$0x1] %vm7_vm0, %v17_v7  }
  0x88   :  { %v30_v8 = vld [vmem:[#allocation0] sm:$0xf] }
  0x89   :  { %32 = vst [vmem:[%s56_s1] sm:$0xf] %v30_v8 }

// kernel: neg.1
= control target key start
LH: loop header
LB: loop body
LE: loop exit
PB: predicated region body
PF: predicated region fallthrough
CT: control target
= control target key end

     0   :  { %s136_s0 = inlined_call_operand.vmem [shape: f32[1,4,16,16], index: 0, kind: input, shape index: {}]   ;;  %s137_s1 = inlined_call_operand.vmem [shape: f32[1,4,16,16], index: 1, kind: output, shape index: {}]  }
   0x1   :  { %v2_v0 = vld [vmem:[%s136_s0] sm:$0xff]  ;;  %v64_v1 = vld [vmem:[%s136_s0 + $0x10] sm:$0xff]  ;;  %v70_v7 = vld [vmem:[%s136_s0 + $0x8] sm:$0xff] }
   0x2   :  { %v66_v2 = vld [vmem:[%s136_s0 + $0x20] sm:$0xff]  ;;  %v5_v3 = vxor.u32 2147483648, %v2_v0  ;;  %v12_v4 = vxor.u32 2147483648, %v64_v1  ;;  %v68_v6 = vld [vmem:[%s136_s0 + $0x30] sm:$0xff]  ;;  %v72_v8 = vld [vmem:[%s136_s0 + $0x18] sm:$0xff]  ;;  %v36_v10 = vxor.u32 2147483648, %v70_v7 }
   0x3   :  { %v20_v5 = vxor.u32 2147483648, %v66_v2  ;;  %v28_v9 = vxor.u32 2147483648, %v68_v6  ;;  %v44_v11 = vxor.u32 2147483648, %v72_v8  ;;  %v74_v12 = vld [vmem:[%s136_s0 + $0x28] sm:$0xff]  ;;  %v76_v13 = vld [vmem:[%s136_s0 + $0x38] sm:$0xff] }
   0x4   :  { %7 = vst [vmem:[%s137_s1] sm:$0xff] %v5_v3  ;;  %65 = vst [vmem:[%s137_s1 + $0x10] sm:$0xff] %v12_v4  ;;  %v52_v14 = vxor.u32 2147483648, %v74_v12  ;;  %v60_v15 = vxor.u32 2147483648, %v76_v13 }
   0x5   :  { %67 = vst [vmem:[%s137_s1 + $0x20] sm:$0xff] %v20_v5  ;;  %69 = vst [vmem:[%s137_s1 + $0x30] sm:$0xff] %v28_v9 }
   0x6   :  { %71 = vst [vmem:[%s137_s1 + $0x8] sm:$0xff] %v36_v10  ;;  %73 = vst [vmem:[%s137_s1 + $0x18] sm:$0xff] %v44_v11 }
   0x7   :  { %75 = vst [vmem:[%s137_s1 + $0x28] sm:$0xff] %v52_v14  ;;  %77 = vst [vmem:[%s137_s1 + $0x38] sm:$0xff] %v60_v15 }

// kernel: forward.24
= control target key start
LH: loop header
LB: loop body
LE: loop exit
PB: predicated region body
PF: predicated region fallthrough
CT: control target
= control target key end

     0   :  { %vm53_vm0 = vcmask 130048   ;;  %s259_s0 = inlined_call_operand.vmem [shape: f32[1,4,16,16], index: 0, kind: input, shape index: {}]   ;;  %s260_s1 = inlined_call_operand.vmem [shape: f32[1,4,16,16], index: 1, kind: input, shape index: {}]   ;;  %s261_s2 = inlined_call_operand.vmem [shape: f32[1,4,16,16], index: 2, kind: output, shape index: {0}]   ;;  %s262_s3 = inlined_call_operand.vmem [shape: f32[1,4,16,16], index: 3, kind: output, shape index: {1}]  }
   0x1   :  { %v13_v0 = vld [vmem:[%s259_s0] sm:$0xff]  ;;  %v15_v1 = vld [vmem:[%s259_s0 + $0x10] sm:$0xff]  ;;  %v161_v14 = vld [vmem:[%s259_s0 + $0x8] sm:$0xff] }
   0x2   :  { %v17_v2 = vld [vmem:[%s259_s0 + $0x20] sm:$0xff]  ;;  %v19_v3 = vld [vmem:[%s259_s0 + $0x30] sm:$0xff]  ;;  %v29_v6 = vmul.f32 %v13_v0, %v13_v0  ;;  %v31_v7 = vmul.f32 %v15_v1, %v15_v1  ;;  %v16_v17 = vld [vmem:[%s259_s0 + $0x18] sm:$0xff]  ;;  %v30_v20 = vmul.f32 %v161_v14, %v161_v14 }
   0x3   :  { %v21_v4 = vld [vmem:[%s260_s1] sm:$0xff]  ;;  %v23_v5 = vld [vmem:[%s260_s1 + $0x10] sm:$0xff]  ;;  %v33_v8 = vmul.f32 %v17_v2, %v17_v2  ;;  %v35_v11 = vmul.f32 %v19_v3, %v19_v3  ;;  %v18_v18 = vld [vmem:[%s259_s0 + $0x28] sm:$0xff]  ;;  %v32_v26 = vmul.f32 %v16_v17, %v16_v17 }
   0x4   :  { %v25_v9 = vld [vmem:[%s260_s1 + $0x20] sm:$0xff]  ;;  %v27_v10 = vld [vmem:[%s260_s1 + $0x30] sm:$0xff]  ;;  %v37_v12 = vmul.f32 %v21_v4, %v21_v4  ;;  %v39_v13 = vmul.f32 %v23_v5, %v23_v5  ;;  %v20_v19 = vld [vmem:[%s259_s0 + $0x38] sm:$0xff]  ;;  %v34_v27 = vmul.f32 %v18_v18, %v18_v18 }
   0x5   :  { %v41_v15 = vmul.f32 %v25_v9, %v25_v9  ;;  %v43_v16 = vmul.f32 %v27_v10, %v27_v10  ;;  %v22_v23 = vld [vmem:[%s260_s1 + $0x8] sm:$0xff]  ;;  %v24_v24 = vld [vmem:[%s260_s1 + $0x18] sm:$0xff]  ;;  %v36_v31 = vmul.f32 %v20_v19, %v20_v19 }
   0x6   :  { %v45_v21 = vadd.f32 %v37_v12, %v29_v6  ;;  %v47_v22 = vadd.f32 %v39_v13, %v31_v7  ;;  %v26_v25 = vld [vmem:[%s260_s1 + $0x28] sm:$0xff]  ;;  %v28_v30 = vld [vmem:[%s260_s1 + $0x38] sm:$0xff]  ;;  %v38_v32 = vmul.f32 %v22_v23, %v22_v23  ;;  %v40_v35 = vmul.f32 %v24_v24, %v24_v24 }
   0x7   :  { %v49_v28 = vadd.f32 %v41_v15, %v33_v8  ;;  %v51_v29 = vadd.f32 %v43_v16, %v35_v11  ;;  %v42_v36 = vmul.f32 %v26_v25, %v26_v25  ;;  %v44_v39 = vmul.f32 %v28_v30, %v28_v30 }
   0x8   :  { %v54_v33 = vsel %vm53_vm0, %v45_v21, 0.0  ;;  %v55_v34 = vsel %vm53_vm0, %v47_v22, 0.0  ;;  %v46_v41 = vadd.f32 %v38_v32, %v30_v20  ;;  %v48_v42 = vadd.f32 %v40_v35, %v32_v26 }
   0x9   :  { %v56_v37 = vadd.f32 %v55_v34, %v54_v33  ;;  %v57_v38 = vsel %vm53_vm0, %v49_v28, 0.0  ;;  %v59_v40 = vsel %vm53_vm0, %v51_v29, 0.0  ;;  %v50_v43 = vadd.f32 %v42_v36, %v34_v27 }
   0xa   :  { %v52_v45 = vadd.f32 %v44_v39, %v36_v31  ;;  %v61_v46 = vsel %vm53_vm0, %v46_v41, 0.0  ;;  %v62_v47 = vsel %vm53_vm0, %v48_v42, 0.0 }
   0xb   :  { %v58_v44 = vadd.f32 %v57_v38, %v56_v37  ;;  %v64_v48 = vsel %vm53_vm0, %v50_v43, 0.0  ;;  %v63_v50 = vadd.f32 %v62_v47, %v61_v46 }
   0xc   :  { %v66_v51 = vsel %vm53_vm0, %v52_v45, 0.0 }
   0xd   :  { %v60_v49 = vadd.f32 %v59_v40, %v58_v44  ;;  %v65_v52 = vadd.f32 %v64_v48, %v63_v50 }
   0xf   :  { %110 = vrsqrt.f32 %v60_v49  ;;  %v67_v53 = vadd.f32 %v66_v51, %v65_v52 }
  0x11   :  { %112 = vrsqrt.f32 %v67_v53 }
  0x19   :  { %v111_v54 = vpop.eup %110 }
  0x1a   :  { %v70_v55 = vmul.f32 %v111_v54, %v13_v0  ;;  %v72_v56 = vmul.f32 %v111_v54, %v15_v1  ;;  %v74_v57 = vmul.f32 %v111_v54, %v17_v2  ;;  %v76_v58 = vmul.f32 %v111_v54, %v19_v3 }
  0x1b   :  { %v86_v59 = vmul.f32 %v111_v54, %v21_v4  ;;  %v88_v60 = vmul.f32 %v111_v54, %v23_v5  ;;  %v90_v61 = vmul.f32 %v111_v54, %v25_v9  ;;  %v92_v62 = vmul.f32 %v111_v54, %v27_v10  ;;  %v113_v63 = vpop.eup %112 }
  0x1c   :  { %78 = vst.msk [vmem:[%s261_s2] sm:$0xff] %vm53_vm0, %v70_v55  ;;  %80 = vst.msk [vmem:[%s261_s2 + $0x10] sm:$0xff] %vm53_vm0, %v72_v56  ;;  %v71_v0 = vmul.f32 %v113_v63, %v161_v14  ;;  %v73_v1 = vmul.f32 %v113_v63, %v16_v17  ;;  %v75_v2 = vmul.f32 %v113_v63, %v18_v18 }
  0x1d   :  { %82 = vst.msk [vmem:[%s261_s2 + $0x20] sm:$0xff] %vm53_vm0, %v74_v57  ;;  %84 = vst.msk [vmem:[%s261_s2 + $0x30] sm:$0xff] %vm53_vm0, %v76_v58  ;;  %v77_v3 = vmul.f32 %v113_v63, %v20_v19  ;;  %v87_v4 = vmul.f32 %v113_v63, %v22_v23  ;;  %v89_v5 = vmul.f32 %v113_v63, %v24_v24 }
  0x1e   :  { %94 = vst.msk [vmem:[%s262_s3] sm:$0xff] %vm53_vm0, %v86_v59  ;;  %96 = vst.msk [vmem:[%s262_s3 + $0x10] sm:$0xff] %vm53_vm0, %v88_v60  ;;  %v91_v6 = vmul.f32 %v113_v63, %v26_v25  ;;  %v93_v7 = vmul.f32 %v113_v63, %v28_v30 }
  0x1f   :  { %98 = vst.msk [vmem:[%s262_s3 + $0x20] sm:$0xff] %vm53_vm0, %v90_v61  ;;  %100 = vst.msk [vmem:[%s262_s3 + $0x30] sm:$0xff] %vm53_vm0, %v92_v62 }
  0x20   :  { %79 = vst.msk [vmem:[%s261_s2 + $0x8] sm:$0xff] %vm53_vm0, %v71_v0  ;;  %81 = vst.msk [vmem:[%s261_s2 + $0x18] sm:$0xff] %vm53_vm0, %v73_v1 }
  0x21   :  { %83 = vst.msk [vmem:[%s261_s2 + $0x28] sm:$0xff] %vm53_vm0, %v75_v2  ;;  %85 = vst.msk [vmem:[%s261_s2 + $0x38] sm:$0xff] %vm53_vm0, %v77_v3 }
  0x22   :  { %95 = vst.msk [vmem:[%s262_s3 + $0x8] sm:$0xff] %vm53_vm0, %v87_v4  ;;  %97 = vst.msk [vmem:[%s262_s3 + $0x18] sm:$0xff] %vm53_vm0, %v89_v5 }
  0x23   :  { %99 = vst.msk [vmem:[%s262_s3 + $0x28] sm:$0xff] %vm53_vm0, %v91_v6  ;;  %101 = vst.msk [vmem:[%s262_s3 + $0x38] sm:$0xff] %vm53_vm0, %v93_v7 }

// kernel: forward.23
= control target key start
LH: loop header
LB: loop body
LE: loop exit
PB: predicated region body
PF: predicated region fallthrough
CT: control target
= control target key end

     0   :  { %s638_s12 = smov 0   ;;  %s640_s13 = smov 0   ;;  %s735_s0 = inlined_call_operand.vmem [shape: f32[4,72,256], index: 0, kind: input, shape index: {}]   ;;  %s736_s1 = inlined_call_operand.vmem [shape: f32[8,72], index: 1, kind: input, shape index: {}]   ;;  %s737_s2 = inlined_call_operand.vmem [shape: f32[8,1], index: 2, kind: input, shape index: {}]   ;;  %s738_s3 = inlined_call_operand.vmem [shape: f32[4,8,256], index: 3, kind: output, shape index: {}]  }
   0x1   :  { %s642_s14 = smov 0   ;;  %s644_s15 = smov 0  }
   0x2   :  { %s646_s16 = smov 0   ;;  %s648_s17 = smov 0  }
   0x3   :  { %s650_s18 = smov 0  }
   0x4 LB: > { %s22_s19 = sadd.s32 1, %s604_s16  ;;  %s25_s20 = sadd.s32 1, %s608_s17  ;;  %s612_s18 = sphi %s650_s18, %s13_s18   ;;  %s608_s17 = sphi %s648_s17, %s744_s17   ;;  %s604_s16 = sphi %s646_s16, %s743_s16   ;;  %s600_s15 = sphi %s644_s15, %s742_s15   ;;  %s596_s14 = sphi %s642_s14, %s741_s14   ;;  %s592_s13 = sphi %s640_s13, %s740_s13   ;;  %s588_s12 = sphi %s638_s12, %s739_s12  }
   0x5   : > { %p23_p0 = scmp.ge.s32.totalorder %s22_s19, 2  ;;  %p41_p1 = scmp.ne.s32.totalorder %s592_s13, %s588_s12 }
   0x6   : > { %p42_p2 = scmp.eq.s32.totalorder %s612_s18, 0  ;;  %s34_s24 = sadd.s32 1, %s592_s13 }
   0x7   : > { %s746_s19 = smov (%p23_p0, %s22_s19), 0  ;;  %s748_s20 = smov (!%p23_p0, %s25_s20), %s608_s17 }
   0x8   : > { %p43_p3 = por %p42_p2, %p41_p1  ;;  %p27_p4 = scmp.ge.s32.totalorder %s748_s20, 4 }
   0x9   : > { %s30_s21 = ssub.s32 %s604_s16, %s746_s19  ;;  %p443_p6 = scmp.ge.s32.totalorder %s612_s18, 8 }
   0xa   : > { %s750_s20 = smov (%p27_p4, %s748_s20), 0 }
   0xb   : > { %s29_s22 = ssub.s32 %s608_s17, %s750_s20  ;;  %143 = sbr.rel (%p443_p6) target bundleno = 30 (0x1e), region = 24 }
   0xc   : > { %s31_s23 = sor.u32 %s30_s21, %s29_s22 }
   0xd   : > { %p32_p5 = scmp.eq.s32.totalorder %s31_s23, 0 }
   0xf   : > { %s689_s25 = scalar_select %p32_p5, %s592_s13, %s34_s24  }
  0x12   : > { %146 = sbr.rel (!%p43_p3) target bundleno = 30 (0x1e), region = 28  ;;  %s148_s26 = sand.u32 (%p43_p3), 1, %s592_s13  }
  0x13   : > { %s495_s27 = smul.u32 (%p43_p3), 18, %s608_s17 }
  0x14   : > { %s494_s28 = smul.u32 (%p43_p3), 72, %s148_s26 }
  0x15   : > { %s152_s29 = sadd.s32 (%p43_p3), %s604_s16, %s495_s27 }
  0x16   : > { %s444_s30 = sshll.u32 (%p43_p3), %s152_s29, 3  ;;  %s150_s7 = scalar_lea.vmem (%p43_p3), [#allocation2], %s494_s28 }
  0x17   : > { %s154_s6 = scalar_lea.vmem (%p43_p3), %s735_s0, %s444_s30 }
  0x18   : > { %v198_v0 = vld [vmem:[%s154_s6] sm:$0xff] (%p43_p3)  ;;  %v200_v1 = vld [vmem:[%s154_s6 + $0x10] sm:$0xff] (%p43_p3) }
  0x19   : > { %v202_v2 = vld [vmem:[%s154_s6 + $0x20] sm:$0xff]  ;;  %199 = vst [vmem:[%s150_s7] sm:$0xff] %v198_v0  ;;  %201 = vst [vmem:[%s150_s7 + $0x8] sm:$0xff] %v200_v1  ;;  %v204_v3 = vld [vmem:[%s154_s6 + $0x30] sm:$0xff] }
  0x1a   : > { %203 = vst [vmem:[%s150_s7 + $0x10] sm:$0xff] %v202_v2  ;;  %v206_v4 = vld [vmem:[%s154_s6 + $0x40] sm:$0xff]  ;;  %v208_v5 = vld [vmem:[%s154_s6 + $0x50] sm:$0xff]  ;;  %205 = vst [vmem:[%s150_s7 + $0x18] sm:$0xff] %v204_v3 }
  0x1b   : > { %207 = vst [vmem:[%s150_s7 + $0x20] sm:$0xff] %v206_v4  ;;  %209 = vst [vmem:[%s150_s7 + $0x28] sm:$0xff] %v208_v5  ;;  %v210_v6 = vld [vmem:[%s154_s6 + $0x60] sm:$0xff]  ;;  %v212_v7 = vld [vmem:[%s154_s6 + $0x70] sm:$0xff] }
  0x1c   : > { %v214_v8 = vld [vmem:[%s154_s6 + $0x80] sm:$0xff]  ;;  %211 = vst [vmem:[%s150_s7 + $0x30] sm:$0xff] %v210_v6  ;;  %213 = vst [vmem:[%s150_s7 + $0x38] sm:$0xff] %v212_v7 }
  0x1d   : > { %215 = vst [vmem:[%s150_s7 + $0x40] sm:$0xff] %v214_v8 }
  0x1e PF: > { %p445_p7 = scmp.ge.s32.totalorder %s612_s18, 1  ;;  %p220_p8 = scmp.lt.s32.totalorder %s612_s18, 9 }
  0x20   : > { %p221_p9 = pnand %p445_p7, %p220_p8 }
  0x21   : > { %s227_s8 = sand.u32 (!%p221_p9), 1, %s588_s12   ;;  %v614_v9 = vmov (!%p221_p9), 0.0|0.0   ;;  %vm615_vm0 = vmmov (!%p221_p9), 0   ;;  %v616_v10 = vmov (!%p221_p9), 0.0   ;;  %v271_v11 = vld [vmem:[%s737_s2] sm:$0xff] (!%p221_p9)  ;;  %v617_v12 = vmov (!%p221_p9), 0  }
  0x22   : > { %224 = sbr.rel (%p221_p9) target bundleno = 273 (0x111), region = 66  ;;  %482 = vmatprep.subr.bf16.mxu0 (!%p221_p9), %v614_v9  ;;  %479 = vmatprep.mubr.msk.f32.mxu0 (!%p221_p9), %vm615_vm0, %v616_v10  ;;  %v261_v26 = vld [vmem:[%s736_s1] sm:$0xff] (!%p221_p9)  ;;  %vm277_vm1 = vcmask (!%p221_p9), 588800   ;;  %p253_p10 = scmp.lt.s32.totalorder (!%p221_p9), %s600_s15, 3 }
  0x23   : > { %s496_s9 = smul.u32 (!%p221_p9), 72, %s227_s8  ;;  %557 = vset.pattern.permute.xlu0 (!%p221_p9), %v617_v12  ;;  %p255_p11 = scmp.lt.s32.totalorder (!%p221_p9), %s596_s14, 1 }
  0x24   : > { %274 = vperm.xlu0 (!%p221_p9), %557, %v271_v11  }
  0x25   : > { %s229_s21 = scalar_lea.vmem (!%p221_p9), [#allocation2], %s496_s9 }
  0x26   : > { %v262_v13 = vld [vmem:[%s229_s21] sm:$0xff] (!%p221_p9)  ;;  %v263_v14 = vld [vmem:[%s229_s21 + $0x8] sm:$0xff] (!%p221_p9)  ;;  %v264_v15 = vld [vmem:[%s229_s21 + $0x10] sm:$0xff] (!%p221_p9) }
  0x27   : > { %v483_v16 = vpack.c.bf16 (!%p221_p9), %v263_v14, %v262_v13  ;;  %v265_v17 = vld [vmem:[%s229_s21 + $0x18] sm:$0xff] (!%p221_p9)  ;;  %v266_v19 = vld [vmem:[%s229_s21 + $0x20] sm:$0xff] (!%p221_p9)  ;;  %v267_v20 = vld [vmem:[%s229_s21 + $0x28] sm:$0xff] (!%p221_p9) }
  0x28   : > { %v486_v18 = vpack.c.bf16 (!%p221_p9), %v265_v17, %v264_v15  ;;  %v489_v21 = vpack.c.bf16 (!%p221_p9), %v267_v20, %v266_v19  ;;  %v268_v22 = vld [vmem:[%s229_s21 + $0x30] sm:$0xff] (!%p221_p9)  ;;  %v269_v23 = vld [vmem:[%s229_s21 + $0x38] sm:$0xff] (!%p221_p9)  ;;  %v270_v25 = vld [vmem:[%s229_s21 + $0x40] sm:$0xff] (!%p221_p9) }
  0x29   : > { %484 = vmatpush3.bf16.msra.mxu0 %v483_v16  ;;  %v492_v24 = vpack.c.bf16 %v269_v23, %v268_v22  ;;  %s752_s15 = smov (!%p253_p10, %s600_s15), 3  ;;  %s754_s14 = smov (!%p255_p11, %s596_s14), 1 }
  0x2a   : > { %485 = vmatprep.subr.bf16.mxu0 %v614_v9  ;;  %s446_s23 = sshll.u32 %s752_s15, 1 }
  0x2b   : > { %s258_s24 = sadd.s32 %s446_s23, %s754_s14 }
  0x2c   : > { %s447_s26 = sshll.u32 %s258_s24, 3 }
  0x2d   : > { %487 = vmatpush3.bf16.msra.mxu0 %v486_v18  ;;  %s260_s29 = scalar_lea.vmem %s738_s3, %s447_s26 }
  0x2e   : > { %488 = vmatprep.subr.bf16.mxu0 %v614_v9 }
  0x31   : > { %490 = vmatpush3.bf16.msra.mxu0 %v489_v21 }
  0x32   : > { %491 = vmatprep.subr.bf16.mxu0 %v614_v9 }
  0x35   : > { %493 = vmatpush3.bf16.msra.mxu0 %v492_v24 }
  0x36   : > { %477 = vmatprep.subr.mxu0 %v616_v10 }
  0x39   : > { %478 = vmatpush3.msra.mxu0 %v270_v25 }
  0x3a   : > { %480 = vmatmul.mubr.msk.f32.vlgmr.msra.gmra.mrb[0].mxu0 %vm277_vm1, %v261_v26 }
  0xa3   : > { %v275_v27 = vpop.permute.xlu0 %274 }
 0x10d   : > { %v347_v28 = vpop.f32.mrb[0].mxu0 }
 0x10e   : > { %v348_v29 = vadd.f32 %v347_v28, %v275_v27  ;;  %v481_v30 = vpop.f32.mrb[1].mxu0 }
 0x110   : > { %351 = vst [vmem:[%s260_s29] sm:$0xff] %v348_v29 }
 0x111 PF: > { %s13_s18 = sadd.s32 1, %s612_s18   ;;  %s739_s12 = smov %s592_s13 }
 0x112   : > { %p10_p12 = scmp.ge.s32.totalorder %s13_s18, 10   ;;  %s740_s13 = smov %s689_s25 }
 0x113   : > { %s741_s14 = smov %s604_s16  ;;  %s742_s15 = smov %s608_s17 }
 0x114   : > { %s743_s16 = smov %s746_s19  ;;  %s744_s17 = smov %s750_s20 }
 0x115   :  { %12 = sbr.rel (!%p10_p12) target bundleno = 4 (0x4), region = 105 }

// kernel: forward.26
= control target key start
LH: loop header
LB: loop body
LE: loop exit
PB: predicated region body
PF: predicated region fallthrough
CT: control target
= control target key end

     0   :  { %v16_v0 = vlaneseq  ;;  %v96_v1 = vmov 1983009808   ;;  %vm23_vm0 = vcmask 1041408   ;;  %v97_v12 = vmov 269488144   ;;  %s136_s0 = inlined_call_operand.vmem [shape: f32[2,256], index: 0, kind: input, shape index: {}]   ;;  %s137_s2 = inlined_call_operand.vmem [shape: f32[2,1], index: 2, kind: output, shape index: {1}]   ;;  %s138_s1 = inlined_call_operand.vmem [shape: f32[2,256], index: 1, kind: output, shape index: {0}]   ;;  %s139_s3 = inlined_call_operand.vmem [shape: f32[2,1], index: 3, kind: output, shape index: {2}]  }
   0x1   :  { %v14_v2 = vunpack.c.l.s4 %v96_v1  ;;  %v11_v5 = vld [vmem:[%s136_s0] sm:$0xf]  ;;  %v32_v13 = vunpack.c.l.s4 %v97_v12  ;;  %vm70_vm1 = vcmask 1024  }
   0x2   :  { %v17_v3 = vshrl.u32 %v16_v0, 7 }
   0x3   :  { %v15_v4 = vunpack.c.0.s8 %v14_v2  ;;  %v33_v14 = vunpack.c.0.s8 %v32_v13 }
   0x5   :  { %v18_v6 = vsub.s32 %v15_v4, %v17_v3  ;;  %v36_v15 = vsub.s32 %v33_v14, %v17_v3 }
   0x7   :  { %v19_v7 = vrot.slane %v11_v5, %v18_v6 }
   0x9   :  { %v20_v8 = vcombine.high %v19_v7, %v19_v7  ;;  %v24_v9 = vsel %vm23_vm0, %v19_v7, 0.0 }
   0xb   :  { %v25_v10 = vsel %vm23_vm0, %v20_v8, 0.0 }
   0xc   :  { %v26_v11 = vadd.f32 %v25_v10, %v24_v9 }
   0xe   :  { %27 = vadd.xlane.f32.xlu0 %v26_v11 }
  0x9b   :  { %v28_v16 = vpop.xlane.xlu0 %27 }
  0x9c   :  { %v29_v17 = vmul.f32 0.00390625, %v28_v16 }
  0x9e   :  { %v37_v18 = vrot.slane %v29_v17, %v36_v15  ;;  %71 = vst.msk [vmem:[%s137_s2] sm:$0x3] %vm70_vm1, %v29_v17 }
  0xa0   :  { %v39_v19 = vsub.f32 %v11_v5, %v37_v18 }
  0xa2   :  { %v40_v20 = vmul.f32 %v39_v19, %v39_v19 }
  0xa4   :  { %v48_v21 = vrot.slane %v40_v20, %v18_v6 }
  0xa6   :  { %v49_v22 = vcombine.high %v48_v21, %v48_v21  ;;  %v52_v23 = vsel %vm23_vm0, %v48_v21, 0.0 }
  0xa8   :  { %v53_v24 = vsel %vm23_vm0, %v49_v22, 0.0 }
  0xa9   :  { %v54_v25 = vadd.f32 %v53_v24, %v52_v23 }
  0xab   :  { %55 = vadd.xlane.f32.xlu0 %v54_v25 }
 0x138   :  { %v56_v26 = vpop.xlane.xlu0 %55 }
 0x139   :  { %v57_v27 = vmul.f32 0.003921569, %v56_v26 }
 0x13b   :  { %94 = vrsqrt.f32 %v57_v27  ;;  %vm74_vm2 = vcmp.eq.f32.partialorder %v57_v27, inf  ;;  %v77_v31 = vand.u32 2147483648, %v57_v27  ;;  %vm76_vm3 = vcmp.eq.f32.partialorder %v57_v27, 0.0 }
 0x145   :  { %v95_v28 = vpop.eup %94 }
 0x146   :  { %v66_v29 = vrot.slane %v95_v28, %v36_v15  ;;  %v73_v30 = vmul.f32 %v95_v28, %v57_v27 }
 0x148   :  { %v68_v32 = vmul.f32 %v66_v29, %v39_v19  ;;  %v75_v33 = vsel %vm74_vm2, %v57_v27, %v73_v30 }
 0x149   :  { %v78_v34 = vsel %vm76_vm3, %v77_v31, %v75_v33 }
 0x14a   :  { %69 = vst [vmem:[%s138_s1] sm:$0xf] %v68_v32  ;;  %79 = vst.msk [vmem:[%s139_s3] sm:$0x3] %vm70_vm1, %v78_v34 }

// kernel: forward.25
= control target key start
LH: loop header
LB: loop body
LE: loop exit
PB: predicated region body
PF: predicated region fallthrough
CT: control target
= control target key end

     0   :  { %s1418_s30 = smov 0   ;;  %s1420_s10 = smov 0   ;;  %s1549_s0 = inlined_call_operand.vmem [shape: f32[16,16], index: 0, kind: input, shape index: {}, may-alias: {0,2}]   ;;  %s1550_s1 = inlined_call_operand.vmem [shape: f32[16,16], index: 1, kind: input, shape index: {}, may-alias: {1,3}]   ;;  %s1551_s2 = inlined_call_operand.vmem [shape: f32[16,16], index: 2, kind: input, shape index: {}, may-alias: {0,2}]   ;;  %s1552_s3 = inlined_call_operand.vmem [shape: f32[16,16], index: 3, kind: input, shape index: {}, may-alias: {1,3}]   ;;  %s1553_s4 = inlined_call_operand.vmem [shape: f32[1,4,16,16], index: 4, kind: input, shape index: {}]   ;;  %s1554_s5 = inlined_call_operand.vmem [shape: f32[1,4,16,16], index: 5, kind: input, shape index: {}]   ;;  %s1555_s6 = inlined_call_operand.vmem [shape: f32[1,4,16,16], index: 6, kind: input, shape index: {}]   ;;  %s1556_s7 = inlined_call_operand.vmem [shape: f32[1,4,16,16], index: 7, kind: input, shape index: {}]   ;;  %s1557_s8 = inlined_call_operand.vmem [shape: f32[1,1,16,16], index: 8, kind: output, shape index: {0}]   ;;  %s1558_s9 = inlined_call_operand.vmem [shape: f32[1,1,16,16], index: 9, kind: output, shape index: {1}]  }
   0x1   :  { %s1422_s11 = smov 0  }
   0x2 LB: > { %s29_s12 = sadd.s32 1, %s1362_s10  ;;  %p1199_p0 = scmp.ge.s32.totalorder %s1366_s11, 1  ;;  %s1366_s11 = sphi %s1422_s11, %s20_s11   ;;  %s1362_s10 = sphi %s1420_s10, %s1560_s10   ;;  %s1358_s30 = sphi %s1418_s30, %s1559_s30  }
   0x3   : > { %p30_p1 = scmp.ge.s32.totalorder %s29_s12, 4  ;;  %p356_p2 = scmp.lt.s32.totalorder %s1366_s11, 5 }
   0x5   : > { %s1562_s12 = smov (%p30_p1, %s29_s12), 0  ;;  %p357_p3 = pnand %p1199_p0, %p356_p2 }
   0x6   : > { %v482_v0 = vld [vmem:[%s1551_s2] sm:$0xff] (!%p357_p3)  ;;  %v483_v1 = vld [vmem:[%s1551_s2 + $0x8] sm:$0xff] (!%p357_p3)  ;;  %p430_p4 = scmp.lt.s32.totalorder (!%p357_p3), %s1358_s30, 3  ;;  %vm486_vm0 = vcmask (!%p357_p3), 130048   ;;  %p1220_p5 = scmp.ne.s32.totalorder (!%p357_p3), %s1358_s30, 0 }
   0x7   : > { %360 = sbr.rel (%p357_p3) target bundleno = 483 (0x1e3), region = 52  ;;  %v484_v2 = vld [vmem:[%s1552_s3] sm:$0xff] (!%p357_p3)  ;;  %v1296_v3 = vpack.c.bf16 (!%p357_p3), %v483_v1, %v482_v0  ;;  %v485_v4 = vld [vmem:[%s1552_s3 + $0x8] sm:$0xff] (!%p357_p3) }
   0x8   : > { %v651_v5 = vadd.f32 (!%p357_p3), %v484_v2, %v482_v0  ;;  %v1300_v6 = vpack.c.bf16 (!%p357_p3), %v485_v4, %v484_v2  ;;  %v652_v7 = vadd.f32 (!%p357_p3), %v485_v4, %v483_v1  ;;  %v478_v15 = vld [vmem:[%s1549_s0] sm:$0xff] (!%p357_p3)  ;;  %v479_v30 = vld [vmem:[%s1549_s0 + $0x8] sm:$0xff] (!%p357_p3) }
   0x9   : > { %1297 = vmatprep.subr.bf16.mxu0 (!%p357_p3), %v1296_v3  ;;  %v480_v16 = vld [vmem:[%s1550_s1] sm:$0xff] (!%p357_p3)  ;;  %v481_v35 = vld [vmem:[%s1550_s1 + $0x8] sm:$0xff] (!%p357_p3) }
   0xa   : > { %1301 = vmatprep.subr.bf16.mxu1 (!%p357_p3), %v1300_v6  ;;  %1299 = vmatpush3.bf16.msra.mxu0 (!%p357_p3), %v1296_v3  ;;  %v1304_v8 = vpack.c.bf16 (!%p357_p3), %v652_v7, %v651_v5  ;;  %v902_v17 = vadd.f32 (!%p357_p3), %v480_v16, %v478_v15  ;;  %v903_v37 = vadd.f32 (!%p357_p3), %v481_v35, %v479_v30 }
   0xb   : > { %1303 = vmatpush3.bf16.msra.mxu1 (!%p357_p3), %v1300_v6 }
   0xc   : > { %1305 = vmatprep.subr.bf16.mxu0 (!%p357_p3), %v1304_v8 }
   0xe   : > { %s431_s21 = scalar_select %p430_p4, %s1358_s30, 3 }
  0x10   : > { %s1452_s22 = sshll.u32 %s431_s21, 4 }
  0x11   : > { %s436_s25 = scalar_lea.vmem %s1553_s4, %s1452_s22  ;;  %s445_s28 = scalar_lea.vmem %s1554_s5, %s1452_s22 }
  0x12   : > { %v474_v9 = vld [vmem:[%s436_s25] sm:$0xff]  ;;  %v475_v10 = vld [vmem:[%s436_s25 + $0x8] sm:$0xff]  ;;  %s454_s23 = scalar_lea.vmem %s1555_s6, %s1452_s22  ;;  %s463_s26 = scalar_lea.vmem %s1556_s7, %s1452_s22 }
  0x13   : > { %v476_v11 = vld [vmem:[%s445_s28] sm:$0xff]  ;;  %1258 = vmatprep.mubr.msk.f32.mxu0 %vm486_vm0, %v474_v9  ;;  %v477_v12 = vld [vmem:[%s445_s28 + $0x8] sm:$0xff] }
  0x14   : > { %1265 = vmatprep.mubr.msk.f32.mxu1 %vm486_vm0, %v476_v11  ;;  %v649_v13 = vadd.f32 %v476_v11, %v474_v9  ;;  %v650_v14 = vadd.f32 %v477_v12, %v475_v10  ;;  %1259 = vmatmul.mubr.msk.f32.vlgmr.msra.gmra.mrb[0].mxu0 %vm486_vm0, %v475_v10  ;;  %v994_v47 = vld [vmem:[%s454_s23 + $0x8] sm:$0xff]  ;;  %v993_v50 = vld [vmem:[%s454_s23] sm:$0xff] }
  0x15   : > { %1266 = vmatmul.mubr.msk.f32.vlgmr.msra.gmra.mrb[0].mxu1 %vm486_vm0, %v477_v12  ;;  %1307 = vmatpush3.bf16.msra.mxu0 %v1304_v8  ;;  %v996_v48 = vld [vmem:[%s463_s26 + $0x8] sm:$0xff]  ;;  %v995_v51 = vld [vmem:[%s463_s26] sm:$0xff] }
  0x16   : > { %1272 = vmatprep.mubr.msk.f32.mxu0 %vm486_vm0, %v649_v13  ;;  %1279 = vmatprep.mubr.msk.f32.mxu1 %vm486_vm0, %v478_v15 }
  0x18   : > { %1273 = vmatmul.mubr.msk.f32.vlgmr.msra.gmra.mrb[2].mxu0 %vm486_vm0, %v650_v14 }
  0x19   : > { %1286 = vmatprep.mubr.msk.f32.mxu0 %vm486_vm0, %v480_v16 }
  0xe7   : > { %v1260_v18 = vpop.f32.mrb[0].mxu0 }
  0xe8   : > { %v1267_v19 = vpop.f32.mrb[0].mxu1  ;;  %v559_v21 = vpop.f32.mrb[1].mxu0 }
  0xe9   : > { %v735_v20 = vsub.f32 %v1260_v18, %v1267_v19  ;;  %v640_v22 = vpop.f32.mrb[1].mxu1 }
  0xea   : > { %v734_v23 = vsub.f32 %v559_v21, %v640_v22 }
  0xeb   : > { %v1274_v25 = vpop.f32.mrb[2].mxu0 }
  0xec   : > { %v1308_v24 = vpack.c.bf16 %v735_v20, %v734_v23  ;;  %v737_v26 = vsub.f32 %v1274_v25, %v1260_v18  ;;  %v725_v27 = vpop.f32.mrb[3].mxu0 }
  0xed   : > { %v736_v28 = vsub.f32 %v725_v27, %v559_v21 }
  0xee   : > { %1309 = vmatprep.subr.bf16.mxu1 %v1308_v24  ;;  %v739_v29 = vsub.f32 %v737_v26, %v1267_v19 }
  0xef   : > { %1311 = vmatpush3.bf16.msra.mxu1 %v1308_v24  ;;  %v738_v31 = vsub.f32 %v736_v28, %v640_v22 }
  0xf0   : > { %v905_v32 = vadd.f32 %v739_v29, %v735_v20 }
  0xf1   : > { %v904_v33 = vadd.f32 %v738_v31, %v734_v23  ;;  %v1312_v34 = vpack.c.bf16 %v739_v29, %v738_v31 }
  0xf2   : > { %1280 = vmatmul.mubr.msk.f32.vlgmr.msra.gmra.mrb[2].mxu1 %vm486_vm0, %v479_v30 }
  0xf3   : > { %1293 = vmatprep.mubr.msk.f32.mxu1 %vm486_vm0, %v902_v17  ;;  %1313 = vmatprep.subr.bf16.mxu0 %v1312_v34  ;;  %v1316_v36 = vpack.c.bf16 %v905_v32, %v904_v33 }
  0xf4   : > { %1315 = vmatpush3.bf16.msra.mxu0 %v1312_v34 }
  0xf5   : > { %1317 = vmatprep.subr.bf16.mxu1 %v1316_v36 }
  0xf6   : > { %1319 = vmatpush3.bf16.msra.mxu1 %v1316_v36 }
  0xf7   : > { %1287 = vmatmul.mubr.msk.f32.vlgmr.msra.gmra.mrb[4].mxu0 %vm486_vm0, %v481_v35 }
  0xf9   : > { %1294 = vmatmul.mubr.msk.f32.vlgmr.msra.gmra.mrb[4].mxu1 %vm486_vm0, %v903_v37 }
 0x1c5   : > { %v1281_v38 = vpop.f32.mrb[2].mxu1 }
 0x1c6   : > { %v812_v39 = vpop.f32.mrb[3].mxu1 }
 0x1ca   : > { %v1288_v40 = vpop.f32.mrb[4].mxu0 }
 0x1cb   : > { %v988_v41 = vsub.f32 %v1281_v38, %v1288_v40  ;;  %v893_v42 = vpop.f32.mrb[5].mxu0 }
 0x1cc   : > { %v987_v43 = vsub.f32 %v812_v39, %v893_v42  ;;  %v1295_v44 = vpop.f32.mrb[4].mxu1 }
 0x1cd   : > { %v990_v45 = vsub.f32 %v1295_v44, %v1281_v38  ;;  %v978_v46 = vpop.f32.mrb[5].mxu1  ;;  %v998_v54 = vmul.f32 %v994_v47, %v988_v41  ;;  %v1004_v55 = vmul.f32 %v996_v48, %v988_v41 }
 0x1ce   : > { %v989_v49 = vsub.f32 %v978_v46, %v812_v39  ;;  %v997_v58 = vmul.f32 %v993_v50, %v987_v43  ;;  %v1003_v59 = vmul.f32 %v995_v51, %v987_v43  ;;  %1012 = sbr.rel (%p1220_p5) target bundleno = 471 (0x1d7), region = 56 }
 0x1cf   : > { %v992_v52 = vsub.f32 %v990_v45, %v1288_v40 }
 0x1d0   : > { %v991_v53 = vsub.f32 %v989_v49, %v893_v42 }
 0x1d1   : > { %v1000_v56 = vmul.f32 %v996_v48, %v992_v52  ;;  %v1006_v57 = vmul.f32 %v994_v47, %v992_v52 }
 0x1d2   : > { %v999_v60 = vmul.f32 %v995_v51, %v991_v53  ;;  %v1005_v61 = vmul.f32 %v993_v50, %v991_v53 }
 0x1d3   : > { %v1002_v62 = vsub.f32 %v998_v54, %v1000_v56  ;;  %v1008_v63 = vadd.f32 %v1006_v57, %v1004_v55 }
 0x1d4   : > { %v1001_v0 = vsub.f32 %v997_v58, %v999_v60  ;;  %v1007_v1 = vadd.f32 %v1005_v61, %v1003_v59 }
 0x1d5   : > { %1014 = vst.msk [vmem:[%s1557_s8 + $0x8] sm:$0xff] %vm486_vm0, %v1002_v62  ;;  %1016 = vst.msk [vmem:[%s1558_s9 + $0x8] sm:$0xff] %vm486_vm0, %v1008_v63 }
 0x1d6   : > { %1013 = vst.msk [vmem:[%s1557_s8] sm:$0xff] %vm486_vm0, %v1001_v0  ;;  %1015 = vst.msk [vmem:[%s1558_s9] sm:$0xff] %vm486_vm0, %v1007_v1 }
 0x1d7 PF: > { %p1221_p6 = scmp.le.s32.totalorder %s1358_s30, 0 }
 0x1d9   : > { %1020 = sbr.rel (%p1221_p6) target bundleno = 483 (0x1e3), region = 60 }
 0x1dd   : > { %v1021_v2 = vld [vmem:[%s1557_s8] sm:$0xff] (!%p1221_p6) }
 0x1de   : > { %v1022_v3 = vld [vmem:[%s1557_s8 + $0x8] sm:$0xff] (!%p1221_p6)  ;;  %v1027_v4 = vld [vmem:[%s1558_s9] sm:$0xff] (!%p1221_p6)  ;;  %v1023_v5 = vadd.f32 (!%p1221_p6), %v1021_v2, %v1001_v0 }
 0x1df   : > { %v1024_v6 = vadd.f32 (!%p1221_p6), %v1022_v3, %v1002_v62  ;;  %v1029_v7 = vadd.f32 (!%p1221_p6), %v1027_v4, %v1007_v1  ;;  %v1028_v8 = vld [vmem:[%s1558_s9 + $0x8] sm:$0xff] (!%p1221_p6) }
 0x1e0   : > { %v1030_v9 = vadd.f32 %v1028_v8, %v1008_v63  ;;  %1025 = vst.msk [vmem:[%s1557_s8] sm:$0xff] %vm486_vm0, %v1023_v5 }
 0x1e1   : > { %1026 = vst.msk [vmem:[%s1557_s8 + $0x8] sm:$0xff] %vm486_vm0, %v1024_v6  ;;  %1031 = vst.msk [vmem:[%s1558_s9] sm:$0xff] %vm486_vm0, %v1029_v7 }
 0x1e2   : > { %1032 = vst.msk [vmem:[%s1558_s9 + $0x8] sm:$0xff] %vm486_vm0, %v1030_v9 }
 0x1e3 PF: > { %s20_s11 = sadd.s32 1, %s1366_s11   ;;  %s1559_s30 = smov %s1362_s10 }
 0x1e4   : > { %p17_p7 = scmp.ge.s32.totalorder %s20_s11, 6   ;;  %s1560_s10 = smov %s1562_s12 }
 0x1e6   :  { %19 = sbr.rel (!%p17_p7) target bundleno = 2 (0x2), region = 111 }

// kernel: forward.27
= control target key start
LH: loop header
LB: loop body
LE: loop exit
PB: predicated region body
PF: predicated region fallthrough
CT: control target
= control target key end

     0   :  { %s559_s12 = smov 0   ;;  %s561_s13 = smov 0   ;;  %s631_s0 = inlined_call_operand.vmem [shape: f32[1,18,256], index: 0, kind: input, shape index: {}]   ;;  %s632_s1 = inlined_call_operand.vmem [shape: f32[8,18], index: 1, kind: input, shape index: {}]   ;;  %s633_s2 = inlined_call_operand.vmem [shape: f32[8,1], index: 2, kind: input, shape index: {}]   ;;  %s634_s3 = inlined_call_operand.vmem [shape: f32[1,8,256], index: 3, kind: output, shape index: {}]  }
   0x1   :  { %s563_s14 = smov 0   ;;  %s565_s15 = smov 0  }
   0x2   :  { %s567_s16 = smov 0  }
   0x3 LB: > { %s22_s17 = sadd.s32 1, %s529_s15  ;;  %p41_p1 = scmp.ne.s32.totalorder %s521_s13, %s517_s12  ;;  %s533_s16 = sphi %s567_s16, %s13_s16   ;;  %s529_s15 = sphi %s565_s15, %s638_s15   ;;  %s525_s14 = sphi %s563_s14, %s637_s14   ;;  %s521_s13 = sphi %s561_s13, %s636_s13   ;;  %s517_s12 = sphi %s559_s12, %s635_s12  }
   0x4   : > { %p23_p0 = scmp.ge.s32.totalorder %s22_s17, 2  ;;  %p42_p2 = scmp.eq.s32.totalorder %s533_s16, 0 }
   0x5   : > { %s34_s19 = sadd.s32 1, %s521_s13  ;;  %p420_p5 = scmp.ge.s32.totalorder %s533_s16, 2 }
   0x6   : > { %s640_s17 = smov (%p23_p0, %s22_s17), 0  ;;  %p43_p3 = por %p42_p2, %p41_p1 }
   0x7   : > { %s30_s18 = ssub.s32 %s529_s15, %s640_s17  ;;  %143 = sbr.rel (%p420_p5) target bundleno = 21 (0x15), region = 24 }
   0x8   : > { %p32_p4 = scmp.eq.s32.totalorder %s30_s18, 0 }
   0xa   : > { %s594_s20 = scalar_select %p32_p4, %s521_s13, %s34_s19  }
   0xe   : > { %146 = sbr.rel (!%p43_p3) target bundleno = 21 (0x15), region = 28  ;;  %s148_s21 = sand.u32 (%p43_p3), 1, %s521_s13  }
   0xf   : > { %s421_s22 = sshll.u32 (%p43_p3), %s529_s15, 3  ;;  %s444_s23 = smul.u32 (%p43_p3), 24, %s148_s21 }
  0x10   : > { %s154_s26 = scalar_lea.vmem (%p43_p3), %s631_s0, %s421_s22 }
  0x11   : > { %v186_v0 = vld [vmem:[%s154_s26] sm:$0xff] (%p43_p3)  ;;  %v188_v1 = vld [vmem:[%s154_s26 + $0x10] sm:$0xff] (%p43_p3)  ;;  %s150_s27 = scalar_lea.vmem (%p43_p3), [#allocation2], %s444_s23 }
  0x12   : > { %v190_v2 = vld [vmem:[%s154_s26 + $0x20] sm:$0xff] (%p43_p3)  ;;  %187 = vst [vmem:[%s150_s27] sm:$0xff] (%p43_p3), %v186_v0  ;;  %189 = vst [vmem:[%s150_s27 + $0x8] sm:$0xff] (%p43_p3), %v188_v1 }
  0x13   : > { %191 = vst [vmem:[%s150_s27 + $0x10] sm:$0xff] (%p43_p3), %v190_v2 }
  0x15 PF: > { %p422_p6 = scmp.ge.s32.totalorder %s533_s16, 1  ;;  %p196_p7 = scmp.lt.s32.totalorder %s533_s16, 3 }
  0x17   : > { %p197_p8 = pnand %p422_p6, %p196_p7 }
  0x18   : > { %s203_s28 = sand.u32 (!%p197_p8), 1, %s517_s12   ;;  %v535_v3 = vmov (!%p197_p8), 0.0|0.0   ;;  %vm536_vm0 = vmmov (!%p197_p8), 0   ;;  %v537_v4 = vmov (!%p197_p8), 0.0   ;;  %v241_v5 = vld [vmem:[%s633_s2] sm:$0xff] (!%p197_p8)  ;;  %v538_v6 = vmov (!%p197_p8), 0  }
  0x19   : > { %200 = sbr.rel (%p197_p8) target bundleno = 282 (0x11a), region = 66  ;;  %441 = vmatprep.subr.bf16.mxu0 (!%p197_p8), %v535_v3  ;;  %438 = vmatprep.mubr.msk.f32.mxu0 (!%p197_p8), %vm536_vm0, %v537_v4  ;;  %vm251_vm1 = vcmask (!%p197_p8), 1041408   ;;  %v237_v11 = vld [vmem:[%s632_s1] sm:$0xff] (!%p197_p8)  ;;  %vm247_vm2 = vcmask (!%p197_p8), 146432   ;;  %p231_p9 = scmp.lt.s32.totalorder (!%p197_p8), %s525_s14, 1 }
  0x1a   : > { %s445_s29 = smul.u32 (!%p197_p8), 24, %s203_s28  ;;  %490 = vset.pattern.permute.xlu0 (!%p197_p8), %v538_v6 }
  0x1b   : > { %244 = vperm.xlu0 (!%p197_p8), %490, %v241_v5  }
  0x1c   : > { %s205_s5 = scalar_lea.vmem (!%p197_p8), [#allocation2], %s445_s29 }
  0x1d   : > { %v238_v7 = vld [vmem:[%s205_s5] sm:$0xff] (!%p197_p8)  ;;  %v239_v8 = vld [vmem:[%s205_s5 + $0x8] sm:$0xff] (!%p197_p8)  ;;  %v240_v10 = vld [vmem:[%s205_s5 + $0x10] sm:$0x3] (!%p197_p8) }
  0x1e   : > { %v442_v9 = vpack.c.bf16 (!%p197_p8), %v239_v8, %v238_v7 }
  0x20   : > { %443 = vmatpush3.bf16.msra.mxu0 %v442_v9  ;;  %s642_s14 = smov (!%p231_p9, %s525_s14), 1 }
  0x21   : > { %436 = vmatprep.subr.mxu0 %v537_v4  ;;  %s423_s8 = sshll.u32 %s642_s14, 3 }
  0x22   : > { %s236_s11 = scalar_lea.vmem %s634_s3, %s423_s8 }
  0x24   : > { %437 = vmatpush3.msk.msra.mxu0 %vm251_vm1, %v240_v10 }
  0x25   : > { %439 = vmatmul.mubr.msk.f32.vlgmr.msra.gmra.mrb[0].mxu0 %vm247_vm2, %v237_v11 }
  0x9a   : > { %v245_v12 = vpop.permute.xlu0 %244 }
  0xf8   : > { %v321_v13 = vpop.f32.mrb[0].mxu0 }
  0xf9   : > { %v322_v14 = vadd.f32 %v321_v13, %v245_v12  ;;  %v440_v15 = vpop.f32.mrb[1].mxu0 }
  0xfb   : > { %v325_v16 = vsub.f32 0.0, %v322_v14 }
  0xfd   : > { %v326_v17 = vmul.f32 1.442695, %v325_v16 }
  0xff   : > { %491 = vpow2.f32 %v326_v17 }
 0x109   : > { %v492_v18 = vpop.eup %491 }
 0x10a   : > { %v328_v19 = vadd.f32 1.0, %v492_v18 }
 0x10c   : > { %493 = vrcp.f32 %v328_v19 }
 0x116   : > { %v494_v20 = vpop.eup %493 }
 0x117   : > { %v330_v21 = vmul.f32 %v494_v20, %v322_v14 }
 0x119   : > { %331 = vst [vmem:[%s236_s11] sm:$0xff] %v330_v21 }
 0x11a PF: > { %s13_s16 = sadd.s32 1, %s533_s16   ;;  %s635_s12 = smov %s521_s13 }
 0x11b   : > { %p10_p10 = scmp.ge.s32.totalorder %s13_s16, 4   ;;  %s636_s13 = smov %s594_s20 }
 0x11c   : > { %s637_s14 = smov %s529_s15  ;;  %s638_s15 = smov %s640_s17 }
 0x11d   :  { %12 = sbr.rel (!%p10_p10) target bundleno = 3 (0x3), region = 105 }

// kernel: forward.29
= control target key start
LH: loop header
LB: loop body
LE: loop exit
PB: predicated region body
PF: predicated region fallthrough
CT: control target
= control target key end

     0   :  { %s601_s12 = smov 0   ;;  %s603_s13 = smov 0   ;;  %s673_s0 = inlined_call_operand.vmem [shape: f32[1,72,256], index: 0, kind: input, shape index: {}]   ;;  %s674_s1 = inlined_call_operand.vmem [shape: f32[8,72], index: 1, kind: input, shape index: {}]   ;;  %s675_s2 = inlined_call_operand.vmem [shape: f32[8,1], index: 2, kind: input, shape index: {}]   ;;  %s676_s3 = inlined_call_operand.vmem [shape: f32[1,8,256], index: 3, kind: output, shape index: {}]  }
   0x1   :  { %s605_s14 = smov 0   ;;  %s607_s15 = smov 0  }
   0x2   :  { %s609_s16 = smov 0  }
   0x3 LB: > { %s22_s17 = sadd.s32 1, %s571_s15  ;;  %p41_p1 = scmp.ne.s32.totalorder %s563_s13, %s559_s12  ;;  %s575_s16 = sphi %s609_s16, %s13_s16   ;;  %s571_s15 = sphi %s607_s15, %s680_s15   ;;  %s567_s14 = sphi %s605_s14, %s679_s14   ;;  %s563_s13 = sphi %s603_s13, %s678_s13   ;;  %s559_s12 = sphi %s601_s12, %s677_s12  }
   0x4   : > { %p23_p0 = scmp.ge.s32.totalorder %s22_s17, 2  ;;  %p42_p2 = scmp.eq.s32.totalorder %s575_s16, 0 }
   0x5   : > { %s34_s19 = sadd.s32 1, %s563_s13  ;;  %p440_p5 = scmp.ge.s32.totalorder %s575_s16, 2 }
   0x6   : > { %s682_s17 = smov (%p23_p0, %s22_s17), 0  ;;  %p43_p3 = por %p42_p2, %p41_p1 }
   0x7   : > { %s30_s18 = ssub.s32 %s571_s15, %s682_s17  ;;  %143 = sbr.rel (%p440_p5) target bundleno = 23 (0x17), region = 24 }
   0x8   : > { %p32_p4 = scmp.eq.s32.totalorder %s30_s18, 0 }
   0xa   : > { %s636_s20 = scalar_select %p32_p4, %s563_s13, %s34_s19  }
   0xe   : > { %146 = sbr.rel (!%p43_p3) target bundleno = 23 (0x17), region = 28  ;;  %s148_s21 = sand.u32 (%p43_p3), 1, %s563_s13  }
   0xf   : > { %s441_s22 = sshll.u32 (%p43_p3), %s571_s15, 3  ;;  %s490_s23 = smul.u32 (%p43_p3), 72, %s148_s21 }
  0x10   : > { %s154_s26 = scalar_lea.vmem (%p43_p3), %s673_s0, %s441_s22 }
  0x11   : > { %v198_v0 = vld [vmem:[%s154_s26] sm:$0xff] (%p43_p3)  ;;  %v200_v1 = vld [vmem:[%s154_s26 + $0x10] sm:$0xff] (%p43_p3)  ;;  %s150_s27 = scalar_lea.vmem (%p43_p3), [#allocation2], %s490_s23 }
  0x12   : > { %v202_v2 = vld [vmem:[%s154_s26 + $0x20] sm:$0xff] (%p43_p3)  ;;  %v204_v3 = vld [vmem:[%s154_s26 + $0x30] sm:$0xff] (%p43_p3)  ;;  %199 = vst [vmem:[%s150_s27] sm:$0xff] (%p43_p3), %v198_v0  ;;  %201 = vst [vmem:[%s150_s27 + $0x8] sm:$0xff] (%p43_p3), %v200_v1 }
  0x13   : > { %v206_v4 = vld [vmem:[%s154_s26 + $0x40] sm:$0xff] (%p43_p3)  ;;  %v208_v5 = vld [vmem:[%s154_s26 + $0x50] sm:$0xff] (%p43_p3)  ;;  %203 = vst [vmem:[%s150_s27 + $0x10] sm:$0xff] (%p43_p3), %v202_v2  ;;  %205 = vst [vmem:[%s150_s27 + $0x18] sm:$0xff] (%p43_p3), %v204_v3 }
  0x14   : > { %207 = vst [vmem:[%s150_s27 + $0x20] sm:$0xff] (%p43_p3), %v206_v4  ;;  %209 = vst [vmem:[%s150_s27 + $0x28] sm:$0xff] (%p43_p3), %v208_v5  ;;  %v210_v6 = vld [vmem:[%s154_s26 + $0x60] sm:$0xff] (%p43_p3)  ;;  %v212_v7 = vld [vmem:[%s154_s26 + $0x70] sm:$0xff] (%p43_p3) }
  0x15   : > { %v214_v8 = vld [vmem:[%s154_s26 + $0x80] sm:$0xff]  ;;  %211 = vst [vmem:[%s150_s27 + $0x30] sm:$0xff] %v210_v6  ;;  %213 = vst [vmem:[%s150_s27 + $0x38] sm:$0xff] %v212_v7 }
  0x16   : > { %215 = vst [vmem:[%s150_s27 + $0x40] sm:$0xff] %v214_v8 }
  0x17 PF: > { %p442_p6 = scmp.ge.s32.totalorder %s575_s16, 1  ;;  %p220_p7 = scmp.lt.s32.totalorder %s575_s16, 3 }
  0x19   : > { %p221_p8 = pnand %p442_p6, %p220_p7 }
  0x1a   : > { %s227_s28 = sand.u32 (!%p221_p8), 1, %s559_s12   ;;  %v577_v9 = vmov (!%p221_p8), 0.0|0.0   ;;  %vm578_vm0 = vmmov (!%p221_p8), 0   ;;  %v579_v10 = vmov (!%p221_p8), 0.0   ;;  %v271_v11 = vld [vmem:[%s675_s2] sm:$0xff] (!%p221_p8)  ;;  %v580_v12 = vmov (!%p221_p8), 0  }
  0x1b   : > { %224 = sbr.rel (%p221_p8) target bundleno = 266 (0x10a), region = 66  ;;  %478 = vmatprep.subr.bf16.mxu0 (!%p221_p8), %v577_v9  ;;  %475 = vmatprep.mubr.msk.f32.mxu0 (!%p221_p8), %vm578_vm0, %v579_v10  ;;  %v261_v26 = vld [vmem:[%s674_s1] sm:$0xff] (!%p221_p8)  ;;  %vm277_vm1 = vcmask (!%p221_p8), 588800   ;;  %p255_p9 = scmp.lt.s32.totalorder (!%p221_p8), %s567_s14, 1 }
  0x1c   : > { %s491_s29 = smul.u32 (!%p221_p8), 72, %s227_s28  ;;  %536 = vset.pattern.permute.xlu0 (!%p221_p8), %v580_v12 }
  0x1d   : > { %274 = vperm.xlu0 (!%p221_p8), %536, %v271_v11  }
  0x1e   : > { %s229_s5 = scalar_lea.vmem (!%p221_p8), [#allocation2], %s491_s29 }
  0x1f   : > { %v262_v13 = vld [vmem:[%s229_s5] sm:$0xff] (!%p221_p8)  ;;  %v263_v14 = vld [vmem:[%s229_s5 + $0x8] sm:$0xff] (!%p221_p8)  ;;  %v264_v15 = vld [vmem:[%s229_s5 + $0x10] sm:$0xff] (!%p221_p8) }
  0x20   : > { %v479_v16 = vpack.c.bf16 (!%p221_p8), %v263_v14, %v262_v13  ;;  %v265_v17 = vld [vmem:[%s229_s5 + $0x18] sm:$0xff] (!%p221_p8)  ;;  %v266_v19 = vld [vmem:[%s229_s5 + $0x20] sm:$0xff] (!%p221_p8)  ;;  %v267_v20 = vld [vmem:[%s229_s5 + $0x28] sm:$0xff] (!%p221_p8) }
  0x21   : > { %v482_v18 = vpack.c.bf16 (!%p221_p8), %v265_v17, %v264_v15  ;;  %v485_v21 = vpack.c.bf16 (!%p221_p8), %v267_v20, %v266_v19  ;;  %v268_v22 = vld [vmem:[%s229_s5 + $0x30] sm:$0xff] (!%p221_p8)  ;;  %v269_v23 = vld [vmem:[%s229_s5 + $0x38] sm:$0xff] (!%p221_p8)  ;;  %v270_v25 = vld [vmem:[%s229_s5 + $0x40] sm:$0xff] (!%p221_p8) }
  0x22   : > { %480 = vmatpush3.bf16.msra.mxu0 %v479_v16  ;;  %v488_v24 = vpack.c.bf16 %v269_v23, %v268_v22  ;;  %s684_s14 = smov (!%p255_p9, %s567_s14), 1 }
  0x23   : > { %481 = vmatprep.subr.bf16.mxu0 %v577_v9  ;;  %s443_s8 = sshll.u32 %s684_s14, 3 }
  0x24   : > { %s260_s11 = scalar_lea.vmem %s676_s3, %s443_s8 }
  0x26   : > { %483 = vmatpush3.bf16.msra.mxu0 %v482_v18 }
  0x27   : > { %484 = vmatprep.subr.bf16.mxu0 %v577_v9 }
  0x2a   : > { %486 = vmatpush3.bf16.msra.mxu0 %v485_v21 }
  0x2b   : > { %487 = vmatprep.subr.bf16.mxu0 %v577_v9 }
  0x2e   : > { %489 = vmatpush3.bf16.msra.mxu0 %v488_v24 }
  0x2f   : > { %473 = vmatprep.subr.mxu0 %v579_v10 }
  0x32   : > { %474 = vmatpush3.msra.mxu0 %v270_v25 }
  0x33   : > { %476 = vmatmul.mubr.msk.f32.vlgmr.msra.gmra.mrb[0].mxu0 %vm277_vm1, %v261_v26 }
  0x9c   : > { %v275_v27 = vpop.permute.xlu0 %274 }
 0x106   : > { %v347_v28 = vpop.f32.mrb[0].mxu0 }
 0x107   : > { %v348_v29 = vadd.f32 %v347_v28, %v275_v27  ;;  %v477_v30 = vpop.f32.mrb[1].mxu0 }
 0x109   : > { %351 = vst [vmem:[%s260_s11] sm:$0xff] %v348_v29 }
 0x10a PF: > { %s13_s16 = sadd.s32 1, %s575_s16   ;;  %s677_s12 = smov %s563_s13 }
 0x10b   : > { %p10_p10 = scmp.ge.s32.totalorder %s13_s16, 4   ;;  %s678_s13 = smov %s636_s20 }
 0x10c   : > { %s679_s14 = smov %s571_s15  ;;  %s680_s15 = smov %s682_s17 }
 0x10d   :  { %12 = sbr.rel (!%p10_p10) target bundleno = 3 (0x3), region = 105 }

// kernel: forward.28
= control target key start
LH: loop header
LB: loop body
LE: loop exit
PB: predicated region body
PF: predicated region fallthrough
CT: control target
= control target key end

     0   :  { %s611_s12 = smov 0   ;;  %s613_s13 = smov 0   ;;  %s683_s0 = inlined_call_operand.vmem [shape: f32[1,72,256], index: 0, kind: input, shape index: {}]   ;;  %s684_s1 = inlined_call_operand.vmem [shape: f32[8,72], index: 1, kind: input, shape index: {}]   ;;  %s685_s2 = inlined_call_operand.vmem [shape: f32[8,1], index: 2, kind: input, shape index: {}]   ;;  %s686_s3 = inlined_call_operand.vmem [shape: f32[1,8,256], index: 3, kind: output, shape index: {}]  }
   0x1   :  { %s615_s14 = smov 0   ;;  %s617_s15 = smov 0  }
   0x2   :  { %s619_s16 = smov 0  }
   0x3 LB: > { %s22_s17 = sadd.s32 1, %s581_s15  ;;  %p41_p1 = scmp.ne.s32.totalorder %s573_s13, %s569_s12  ;;  %s585_s16 = sphi %s619_s16, %s13_s16   ;;  %s581_s15 = sphi %s617_s15, %s690_s15   ;;  %s577_s14 = sphi %s615_s14, %s689_s14   ;;  %s573_s13 = sphi %s613_s13, %s688_s13   ;;  %s569_s12 = sphi %s611_s12, %s687_s12  }
   0x4   : > { %p23_p0 = scmp.ge.s32.totalorder %s22_s17, 2  ;;  %p42_p2 = scmp.eq.s32.totalorder %s585_s16, 0 }
   0x5   : > { %s34_s19 = sadd.s32 1, %s573_s13  ;;  %p446_p5 = scmp.ge.s32.totalorder %s585_s16, 2 }
   0x6   : > { %s692_s17 = smov (%p23_p0, %s22_s17), 0  ;;  %p43_p3 = por %p42_p2, %p41_p1 }
   0x7   : > { %s30_s18 = ssub.s32 %s581_s15, %s692_s17  ;;  %143 = sbr.rel (%p446_p5) target bundleno = 23 (0x17), region = 24 }
   0x8   : > { %p32_p4 = scmp.eq.s32.totalorder %s30_s18, 0 }
   0xa   : > { %s646_s20 = scalar_select %p32_p4, %s573_s13, %s34_s19  }
   0xe   : > { %146 = sbr.rel (!%p43_p3) target bundleno = 23 (0x17), region = 28  ;;  %s148_s21 = sand.u32 (%p43_p3), 1, %s573_s13  }
   0xf   : > { %s447_s22 = sshll.u32 (%p43_p3), %s581_s15, 3  ;;  %s496_s23 = smul.u32 (%p43_p3), 72, %s148_s21 }
  0x10   : > { %s154_s26 = scalar_lea.vmem (%p43_p3), %s683_s0, %s447_s22 }
  0x11   : > { %v198_v0 = vld [vmem:[%s154_s26] sm:$0xff] (%p43_p3)  ;;  %v200_v1 = vld [vmem:[%s154_s26 + $0x10] sm:$0xff] (%p43_p3)  ;;  %s150_s27 = scalar_lea.vmem (%p43_p3), [#allocation2], %s496_s23 }
  0x12   : > { %v202_v2 = vld [vmem:[%s154_s26 + $0x20] sm:$0xff] (%p43_p3)  ;;  %v204_v3 = vld [vmem:[%s154_s26 + $0x30] sm:$0xff] (%p43_p3)  ;;  %199 = vst [vmem:[%s150_s27] sm:$0xff] (%p43_p3), %v198_v0  ;;  %201 = vst [vmem:[%s150_s27 + $0x8] sm:$0xff] (%p43_p3), %v200_v1 }
  0x13   : > { %v206_v4 = vld [vmem:[%s154_s26 + $0x40] sm:$0xff] (%p43_p3)  ;;  %v208_v5 = vld [vmem:[%s154_s26 + $0x50] sm:$0xff] (%p43_p3)  ;;  %203 = vst [vmem:[%s150_s27 + $0x10] sm:$0xff] (%p43_p3), %v202_v2  ;;  %205 = vst [vmem:[%s150_s27 + $0x18] sm:$0xff] (%p43_p3), %v204_v3 }
  0x14   : > { %207 = vst [vmem:[%s150_s27 + $0x20] sm:$0xff] (%p43_p3), %v206_v4  ;;  %209 = vst [vmem:[%s150_s27 + $0x28] sm:$0xff] (%p43_p3), %v208_v5  ;;  %v210_v6 = vld [vmem:[%s154_s26 + $0x60] sm:$0xff] (%p43_p3)  ;;  %v212_v7 = vld [vmem:[%s154_s26 + $0x70] sm:$0xff] (%p43_p3) }
  0x15   : > { %v214_v8 = vld [vmem:[%s154_s26 + $0x80] sm:$0xff]  ;;  %211 = vst [vmem:[%s150_s27 + $0x30] sm:$0xff] %v210_v6  ;;  %213 = vst [vmem:[%s150_s27 + $0x38] sm:$0xff] %v212_v7 }
  0x16   : > { %215 = vst [vmem:[%s150_s27 + $0x40] sm:$0xff] %v214_v8 }
  0x17 PF: > { %p448_p6 = scmp.ge.s32.totalorder %s585_s16, 1  ;;  %p220_p7 = scmp.lt.s32.totalorder %s585_s16, 3 }
  0x19   : > { %p221_p8 = pnand %p448_p6, %p220_p7 }
  0x1a   : > { %s227_s28 = sand.u32 (!%p221_p8), 1, %s569_s12   ;;  %v587_v9 = vmov (!%p221_p8), 0.0|0.0   ;;  %vm588_vm0 = vmmov (!%p221_p8), 0   ;;  %v589_v10 = vmov (!%p221_p8), 0.0   ;;  %v271_v11 = vld [vmem:[%s685_s2] sm:$0xff] (!%p221_p8)  ;;  %v590_v12 = vmov (!%p221_p8), 0  }
  0x1b   : > { %224 = sbr.rel (%p221_p8) target bundleno = 296 (0x128), region = 66  ;;  %484 = vmatprep.subr.bf16.mxu0 (!%p221_p8), %v587_v9  ;;  %481 = vmatprep.mubr.msk.f32.mxu0 (!%p221_p8), %vm588_vm0, %v589_v10  ;;  %v261_v26 = vld [vmem:[%s684_s1] sm:$0xff] (!%p221_p8)  ;;  %vm277_vm1 = vcmask (!%p221_p8), 588800   ;;  %p255_p9 = scmp.lt.s32.totalorder (!%p221_p8), %s577_s14, 1 }
  0x1c   : > { %s497_s29 = smul.u32 (!%p221_p8), 72, %s227_s28  ;;  %542 = vset.pattern.permute.xlu0 (!%p221_p8), %v590_v12 }
  0x1d   : > { %274 = vperm.xlu0 (!%p221_p8), %542, %v271_v11  }
  0x1e   : > { %s229_s5 = scalar_lea.vmem (!%p221_p8), [#allocation2], %s497_s29 }
  0x1f   : > { %v262_v13 = vld [vmem:[%s229_s5] sm:$0xff] (!%p221_p8)  ;;  %v263_v14 = vld [vmem:[%s229_s5 + $0x8] sm:$0xff] (!%p221_p8)  ;;  %v264_v15 = vld [vmem:[%s229_s5 + $0x10] sm:$0xff] (!%p221_p8) }
  0x20   : > { %v485_v16 = vpack.c.bf16 (!%p221_p8), %v263_v14, %v262_v13  ;;  %v265_v17 = vld [vmem:[%s229_s5 + $0x18] sm:$0xff] (!%p221_p8)  ;;  %v266_v19 = vld [vmem:[%s229_s5 + $0x20] sm:$0xff] (!%p221_p8)  ;;  %v267_v20 = vld [vmem:[%s229_s5 + $0x28] sm:$0xff] (!%p221_p8) }
  0x21   : > { %v488_v18 = vpack.c.bf16 (!%p221_p8), %v265_v17, %v264_v15  ;;  %v491_v21 = vpack.c.bf16 (!%p221_p8), %v267_v20, %v266_v19  ;;  %v268_v22 = vld [vmem:[%s229_s5 + $0x30] sm:$0xff] (!%p221_p8)  ;;  %v269_v23 = vld [vmem:[%s229_s5 + $0x38] sm:$0xff] (!%p221_p8)  ;;  %v270_v25 = vld [vmem:[%s229_s5 + $0x40] sm:$0xff] (!%p221_p8) }
  0x22   : > { %486 = vmatpush3.bf16.msra.mxu0 %v485_v16  ;;  %v494_v24 = vpack.c.bf16 %v269_v23, %v268_v22  ;;  %s694_s14 = smov (!%p255_p9, %s577_s14), 1 }
  0x23   : > { %487 = vmatprep.subr.bf16.mxu0 %v587_v9  ;;  %s449_s8 = sshll.u32 %s694_s14, 3 }
  0x24   : > { %s260_s11 = scalar_lea.vmem %s686_s3, %s449_s8 }
  0x26   : > { %489 = vmatpush3.bf16.msra.mxu0 %v488_v18 }
  0x27   : > { %490 = vmatprep.subr.bf16.mxu0 %v587_v9 }
  0x2a   : > { %492 = vmatpush3.bf16.msra.mxu0 %v491_v21 }
  0x2b   : > { %493 = vmatprep.subr.bf16.mxu0 %v587_v9 }
  0x2e   : > { %495 = vmatpush3.bf16.msra.mxu0 %v494_v24 }
  0x2f   : > { %479 = vmatprep.subr.mxu0 %v589_v10 }
  0x32   : > { %480 = vmatpush3.msra.mxu0 %v270_v25 }
  0x33   : > { %482 = vmatmul.mubr.msk.f32.vlgmr.msra.gmra.mrb[0].mxu0 %vm277_vm1, %v261_v26 }
  0x9c   : > { %v275_v27 = vpop.permute.xlu0 %274 }
 0x106   : > { %v347_v28 = vpop.f32.mrb[0].mxu0 }
 0x107   : > { %v348_v29 = vadd.f32 %v347_v28, %v275_v27  ;;  %v483_v30 = vpop.f32.mrb[1].mxu0 }
 0x109   : > { %v351_v31 = vsub.f32 0.0, %v348_v29 }
 0x10b   : > { %v352_v32 = vmul.f32 1.442695, %v351_v31 }
 0x10d   : > { %543 = vpow2.f32 %v352_v32 }
 0x117   : > { %v544_v33 = vpop.eup %543 }
 0x118   : > { %v354_v34 = vadd.f32 1.0, %v544_v33 }
 0x11a   : > { %545 = vrcp.f32 %v354_v34 }
 0x124   : > { %v546_v35 = vpop.eup %545 }
 0x125   : > { %v356_v36 = vmul.f32 %v546_v35, %v348_v29 }
 0x127   : > { %357 = vst [vmem:[%s260_s11] sm:$0xff] %v356_v36 }
 0x128 PF: > { %s13_s16 = sadd.s32 1, %s585_s16   ;;  %s687_s12 = smov %s573_s13 }
 0x129   : > { %p10_p10 = scmp.ge.s32.totalorder %s13_s16, 4   ;;  %s688_s13 = smov %s646_s20 }
 0x12a   : > { %s689_s14 = smov %s581_s15  ;;  %s690_s15 = smov %s692_s17 }
 0x12b   :  { %12 = sbr.rel (!%p10_p10) target bundleno = 3 (0x3), region = 105 }

// kernel: forward.32
= control target key start
LH: loop header
LB: loop body
LE: loop exit
PB: predicated region body
PF: predicated region fallthrough
CT: control target
= control target key end

     0   :  { %vm15_vm0 = vcmask 1043456   ;;  %v80_v5 = vmov 839922192   ;;  %v26_v7 = vlaneseq  ;;  %vm54_vm1 = vcmask 3072   ;;  %s119_s0 = inlined_call_operand.vmem [shape: f32[4,256], index: 0, kind: input, shape index: {}]   ;;  %s120_s2 = inlined_call_operand.vmem [shape: f32[4,1], index: 2, kind: output, shape index: {1}]   ;;  %s121_s1 = inlined_call_operand.vmem [shape: f32[4,256], index: 1, kind: output, shape index: {0}]   ;;  %s122_s3 = inlined_call_operand.vmem [shape: f32[4,1], index: 3, kind: output, shape index: {2}]  }
   0x1   :  { %v11_v0 = vld [vmem:[%s119_s0] sm:$0xff]  ;;  %v24_v6 = vunpack.c.l.s4 %v80_v5 }
   0x2   :  { %v13_v1 = vcombine.high %v11_v0, %v11_v0  ;;  %v16_v2 = vsel %vm15_vm0, %v11_v0, 0.0  ;;  %v27_v9 = vshrl.u32 %v26_v7, 7 }
   0x3   :  { %v25_v8 = vunpack.c.0.s8 %v24_v6 }
   0x4   :  { %v17_v3 = vsel %vm15_vm0, %v13_v1, 0.0 }
   0x5   :  { %v18_v4 = vadd.f32 %v17_v3, %v16_v2  ;;  %v28_v10 = vsub.s32 %v25_v8, %v27_v9 }
   0x7   :  { %19 = vadd.xlane.f32.xlu0 %v18_v4 }
  0x94   :  { %v20_v11 = vpop.xlane.xlu0 %19 }
  0x95   :  { %v21_v12 = vmul.f32 0.00390625, %v20_v11 }
  0x97   :  { %v29_v13 = vrot.slane %v21_v12, %v28_v10  ;;  %55 = vst.msk [vmem:[%s120_s2] sm:$0xf] %vm54_vm1, %v21_v12 }
  0x99   :  { %v31_v14 = vsub.f32 %v11_v0, %v29_v13 }
  0x9b   :  { %v32_v15 = vmul.f32 %v31_v14, %v31_v14 }
  0x9d   :  { %v34_v16 = vcombine.high %v32_v15, %v32_v15  ;;  %v36_v17 = vsel %vm15_vm0, %v32_v15, 0.0 }
  0x9f   :  { %v37_v18 = vsel %vm15_vm0, %v34_v16, 0.0 }
  0xa0   :  { %v38_v19 = vadd.f32 %v37_v18, %v36_v17 }
  0xa2   :  { %39 = vadd.xlane.f32.xlu0 %v38_v19 }
 0x12f   :  { %v40_v20 = vpop.xlane.xlu0 %39 }
 0x130   :  { %v41_v21 = vmul.f32 0.003921569, %v40_v20 }
 0x132   :  { %78 = vrsqrt.f32 %v41_v21  ;;  %vm58_vm2 = vcmp.eq.f32.partialorder %v41_v21, inf  ;;  %v61_v25 = vand.u32 2147483648, %v41_v21  ;;  %vm60_vm3 = vcmp.eq.f32.partialorder %v41_v21, 0.0 }
 0x13c   :  { %v79_v22 = vpop.eup %78 }
 0x13d   :  { %v50_v23 = vrot.slane %v79_v22, %v28_v10  ;;  %v57_v24 = vmul.f32 %v79_v22, %v41_v21 }
 0x13f   :  { %v52_v26 = vmul.f32 %v50_v23, %v31_v14  ;;  %v59_v27 = vsel %vm58_vm2, %v41_v21, %v57_v24 }
 0x140   :  { %v62_v28 = vsel %vm60_vm3, %v61_v25, %v59_v27 }
 0x141   :  { %53 = vst [vmem:[%s121_s1] sm:$0xff] %v52_v26  ;;  %63 = vst.msk [vmem:[%s122_s3] sm:$0xf] %vm54_vm1, %v62_v28 }

// kernel: forward.30
= control target key start
LH: loop header
LB: loop body
LE: loop exit
PB: predicated region body
PF: predicated region fallthrough
CT: control target
= control target key end

     0   :  { %s1695_s21 = smov 0   ;;  %s1697_s22 = smov 0   ;;  %s1810_s0 = inlined_call_operand.vmem [shape: f32[16,16], index: 0, kind: input, shape index: {}, may-alias: {0,2}]   ;;  %s1811_s1 = inlined_call_operand.vmem [shape: f32[16,16], index: 1, kind: input, shape index: {}, may-alias: {1,3}]   ;;  %s1812_s2 = inlined_call_operand.vmem [shape: f32[16,16], index: 2, kind: input, shape index: {}, may-alias: {0,2}]   ;;  %s1813_s3 = inlined_call_operand.vmem [shape: f32[16,16], index: 3, kind: input, shape index: {}, may-alias: {1,3}]   ;;  %s1814_s4 = inlined_call_operand.vmem [shape: f32[1,1,16,16], index: 4, kind: input, shape index: {}]   ;;  %s1815_s5 = inlined_call_operand.vmem [shape: f32[1,1,16,16], index: 5, kind: input, shape index: {}]   ;;  %s1816_s6 = inlined_call_operand.vmem [shape: f32[1,4,16,16], index: 6, kind: input, shape index: {}]   ;;  %s1817_s7 = inlined_call_operand.vmem [shape: f32[1,4,16,16], index: 7, kind: input, shape index: {}]   ;;  %s1818_s8 = inlined_call_operand.vmem [shape: f32[1,4,16,16], index: 8, kind: input, shape index: {}]   ;;  %s1819_s9 = inlined_call_operand.vmem [shape: f32[1,4,16,16], index: 9, kind: input, shape index: {}]   ;;  %s1820_s10 = inlined_call_operand.vmem [shape: f32[1,16,16], index: 10, kind: input, shape index: {}]   ;;  %s1821_s11 = inlined_call_operand.vmem [shape: f32[1,4,16,16], index: 11, kind: output, shape index: {0}]   ;;  %s1822_s12 = inlined_call_operand.vmem [shape: f32[1,4,16,16], index: 12, kind: output, shape index: {1}]  }
   0x1   :  { %s1699_s23 = smov 0  }
   0x2 LB: > { %s32_s24 = sadd.s32 1, %s1624_s22  ;;  %p1459_p0 = scmp.ge.s32.totalorder %s1628_s23, 1  ;;  %s1628_s23 = sphi %s1699_s23, %s23_s23   ;;  %s1624_s22 = sphi %s1697_s22, %s1824_s22   ;;  %s1620_s21 = sphi %s1695_s21, %s1823_s21  }
   0x3   : > { %p33_p1 = scmp.ge.s32.totalorder %s32_s24, 4  ;;  %p465_p2 = scmp.lt.s32.totalorder %s1628_s23, 5 }
   0x5   : > { %s1826_s24 = smov (%p33_p1, %s32_s24), 0  ;;  %p466_p3 = pnand %p1459_p0, %p465_p2 }
   0x6   : > { %v659_v0 = vld [vmem:[%s1812_s2] sm:$0xff] (!%p466_p3)  ;;  %v660_v1 = vld [vmem:[%s1812_s2 + $0x8] sm:$0xff] (!%p466_p3)  ;;  %p578_p4 = scmp.lt.s32.totalorder (!%p466_p3), %s1620_s21, 3  ;;  %vm663_vm0 = vcmask (!%p466_p3), 130048  }
   0x7   : > { %469 = sbr.rel (%p466_p3) target bundleno = 478 (0x1de), region = 64  ;;  %v661_v2 = vld [vmem:[%s1813_s3] sm:$0xff] (!%p466_p3)  ;;  %v1558_v3 = vpack.c.bf16 (!%p466_p3), %v660_v1, %v659_v0  ;;  %v662_v4 = vld [vmem:[%s1813_s3 + $0x8] sm:$0xff] (!%p466_p3) }
   0x8   : > { %v828_v5 = vadd.f32 (!%p466_p3), %v661_v2, %v659_v0  ;;  %v1562_v6 = vpack.c.bf16 (!%p466_p3), %v662_v4, %v661_v2  ;;  %v829_v7 = vadd.f32 (!%p466_p3), %v662_v4, %v660_v1  ;;  %v635_v8 = vld [vmem:[%s1814_s4] sm:$0xff] (!%p466_p3)  ;;  %v636_v9 = vld [vmem:[%s1814_s4 + $0x8] sm:$0xff] (!%p466_p3) }
   0x9   : > { %1559 = vmatprep.subr.bf16.mxu0 (!%p466_p3), %v1558_v3  ;;  %v637_v10 = vld [vmem:[%s1815_s5] sm:$0xff] (!%p466_p3)  ;;  %v638_v11 = vld [vmem:[%s1815_s5 + $0x8] sm:$0xff] (!%p466_p3) }
   0xa   : > { %1563 = vmatprep.subr.bf16.mxu1 (!%p466_p3), %v1562_v6  ;;  %1561 = vmatpush3.bf16.msra.mxu0 (!%p466_p3), %v1558_v3  ;;  %v1566_v12 = vpack.c.bf16 (!%p466_p3), %v829_v7, %v828_v5  ;;  %v655_v31 = vld [vmem:[%s1810_s0] sm:$0xff] (!%p466_p3)  ;;  %v656_v47 = vld [vmem:[%s1810_s0 + $0x8] sm:$0xff] (!%p466_p3) }
   0xb   : > { %1565 = vmatpush3.bf16.msra.mxu1 (!%p466_p3), %v1562_v6  ;;  %v657_v32 = vld [vmem:[%s1811_s1] sm:$0xff] (!%p466_p3)  ;;  %v658_v51 = vld [vmem:[%s1811_s1 + $0x8] sm:$0xff] (!%p466_p3) }
   0xc   : > { %1567 = vmatprep.subr.bf16.mxu0 (!%p466_p3), %v1566_v12  ;;  %v1079_v33 = vadd.f32 (!%p466_p3), %v657_v32, %v655_v31  ;;  %v1080_v53 = vadd.f32 (!%p466_p3), %v658_v51, %v656_v47  ;;  %v1171_v62 = vld [vmem:[%s1820_s10 + $0x8] sm:$0xff] (!%p466_p3)  ;;  %v1170_v3 = vld [vmem:[%s1820_s10] sm:$0xff] (!%p466_p3) }
   0xd   : > { %vm1173_vm1 = vcmp.gt.f32.partialorder (!%p466_p3), %v1171_v62, 0.0  ;;  %vm1172_vm2 = vcmp.gt.f32.partialorder (!%p466_p3), %v1170_v3, 0.0 }
   0xe   : > { %s1828_s21 = smov (!%p578_p4, %s1620_s21), 3 }
   0xf   : > { %s1728_s17 = sshll.u32 %s1828_s21, 4 }
  0x10   : > { %s584_s21 = scalar_lea.vmem %s1816_s6, %s1728_s17  ;;  %s593_s14 = scalar_lea.vmem %s1817_s7, %s1728_s17 }
  0x11   : > { %v639_v13 = vld [vmem:[%s584_s21] sm:$0xff]  ;;  %v640_v14 = vld [vmem:[%s584_s21 + $0x8] sm:$0xff]  ;;  %s602_s21 = scalar_lea.vmem %s1818_s8, %s1728_s17  ;;  %s611_s16 = scalar_lea.vmem %s1819_s9, %s1728_s17 }
  0x12   : > { %v641_v15 = vld [vmem:[%s593_s14] sm:$0xff]  ;;  %v642_v16 = vld [vmem:[%s593_s14 + $0x8] sm:$0xff]  ;;  %v643_v17 = vmul.f32 %v639_v13, %v635_v8  ;;  %v644_v18 = vmul.f32 %v640_v14, %v636_v9  ;;  %v652_v20 = vmul.f32 %v640_v14, %v638_v11  ;;  %v651_v24 = vmul.f32 %v639_v13, %v637_v10  ;;  %s625_s26 = scalar_lea.vmem %s1821_s11, %s1728_s17  ;;  %s634_s29 = scalar_lea.vmem %s1822_s12, %s1728_s17 }
  0x13   : > { %v645_v19 = vmul.f32 %v641_v15, %v637_v10  ;;  %v646_v21 = vmul.f32 %v642_v16, %v638_v11  ;;  %v650_v22 = vmul.f32 %v642_v16, %v636_v9  ;;  %v649_v23 = vmul.f32 %v641_v15, %v635_v8  ;;  %v1175_v59 = vld [vmem:[%s602_s21 + $0x8] sm:$0xff]  ;;  %v1174_v0 = vld [vmem:[%s602_s21] sm:$0xff] }
  0x14   : > { %v1177_v9 = vld [vmem:[%s611_s16 + $0x8] sm:$0xff]  ;;  %v1176_v13 = vld [vmem:[%s611_s16] sm:$0xff] }
  0x15   : > { %v647_v25 = vsub.f32 %v643_v17, %v645_v19  ;;  %v653_v26 = vadd.f32 %v651_v24, %v649_v23  ;;  %v648_v27 = vsub.f32 %v644_v18, %v646_v21  ;;  %v654_v28 = vadd.f32 %v652_v20, %v650_v22 }
  0x17   : > { %1520 = vmatprep.mubr.msk.f32.mxu0 %vm663_vm0, %v647_v25  ;;  %1527 = vmatprep.mubr.msk.f32.mxu1 %vm663_vm0, %v653_v26  ;;  %v826_v29 = vadd.f32 %v653_v26, %v647_v25  ;;  %v827_v30 = vadd.f32 %v654_v28, %v648_v27 }
  0x18   : > { %1521 = vmatmul.mubr.msk.f32.vlgmr.msra.gmra.mrb[0].mxu0 %vm663_vm0, %v648_v27  ;;  %1528 = vmatmul.mubr.msk.f32.vlgmr.msra.gmra.mrb[0].mxu1 %vm663_vm0, %v654_v28 }
  0x19   : > { %1569 = vmatpush3.bf16.msra.mxu0 %v1566_v12  ;;  %1534 = vmatprep.mubr.msk.f32.mxu0 %vm663_vm0, %v826_v29 }
  0x1a   : > { %1541 = vmatprep.mubr.msk.f32.mxu1 %vm663_vm0, %v655_v31 }
  0x1c   : > { %1535 = vmatmul.mubr.msk.f32.vlgmr.msra.gmra.mrb[2].mxu0 %vm663_vm0, %v827_v30 }
  0x1d   : > { %1548 = vmatprep.mubr.msk.f32.mxu0 %vm663_vm0, %v657_v32 }
  0xeb   : > { %v1522_v34 = vpop.f32.mrb[0].mxu0  ;;  %v1529_v35 = vpop.f32.mrb[0].mxu1 }
  0xec   : > { %v736_v36 = vpop.f32.mrb[1].mxu0  ;;  %v912_v37 = vsub.f32 %v1522_v34, %v1529_v35  ;;  %v817_v38 = vpop.f32.mrb[1].mxu1 }
  0xed   : > { %v911_v39 = vsub.f32 %v736_v36, %v817_v38 }
  0xef   : > { %v1536_v40 = vpop.f32.mrb[2].mxu0  ;;  %v1570_v41 = vpack.c.bf16 %v912_v37, %v911_v39 }
  0xf0   : > { %v914_v42 = vsub.f32 %v1536_v40, %v1522_v34  ;;  %v902_v43 = vpop.f32.mrb[3].mxu0 }
  0xf1   : > { %v913_v44 = vsub.f32 %v902_v43, %v736_v36  ;;  %1571 = vmatprep.subr.bf16.mxu1 %v1570_v41 }
  0xf2   : > { %v916_v45 = vsub.f32 %v914_v42, %v1529_v35  ;;  %1573 = vmatpush3.bf16.msra.mxu1 %v1570_v41 }
  0xf3   : > { %v915_v46 = vsub.f32 %v913_v44, %v817_v38 }
  0xf4   : > { %v1082_v48 = vadd.f32 %v916_v45, %v912_v37 }
  0xf5   : > { %v1081_v49 = vadd.f32 %v915_v46, %v911_v39  ;;  %v1574_v50 = vpack.c.bf16 %v916_v45, %v915_v46  ;;  %1542 = vmatmul.mubr.msk.f32.vlgmr.msra.gmra.mrb[2].mxu1 %vm663_vm0, %v656_v47 }
  0xf6   : > { %1555 = vmatprep.mubr.msk.f32.mxu1 %vm663_vm0, %v1079_v33 }
  0xf7   : > { %1575 = vmatprep.subr.bf16.mxu0 %v1574_v50  ;;  %v1578_v52 = vpack.c.bf16 %v1082_v48, %v1081_v49 }
  0xf8   : > { %1577 = vmatpush3.bf16.msra.mxu0 %v1574_v50 }
  0xf9   : > { %1579 = vmatprep.subr.bf16.mxu1 %v1578_v52 }
  0xfa   : > { %1581 = vmatpush3.bf16.msra.mxu1 %v1578_v52 }
  0xfb   : > { %1549 = vmatmul.mubr.msk.f32.vlgmr.msra.gmra.mrb[4].mxu0 %vm663_vm0, %v658_v51 }
  0xfd   : > { %1556 = vmatmul.mubr.msk.f32.vlgmr.msra.gmra.mrb[4].mxu1 %vm663_vm0, %v1080_v53 }
 0x1c8   : > { %v1543_v54 = vpop.f32.mrb[2].mxu1 }
 0x1c9   : > { %v989_v55 = vpop.f32.mrb[3].mxu1 }
 0x1ce   : > { %v1550_v56 = vpop.f32.mrb[4].mxu0 }
 0x1cf   : > { %v1165_v57 = vsub.f32 %v1543_v54, %v1550_v56  ;;  %v1070_v58 = vpop.f32.mrb[5].mxu0 }
 0x1d0   : > { %v1164_v60 = vsub.f32 %v989_v55, %v1070_v58  ;;  %v1557_v61 = vpop.f32.mrb[4].mxu1 }
 0x1d1   : > { %v1179_v63 = vmul.f32 0.01, %v1165_v57  ;;  %v1167_v1 = vsub.f32 %v1557_v61, %v1543_v54  ;;  %v1155_v2 = vpop.f32.mrb[5].mxu1 }
 0x1d2   : > { %v1178_v4 = vmul.f32 0.01, %v1164_v60  ;;  %v1166_v5 = vsub.f32 %v1155_v2, %v989_v55 }
 0x1d3   : > { %v1181_v6 = vadd.f32 %v1179_v63, %v1175_v59  ;;  %v1169_v7 = vsub.f32 %v1167_v1, %v1550_v56 }
 0x1d4   : > { %v1180_v8 = vadd.f32 %v1178_v4, %v1174_v0  ;;  %v1168_v10 = vsub.f32 %v1166_v5, %v1070_v58 }
 0x1d5   : > { %v1183_v11 = vmul.f32 0.990099, %v1181_v6  ;;  %v1189_v12 = vmul.f32 0.01, %v1169_v7 }
 0x1d6   : > { %v1182_v14 = vmul.f32 0.990099, %v1180_v8  ;;  %v1188_v15 = vmul.f32 0.01, %v1168_v10 }
 0x1d7   : > { %v1185_v16 = vsel %vm1173_vm1, %v1183_v11, %v1165_v57  ;;  %v1191_v17 = vadd.f32 %v1189_v12, %v1177_v9 }
 0x1d8   : > { %1187 = vst.msk [vmem:[%s625_s26 + $0x8] sm:$0xff] %vm663_vm0, %v1185_v16  ;;  %v1184_v18 = vsel %vm1172_vm2, %v1182_v14, %v1164_v60  ;;  %v1190_v19 = vadd.f32 %v1188_v15, %v1176_v13 }
 0x1d9   : > { %1186 = vst.msk [vmem:[%s625_s26] sm:$0xff] %vm663_vm0, %v1184_v18  ;;  %v1193_v20 = vmul.f32 0.990099, %v1191_v17 }
 0x1da   : > { %v1192_v21 = vmul.f32 0.990099, %v1190_v19 }
 0x1db   : > { %v1195_v22 = vsel %vm1173_vm1, %v1193_v20, %v1169_v7 }
 0x1dc   : > { %1197 = vst.msk [vmem:[%s634_s29 + $0x8] sm:$0xff] %vm663_vm0, %v1195_v22  ;;  %v1194_v23 = vsel %vm1172_vm2, %v1192_v21, %v1168_v10 }
 0x1dd   : > { %1196 = vst.msk [vmem:[%s634_s29] sm:$0xff] %vm663_vm0, %v1194_v23 }
 0x1de PF: > { %s23_s23 = sadd.s32 1, %s1628_s23   ;;  %s1823_s21 = smov %s1624_s22 }
 0x1df   : > { %p20_p5 = scmp.ge.s32.totalorder %s23_s23, 6   ;;  %s1824_s22 = smov %s1826_s24 }
 0x1e1   :  { %22 = sbr.rel (!%p20_p5) target bundleno = 2 (0x2), region = 124 }

// kernel: forward.33
= control target key start
LH: loop header
LB: loop body
LE: loop exit
PB: predicated region body
PF: predicated region fallthrough
CT: control target
= control target key end

     0   :  { %s578_s12 = smov 0   ;;  %s580_s13 = smov 0   ;;  %s650_s0 = inlined_call_operand.vmem [shape: f32[1,36,256], index: 0, kind: input, shape index: {}]   ;;  %s651_s1 = inlined_call_operand.vmem [shape: f32[8,36], index: 1, kind: input, shape index: {}]   ;;  %s652_s2 = inlined_call_operand.vmem [shape: f32[8,1], index: 2, kind: input, shape index: {}]   ;;  %s653_s3 = inlined_call_operand.vmem [shape: f32[1,8,256], index: 3, kind: output, shape index: {}]  }
   0x1   :  { %s582_s14 = smov 0   ;;  %s584_s15 = smov 0  }
   0x2   :  { %s586_s16 = smov 0  }
   0x3 LB: > { %s22_s17 = sadd.s32 1, %s548_s15  ;;  %p41_p1 = scmp.ne.s32.totalorder %s540_s13, %s536_s12  ;;  %s552_s16 = sphi %s586_s16, %s13_s16   ;;  %s548_s15 = sphi %s584_s15, %s657_s15   ;;  %s544_s14 = sphi %s582_s14, %s656_s14   ;;  %s540_s13 = sphi %s580_s13, %s655_s13   ;;  %s536_s12 = sphi %s578_s12, %s654_s12  }
   0x4   : > { %p23_p0 = scmp.ge.s32.totalorder %s22_s17, 2  ;;  %p42_p2 = scmp.eq.s32.totalorder %s552_s16, 0 }
   0x5   : > { %s34_s19 = sadd.s32 1, %s540_s13  ;;  %p430_p5 = scmp.ge.s32.totalorder %s552_s16, 2 }
   0x6   : > { %s659_s17 = smov (%p23_p0, %s22_s17), 0  ;;  %p43_p3 = por %p42_p2, %p41_p1 }
   0x7   : > { %s30_s18 = ssub.s32 %s548_s15, %s659_s17  ;;  %143 = sbr.rel (%p430_p5) target bundleno = 21 (0x15), region = 24 }
   0x8   : > { %p32_p4 = scmp.eq.s32.totalorder %s30_s18, 0 }
   0xa   : > { %s613_s20 = scalar_select %p32_p4, %s540_s13, %s34_s19  }
   0xe   : > { %146 = sbr.rel (!%p43_p3) target bundleno = 21 (0x15), region = 28  ;;  %s148_s21 = sand.u32 (%p43_p3), 1, %s540_s13  }
   0xf   : > { %s431_s22 = sshll.u32 (%p43_p3), %s548_s15, 3  ;;  %s463_s23 = smul.u32 (%p43_p3), 40, %s148_s21 }
  0x10   : > { %s154_s26 = scalar_lea.vmem (%p43_p3), %s650_s0, %s431_s22 }
  0x11   : > { %v190_v0 = vld [vmem:[%s154_s26] sm:$0xff] (%p43_p3)  ;;  %v192_v1 = vld [vmem:[%s154_s26 + $0x10] sm:$0xff] (%p43_p3)  ;;  %s150_s27 = scalar_lea.vmem (%p43_p3), [#allocation2], %s463_s23 }
  0x12   : > { %v194_v2 = vld [vmem:[%s154_s26 + $0x20] sm:$0xff] (%p43_p3)  ;;  %v196_v3 = vld [vmem:[%s154_s26 + $0x30] sm:$0xff] (%p43_p3)  ;;  %191 = vst [vmem:[%s150_s27] sm:$0xff] (%p43_p3), %v190_v0  ;;  %193 = vst [vmem:[%s150_s27 + $0x8] sm:$0xff] (%p43_p3), %v192_v1 }
  0x13   : > { %v198_v4 = vld [vmem:[%s154_s26 + $0x40] sm:$0xff] (%p43_p3)  ;;  %195 = vst [vmem:[%s150_s27 + $0x10] sm:$0xff] (%p43_p3), %v194_v2  ;;  %197 = vst [vmem:[%s150_s27 + $0x18] sm:$0xff] (%p43_p3), %v196_v3 }
  0x14   : > { %199 = vst [vmem:[%s150_s27 + $0x20] sm:$0xff] (%p43_p3), %v198_v4 }
  0x15 PF: > { %p432_p6 = scmp.ge.s32.totalorder %s552_s16, 1  ;;  %p204_p7 = scmp.lt.s32.totalorder %s552_s16, 3 }
  0x17   : > { %p205_p8 = pnand %p432_p6, %p204_p7 }
  0x18   : > { %s211_s28 = sand.u32 (!%p205_p8), 1, %s536_s12   ;;  %v554_v5 = vmov (!%p205_p8), 0.0|0.0   ;;  %vm555_vm0 = vmmov (!%p205_p8), 0   ;;  %v556_v6 = vmov (!%p205_p8), 0.0   ;;  %v251_v7 = vld [vmem:[%s652_s2] sm:$0xff] (!%p205_p8)  ;;  %v557_v8 = vmov (!%p205_p8), 0  }
  0x19   : > { %208 = sbr.rel (%p205_p8) target bundleno = 286 (0x11e), region = 66  ;;  %457 = vmatprep.subr.bf16.mxu0 (!%p205_p8), %v554_v5  ;;  %454 = vmatprep.mubr.msk.f32.mxu0 (!%p205_p8), %vm555_vm0, %v556_v6  ;;  %vm261_vm1 = vcmask (!%p205_p8), 1043456   ;;  %v245_v16 = vld [vmem:[%s651_s1] sm:$0xff] (!%p205_p8)  ;;  %vm257_vm2 = vcmask (!%p205_p8), 293888   ;;  %p239_p9 = scmp.lt.s32.totalorder (!%p205_p8), %s544_s14, 1 }
  0x1a   : > { %s464_s29 = smul.u32 (!%p205_p8), 40, %s211_s28  ;;  %509 = vset.pattern.permute.xlu0 (!%p205_p8), %v557_v8 }
  0x1b   : > { %254 = vperm.xlu0 (!%p205_p8), %509, %v251_v7  }
  0x1c   : > { %s213_s5 = scalar_lea.vmem (!%p205_p8), [#allocation2], %s464_s29 }
  0x1d   : > { %v246_v9 = vld [vmem:[%s213_s5] sm:$0xff] (!%p205_p8)  ;;  %v247_v10 = vld [vmem:[%s213_s5 + $0x8] sm:$0xff] (!%p205_p8)  ;;  %v248_v11 = vld [vmem:[%s213_s5 + $0x10] sm:$0xff] (!%p205_p8) }
  0x1e   : > { %v458_v12 = vpack.c.bf16 (!%p205_p8), %v247_v10, %v246_v9  ;;  %v249_v13 = vld [vmem:[%s213_s5 + $0x18] sm:$0xff] (!%p205_p8)  ;;  %v250_v15 = vld [vmem:[%s213_s5 + $0x20] sm:$0xf] (!%p205_p8) }
  0x1f   : > { %v461_v14 = vpack.c.bf16 (!%p205_p8), %v249_v13, %v248_v11 }
  0x20   : > { %459 = vmatpush3.bf16.msra.mxu0 %v458_v12  ;;  %s661_s14 = smov (!%p239_p9, %s544_s14), 1 }
  0x21   : > { %460 = vmatprep.subr.bf16.mxu0 %v554_v5  ;;  %s433_s8 = sshll.u32 %s661_s14, 3 }
  0x22   : > { %s244_s11 = scalar_lea.vmem %s653_s3, %s433_s8 }
  0x24   : > { %462 = vmatpush3.bf16.msra.mxu0 %v461_v14 }
  0x25   : > { %452 = vmatprep.subr.mxu0 %v556_v6 }
  0x28   : > { %453 = vmatpush3.msk.msra.mxu0 %vm261_vm1, %v250_v15 }
  0x29   : > { %455 = vmatmul.mubr.msk.f32.vlgmr.msra.gmra.mrb[0].mxu0 %vm257_vm2, %v245_v16 }
  0x9a   : > { %v255_v17 = vpop.permute.xlu0 %254 }
  0xfc   : > { %v331_v18 = vpop.f32.mrb[0].mxu0 }
  0xfd   : > { %v332_v19 = vadd.f32 %v331_v18, %v255_v17  ;;  %v456_v20 = vpop.f32.mrb[1].mxu0 }
  0xff   : > { %v335_v21 = vsub.f32 0.0, %v332_v19 }
 0x101   : > { %v336_v22 = vmul.f32 1.442695, %v335_v21 }
 0x103   : > { %510 = vpow2.f32 %v336_v22 }
 0x10d   : > { %v511_v23 = vpop.eup %510 }
 0x10e   : > { %v338_v24 = vadd.f32 1.0, %v511_v23 }
 0x110   : > { %512 = vrcp.f32 %v338_v24 }
 0x11a   : > { %v513_v25 = vpop.eup %512 }
 0x11b   : > { %v340_v26 = vmul.f32 %v513_v25, %v332_v19 }
 0x11d   : > { %341 = vst [vmem:[%s244_s11] sm:$0xff] %v340_v26 }
 0x11e PF: > { %s13_s16 = sadd.s32 1, %s552_s16   ;;  %s654_s12 = smov %s540_s13 }
 0x11f   : > { %p10_p10 = scmp.ge.s32.totalorder %s13_s16, 4   ;;  %s655_s13 = smov %s613_s20 }
 0x120   : > { %s656_s14 = smov %s548_s15  ;;  %s657_s15 = smov %s659_s17 }
 0x121   :  { %12 = sbr.rel (!%p10_p10) target bundleno = 3 (0x3), region = 105 }

// kernel: forward.37
= control target key start
LH: loop header
LB: loop body
LE: loop exit
PB: predicated region body
PF: predicated region fallthrough
CT: control target
= control target key end

     0   :  { %11 = vsyncpa [#allocation3], 0  ;;  %s1206_s21 = smov 0   ;;  %s1208_s22 = smov 0   ;;  %s1317_s0 = inlined_call_operand.vmem [shape: f32[16,16], index: 0, kind: input, shape index: {}, may-alias: {0,2}]   ;;  %s1318_s1 = inlined_call_operand.vmem [shape: f32[16,16], index: 1, kind: input, shape index: {}, may-alias: {1,3}]   ;;  %s1319_s2 = inlined_call_operand.vmem [shape: f32[16,16], index: 2, kind: input, shape index: {}, may-alias: {0,2}]   ;;  %s1320_s3 = inlined_call_operand.vmem [shape: f32[16,16], index: 3, kind: input, shape index: {}, may-alias: {1,3}]   ;;  %s1321_s4 = inlined_call_operand.vmem [shape: f32[1,4,16,16], index: 4, kind: input, shape index: {}]   ;;  %s1322_s5 = inlined_call_operand.vmem [shape: f32[1,4,16,16], index: 5, kind: input, shape index: {}]   ;;  %s1323_s6 = inlined_call_operand.hbm [shape: f32[1,1,16,16], index: 6, kind: output, shape index: {}]  }
   0x1   :  { %s1210_s23 = smov 0  }
   0x2 LB: > { %s958_s24 = sadd.s32 4294967295, %s1166_s23   ;;  %s26_s25 = sadd.s32 1, %s1162_s22  ;;  %s1166_s23 = sphi %s1210_s23, %s17_s23   ;;  %s1162_s22 = sphi %s1208_s22, %s1326_s22   ;;  %s1158_s21 = sphi %s1206_s21, %s1325_s21  }
   0x3   : > { %p27_p0 = scmp.ge.s32.totalorder %s26_s25, 4  ;;  %p961_p1 = scmp.ge.s32.totalorder %s1166_s23, 1 }
   0x4   : > { %p247_p2 = scmp.lt.s32.totalorder %s1166_s23, 5 }
   0x5   : > { %s1328_s25 = smov (%p27_p0, %s26_s25), 0 }
   0x6   : > { %p248_p3 = pnand %p961_p1, %p247_p2 }
   0x7   : > { %v311_v0 = vld [vmem:[%s1319_s2] sm:$0xff] (!%p248_p3)  ;;  %v312_v1 = vld [vmem:[%s1319_s2 + $0x8] sm:$0xff] (!%p248_p3)  ;;  %p287_p4 = scmp.lt.s32.totalorder (!%p248_p3), %s1158_s21, 3  ;;  %vm315_vm0 = vcmask (!%p248_p3), 130048   ;;  %p978_p5 = scmp.ne.s32.totalorder (!%p248_p3), %s1158_s21, 0 }
   0x8   : > { %251 = sbr.rel (%p248_p3) target bundleno = 534 (0x216), region = 44  ;;  %v313_v2 = vld [vmem:[%s1320_s3] sm:$0xff] (!%p248_p3)  ;;  %v1053_v3 = vpack.c.bf16 (!%p248_p3), %v312_v1, %v311_v0  ;;  %v314_v4 = vld [vmem:[%s1320_s3 + $0x8] sm:$0xff] (!%p248_p3) }
   0x9   : > { %v480_v5 = vadd.f32 (!%p248_p3), %v313_v2, %v311_v0  ;;  %v1057_v6 = vpack.c.bf16 (!%p248_p3), %v314_v4, %v313_v2  ;;  %v481_v7 = vadd.f32 (!%p248_p3), %v314_v4, %v312_v1  ;;  %v307_v15 = vld [vmem:[%s1317_s0] sm:$0xff] (!%p248_p3)  ;;  %v308_v30 = vld [vmem:[%s1317_s0 + $0x8] sm:$0xff] (!%p248_p3) }
   0xa   : > { %1054 = vmatprep.subr.bf16.mxu0 (!%p248_p3), %v1053_v3  ;;  %v309_v16 = vld [vmem:[%s1318_s1] sm:$0xff] (!%p248_p3)  ;;  %v310_v35 = vld [vmem:[%s1318_s1 + $0x8] sm:$0xff] (!%p248_p3) }
   0xb   : > { %1058 = vmatprep.subr.bf16.mxu1 (!%p248_p3), %v1057_v6  ;;  %1056 = vmatpush3.bf16.msra.mxu0 (!%p248_p3), %v1053_v3  ;;  %v1061_v8 = vpack.c.bf16 (!%p248_p3), %v481_v7, %v480_v5  ;;  %v731_v17 = vadd.f32 (!%p248_p3), %v309_v16, %v307_v15  ;;  %v732_v37 = vadd.f32 (!%p248_p3), %v310_v35, %v308_v30 }
   0xc   : > { %1060 = vmatpush3.bf16.msra.mxu1 (!%p248_p3), %v1057_v6 }
   0xd   : > { %1062 = vmatprep.subr.bf16.mxu0 (!%p248_p3), %v1061_v8 }
   0xf   : > { %s288_s10 = scalar_select %p287_p4, %s1158_s21, 3 }
  0x11   : > { %s985_s11 = sshll.u32 %s288_s10, 4 }
  0x12   : > { %s293_s14 = scalar_lea.vmem %s1321_s4, %s985_s11  ;;  %s302_s17 = scalar_lea.vmem %s1322_s5, %s985_s11 }
  0x13   : > { %v303_v9 = vld [vmem:[%s293_s14] sm:$0xff]  ;;  %v304_v10 = vld [vmem:[%s293_s14 + $0x8] sm:$0xff] }
  0x14   : > { %v305_v11 = vld [vmem:[%s302_s17] sm:$0xff]  ;;  %1015 = vmatprep.mubr.msk.f32.mxu0 %vm315_vm0, %v303_v9  ;;  %v306_v12 = vld [vmem:[%s302_s17 + $0x8] sm:$0xff] }
  0x15   : > { %1022 = vmatprep.mubr.msk.f32.mxu1 %vm315_vm0, %v305_v11  ;;  %v478_v13 = vadd.f32 %v305_v11, %v303_v9  ;;  %v479_v14 = vadd.f32 %v306_v12, %v304_v10  ;;  %1016 = vmatmul.mubr.msk.f32.vlgmr.msra.gmra.mrb[0].mxu0 %vm315_vm0, %v304_v10 }
  0x16   : > { %1023 = vmatmul.mubr.msk.f32.vlgmr.msra.gmra.mrb[0].mxu1 %vm315_vm0, %v306_v12  ;;  %1064 = vmatpush3.bf16.msra.mxu0 %v1061_v8 }
  0x17   : > { %1029 = vmatprep.mubr.msk.f32.mxu0 %vm315_vm0, %v478_v13  ;;  %1036 = vmatprep.mubr.msk.f32.mxu1 %vm315_vm0, %v307_v15 }
  0x19   : > { %1030 = vmatmul.mubr.msk.f32.vlgmr.msra.gmra.mrb[2].mxu0 %vm315_vm0, %v479_v14 }
  0x1a   : > { %1043 = vmatprep.mubr.msk.f32.mxu0 %vm315_vm0, %v309_v16 }
  0xe8   : > { %v1017_v18 = vpop.f32.mrb[0].mxu0 }
  0xe9   : > { %v1024_v19 = vpop.f32.mrb[0].mxu1  ;;  %v388_v21 = vpop.f32.mrb[1].mxu0 }
  0xea   : > { %v564_v20 = vsub.f32 %v1017_v18, %v1024_v19  ;;  %v469_v22 = vpop.f32.mrb[1].mxu1 }
  0xeb   : > { %v563_v23 = vsub.f32 %v388_v21, %v469_v22 }
  0xec   : > { %v1031_v25 = vpop.f32.mrb[2].mxu0 }
  0xed   : > { %v1065_v24 = vpack.c.bf16 %v564_v20, %v563_v23  ;;  %v566_v26 = vsub.f32 %v1031_v25, %v1017_v18  ;;  %v554_v27 = vpop.f32.mrb[3].mxu0 }
  0xee   : > { %v565_v28 = vsub.f32 %v554_v27, %v388_v21 }
  0xef   : > { %1066 = vmatprep.subr.bf16.mxu1 %v1065_v24  ;;  %v568_v29 = vsub.f32 %v566_v26, %v1024_v19 }
  0xf0   : > { %1068 = vmatpush3.bf16.msra.mxu1 %v1065_v24  ;;  %v567_v31 = vsub.f32 %v565_v28, %v469_v22 }
  0xf1   : > { %v734_v32 = vadd.f32 %v568_v29, %v564_v20 }
  0xf2   : > { %v733_v33 = vadd.f32 %v567_v31, %v563_v23  ;;  %v1069_v34 = vpack.c.bf16 %v568_v29, %v567_v31 }
  0xf3   : > { %1037 = vmatmul.mubr.msk.f32.vlgmr.msra.gmra.mrb[2].mxu1 %vm315_vm0, %v308_v30 }
  0xf4   : > { %1050 = vmatprep.mubr.msk.f32.mxu1 %vm315_vm0, %v731_v17  ;;  %1070 = vmatprep.subr.bf16.mxu0 %v1069_v34  ;;  %v1073_v36 = vpack.c.bf16 %v734_v32, %v733_v33 }
  0xf5   : > { %1072 = vmatpush3.bf16.msra.mxu0 %v1069_v34 }
  0xf6   : > { %1074 = vmatprep.subr.bf16.mxu1 %v1073_v36 }
  0xf7   : > { %1076 = vmatpush3.bf16.msra.mxu1 %v1073_v36 }
  0xf8   : > { %1044 = vmatmul.mubr.msk.f32.vlgmr.msra.gmra.mrb[4].mxu0 %vm315_vm0, %v310_v35 }
  0xfa   : > { %1051 = vmatmul.mubr.msk.f32.vlgmr.msra.gmra.mrb[4].mxu1 %vm315_vm0, %v732_v37 }
 0x1c6   : > { %v1038_v38 = vpop.f32.mrb[2].mxu1 }
 0x1c7   : > { %v641_v39 = vpop.f32.mrb[3].mxu1 }
 0x1cb   : > { %v1045_v40 = vpop.f32.mrb[4].mxu0 }
 0x1cc   : > { %v817_v41 = vsub.f32 %v1038_v38, %v1045_v40  ;;  %v722_v42 = vpop.f32.mrb[5].mxu0 }
 0x1cd   : > { %v816_v43 = vsub.f32 %v641_v39, %v722_v42  ;;  %v1052_v44 = vpop.f32.mrb[4].mxu1 }
 0x1ce   : > { %v819_v45 = vsub.f32 %v1052_v44, %v1038_v38  ;;  %v807_v46 = vpop.f32.mrb[5].mxu1  ;;  %v823_v50 = vmul.f32 %v817_v41, %v817_v41 }
 0x1cf   : > { %v818_v47 = vsub.f32 %v807_v46, %v641_v39  ;;  %v822_v52 = vmul.f32 %v816_v43, %v816_v43  ;;  %831 = sbr.rel (%p978_p5) target bundleno = 472 (0x1d8), region = 48 }
 0x1d0   : > { %v821_v48 = vsub.f32 %v819_v45, %v1045_v40 }
 0x1d1   : > { %v820_v49 = vsub.f32 %v818_v47, %v722_v42 }
 0x1d2   : > { %v825_v51 = vmul.f32 %v821_v48, %v821_v48 }
 0x1d3   : > { %v824_v53 = vmul.f32 %v820_v49, %v820_v49 }
 0x1d4   : > { %v827_v54 = vadd.f32 %v825_v51, %v823_v50 }
 0x1d5   : > { %v826_v55 = vadd.f32 %v824_v53, %v822_v52 }
 0x1d6   : > { %833 = vst.msk [vmem:[#allocation2 + $0x8] sm:$0xff] %vm315_vm0, %v827_v54 }
 0x1d7   : > { %832 = vst.msk [vmem:[#allocation2] sm:$0xff] %vm315_vm0, %v826_v55 }
 0x1d8 PF: > { %p979_p6 = scmp.le.s32.totalorder %s1158_s21, 0 }
 0x1da   : > { %837 = sbr.rel (%p979_p6) target bundleno = 483 (0x1e3), region = 52 }
 0x1de   : > { %v838_v56 = vld [vmem:[#allocation2] sm:$0xff] (!%p979_p6) }
 0x1df   : > { %v839_v57 = vld [vmem:[#allocation2 + $0x8] sm:$0xff] (!%p979_p6)  ;;  %v840_v58 = vadd.f32 (!%p979_p6), %v838_v56, %v826_v55 }
 0x1e0   : > { %v841_v59 = vadd.f32 (!%p979_p6), %v839_v57, %v827_v54 }
 0x1e1   : > { %842 = vst.msk [vmem:[#allocation2] sm:$0xff] %vm315_vm0, %v840_v58 }
 0x1e2   : > { %843 = vst.msk [vmem:[#allocation2 + $0x8] sm:$0xff] %vm315_vm0, %v841_v59 }
 0x1e3 PF: > { %p980_p7 = scmp.ne.s32.totalorder %s1158_s21, 3 }
 0x1e5   : > { %847 = sbr.rel (%p980_p7) target bundleno = 508 (0x1fc), region = 56 }
 0x1e9   : > { %v849_v61 = vld [vmem:[#allocation2 + $0x8] sm:$0xff] (!%p980_p7) }
 0x1ea   : > { %v848_v60 = vld [vmem:[#allocation2] sm:$0xff] (!%p980_p7)  ;;  %vm859_vm3 = vcmp.eq.f32.partialorder (!%p980_p7), %v849_v61, inf  ;;  %v862_v2 = vand.u32 (!%p980_p7), 2147483648, %v849_v61  ;;  %vm861_vm4 = vcmp.eq.f32.partialorder (!%p980_p7), %v849_v61, 0.0 }
 0x1eb   : > { %1110 = vrsqrt.f32 (!%p980_p7), %v848_v60  ;;  %vm852_vm1 = vcmp.eq.f32.partialorder (!%p980_p7), %v848_v60, inf  ;;  %v855_v63 = vand.u32 (!%p980_p7), 2147483648, %v848_v60  ;;  %vm854_vm2 = vcmp.eq.f32.partialorder (!%p980_p7), %v848_v60, 0.0 }
 0x1ec   : > { %1112 = vrsqrt.f32 %v849_v61 }
 0x1f5   : > { %v1111_v62 = vpop.eup %1110 }
 0x1f6   : > { %v1113_v0 = vpop.eup %1112  ;;  %v851_v1 = vmul.f32 %v1111_v62, %v848_v60 }
 0x1f7   : > { %v858_v3 = vmul.f32 %v1113_v0, %v849_v61 }
 0x1f8   : > { %v853_v4 = vsel %vm852_vm1, %v848_v60, %v851_v1 }
 0x1f9   : > { %v856_v5 = vsel %vm854_vm2, %v855_v63, %v853_v4  ;;  %v860_v6 = vsel %vm859_vm3, %v849_v61, %v858_v3 }
 0x1fa   : > { %864 = vst.msk [vmem:[#allocation2] sm:$0xff] %vm315_vm0, %v856_v5  ;;  %v863_v7 = vsel %vm861_vm4, %v862_v2, %v860_v6 }
 0x1fb   : > { %865 = vst.msk [vmem:[#allocation2 + $0x8] sm:$0xff] %vm315_vm0, %v863_v7 }
 0x1fc PF: > { %p1282_p8 = scmp.eq.s32.totalorder %s958_s24, 3  ;;  %s1168_s7 = smov [#allocation2]  }
 0x1fd   : > { %s875_s8 = sshll.u32 %s1168_s7, 4  ;;  %s876_s8 = int_to_ptr.vmem [resolvable:$true] %s875_s8 }
 0x1fe   : > { %s1114_s9 = scalar_lea.vmem %s876_s8, 256  ;;  %p1121_p12 = scmp.lt.s32.totalorder %s876_s8, %s876_s8 }
 0x1ff   : > { %p1115_p9 = scmp.ne.s32.totalorder %s876_s8, %s1114_s9  ;;  %p1122_p13 = scmp.lt.s32.totalorder %s1114_s9, %s1114_s9 }
 0x201   : > { %p1116_p10 = pnand %p1115_p9, %p1282_p8  ;;  %p1123_p0 = por %p1122_p13, %p1121_p12 }
 0x203   : > { %p1117_p11 = pneg %p1116_p10 }
 0x205   : > { %p1124_p1 = pnand %p1123_p0, %p1117_p11 }
 0x207   : > { %1127 = shalt.err (!%p1124_p1)
}
 0x208   : > { %s1128_s24 = scalar_lea.hbm %s1323_s6, 256 }
 0x209   : > { %p1129_p2 = scmp.ne.s32.totalorder %s1323_s6, %s1128_s24  ;;  %p1134_p5 = scmp.lt.u32.totalorder %s1128_s24, %s1323_s6 }
 0x20b   : > { %p1130_p3 = pnand %p1129_p2, %p1282_p8 }
 0x20d   : > { %p1131_p4 = pneg %p1130_p3 }
 0x20f   : > { %p1136_p6 = pnand %p1134_p5, %p1131_p4 }
 0x211   : > { %1139 = shalt.err (!%p1136_p6)
}
 0x212   : > { %s1169_s16 = smov 128   ;;  %s1170_s17 = smov 8  }
 0x213   : > { %1078 = dma.vmem_to_hbm [thread:$0]  (%p1282_p8), %s876_s8, 256, %s1323_s6, [#allocation3], %s1169_s16, %s1169_s16, %s1170_s17  }
 0x214   : > { %1153 = dma.done.wait (%p1282_p8), [#allocation3], 256  }
 0x215   : > { %1155 = vsyncadd (%p1282_p8), [#allocation3], 4294967040 }
 0x216 PF: > { %s17_s23 = sadd.s32 1, %s1166_s23   ;;  %s1325_s21 = smov %s1162_s22 }
 0x217   : > { %p14_p7 = scmp.ge.s32.totalorder %s17_s23, 6   ;;  %s1326_s22 = smov %s1328_s25 }
 0x219   :  { %16 = sbr.rel (!%p14_p7) target bundleno = 2 (0x2), region = 87 }
 0x220   :  { %891 = vsyncpa [#allocation3], 1 }
 0x221   :  { %893 = vsyncpa [#allocation3 + $0x1], 1 }

</bundles_post_ra>
